<compile_context>
chip_gen: v6e
topology: v6e:2x2x1
jax: 0.10.0
libtpu: 0.0.40
codegen_flags: <defaults>
</compile_context>

<pallas_src>
import math

import jax
import jax.numpy as jnp
import numpy as np
from jax import lax
from jax.experimental import pallas as pl
from jax.experimental.pallas import tpu as pltpu


def _lstm_model_kernel(x_ref, wih0_ref, whh0_ref, b0_ref,
                       wihr_ref, whhr_ref, br_ref,
                       fcw_ref, fcb_ref, clsw_ref, clsb_ref,
                       feat_ref, cls_ref,
                       seq_sc, xproj_sc):
    """Whole forward pass in one kernel (everything fits in VMEM at these sizes)."""
    TB = x_ref.shape[0]                   # T * Bp (time-major, flattened)
    B = feat_ref.shape[0]                 # padded batch (multiple of 8)
    T = TB // B
    H = seq_sc.shape[-1]
    n_rest = wihr_ref.shape[0]            # n_layers - 1

    def run_layer(x_flat, wih, whh, b, store_seq):
        # (1) Hoisted input projection + bias: one MXU matmul over all T*Bp
        #     rows, entirely off the serial h-dependency chain. (b = b_ih+b_hh.)
        xproj_sc[...] = jnp.dot(x_flat, wih,
                                preferred_element_type=jnp.float32) + b

        # (2) h / c live in vregs as loop-carried values (zero init per layer,
        #     matching the torch.zeros lstm_init).
        h = jnp.zeros((B, H), jnp.float32)
        c = jnp.zeros((B, H), jnp.float32)

        # (3) Fully unrolled recurrence; every slice below is static and
        #     tile-aligned (B is a multiple of 8).
        for t in range(T):
            gates = xproj_sc[t * B:(t + 1) * B, :] + jnp.dot(
                h, whh, preferred_element_type=jnp.float32)     # (B, 4H) i,f,g,o
            # (4) Two full-block nonlinearities instead of four per-gate ones.
            sig = jax.nn.sigmoid(gates)
            th = jnp.tanh(gates)
            i_g = sig[:, 0 * H:1 * H]
            f_g = sig[:, 1 * H:2 * H]
            g_g = th[:, 2 * H:3 * H]
            o_g = sig[:, 3 * H:4 * H]
            c = f_g * c + i_g * g_g
            h = o_g * jnp.tanh(c)
            if store_seq:                          # (5) skipped for last layer
                seq_sc[t * B:(t + 1) * B, :] = h   # next layer's input sequence
        return h

    # layer 0 reads the raw input sequence (input_size may differ from H)
    h_last = run_layer(x_ref[...], wih0_ref[...], whh0_ref[...], b0_ref[...],
                       store_seq=(n_rest > 0))

    # layers 1..L-1 reuse the single sequence buffer in place: its previous
    # contents are fully consumed by the hoisted projection before any write.
    for l in range(n_rest):
        h_last = run_layer(seq_sc[...], wihr_ref[l], whhr_ref[l], br_ref[l],
                           store_seq=(l < n_rest - 1))

    # h of the last layer at the last timestep == lstm(x)[0][:, -1, :]
    feat = jnp.dot(h_last, fcw_ref[...],
                   preferred_element_type=jnp.float32) + fcb_ref[...]
    cls = jnp.dot(feat, clsw_ref[...],
                  preferred_element_type=jnp.float32) + clsb_ref[...]
    # class prediction uses the pre-relu features, exactly like the module
    feat_ref[...] = jnp.maximum(feat, 0.0)
    cls_ref[...] = cls


def lstm_model_forward(x, params):
    """x: (batch, channels, timespan) float32, PyTorch batch_first convention."""
    B, T, I = x.shape
    H = params["whh0"].shape[0]
    F = params["fcw"].shape[1]
    C = params["clsw"].shape[1]

    # Pad batch to a sublane multiple so every per-timestep slice inside the
    # kernel is tile-aligned.  Padded rows cost nothing (sub-tile lanes are
    # processed anyway) and are sliced off below.
    Bp = -(-B // 8) * 8
    x_tm = jnp.transpose(x, (1, 0, 2)).astype(jnp.float32)     # (T, B, I)
    if Bp != B:
        x_tm = jnp.pad(x_tm, ((0, 0), (0, Bp - B), (0, 0)))
    x_flat = x_tm.reshape(T * Bp, I)                           # (T*Bp, I)

    vmem = pl.BlockSpec(memory_space=pltpu.MemorySpace.VMEM)
    out_shapes = (jax.ShapeDtypeStruct((Bp, F), jnp.float32),
                  jax.ShapeDtypeStruct((Bp, C), jnp.float32))

    # Gridless: total footprint is far under the scoped VMEM limit on all
    # generations, and the recurrence is latency-bound (nothing to pipeline).
    kernel = pl.pallas_call(
        _lstm_model_kernel,
        out_shape=out_shapes,
        in_specs=[vmem] * 11,
        out_specs=(vmem, vmem),
        scratch_shapes=[
            pltpu.VMEM((T * Bp, H), jnp.float32),       # layer output sequence (reused in place)
            pltpu.VMEM((T * Bp, 4 * H), jnp.float32),   # hoisted input projection
        ],
    )
    feat, cls = kernel(x_flat,
                       params["wih0"], params["whh0"], params["b0"],
                       params["wihr"], params["whhr"], params["br"],
                       params["fcw"], params["fcb"],
                       params["clsw"], params["clsb"])
    return feat[:B], cls[:B]


def init_params(key, input_size, hidden, n_layers, out_features, n_classes):
    """Deterministic synthetic init matching the nn.Module parameter shapes
    (PyTorch-style U(-1/sqrt(fan), 1/sqrt(fan)))."""
    keys = jax.random.split(key, 12)
    u = lambda k, shape, b: jax.random.uniform(k, shape, jnp.float32, -b, b)
    kh = 1.0 / math.sqrt(hidden)

    # nn.LSTM: weight_ih_l0 (4H, I), weight_hh_l* (4H, H), weight_ih_l{>0} (4H, H)
    wih0 = u(keys[0], (4 * hidden, input_size), kh)
    whh0 = u(keys[1], (4 * hidden, hidden), kh)
    bih0 = u(keys[2], (4 * hidden,), kh)
    bhh0 = u(keys[3], (4 * hidden,), kh)
    wihr = u(keys[4], (n_layers - 1, 4 * hidden, hidden), kh)
    whhr = u(keys[5], (n_layers - 1, 4 * hidden, hidden), kh)
    bihr = u(keys[6], (n_layers - 1, 4 * hidden), kh)
    bhhr = u(keys[7], (n_layers - 1, 4 * hidden), kh)

    kf = 1.0 / math.sqrt(hidden)
    fcw = u(keys[8], (out_features, hidden), kf)
    fcb = u(keys[9], (out_features,), kf)
    kc = 1.0 / math.sqrt(out_features)
    clsw = u(keys[10], (n_classes, out_features), kc)
    clsb = u(keys[11], (n_classes,), kc)

    return {
        "wih0": wih0.T,                              # (I, 4H)
        "whh0": whh0.T,                              # (H, 4H)
        "b0": (bih0 + bhh0)[None, :],                # (1, 4H) (b_ih + b_hh)
        "wihr": jnp.transpose(wihr, (0, 2, 1)),      # (L-1, H, 4H)
        "whhr": jnp.transpose(whhr, (0, 2, 1)),      # (L-1, H, 4H)
        "br": (bihr + bhhr)[:, None, :],             # (L-1, 1, 4H)
        "fcw": fcw.T, "fcb": fcb[None, :],           # (H, F), (1, F)
        "clsw": clsw.T, "clsb": clsb[None, :],       # (F, C), (1, C)
    }


def reference_forward(x, params):
    """Pure-JAX reference mirroring torch.nn.LSTM semantics (gate order i,f,g,o)."""
    B = x.shape[0]
    H = params["whh0"].shape[0]
    seq = jnp.transpose(x, (1, 0, 2)).astype(jnp.float32)      # (T, B, I)

    def layer(seq_in, wih, whh, b):
        def step(carry, x_t):
            h, c = carry
            gates = x_t @ wih + h @ whh + b
            i = jax.nn.sigmoid(gates[:, :H])
            f = jax.nn.sigmoid(gates[:, H:2 * H])
            g = jnp.tanh(gates[:, 2 * H:3 * H])
            o = jax.nn.sigmoid(gates[:, 3 * H:])
            c = f * c + i * g
            h = o * jnp.tanh(c)
            return (h, c), h
        h0 = jnp.zeros((B, H), jnp.float32)
        _, hs = lax.scan(step, (h0, h0), seq_in)
        return hs

    seq = layer(seq, params["wih0"], params["whh0"], params["b0"])
    for l in range(params["wihr"].shape[0]):
        seq = layer(seq, params["wihr"][l], params["whhr"][l], params["br"][l])
    h_last = seq[-1]
    feat = h_last @ params["fcw"] + params["fcb"]
    cls = feat @ params["clsw"] + params["clsb"]
    return jnp.maximum(feat, 0.0), cls


if __name__ == "__main__":
    key = jax.random.PRNGKey(0)
    # x: (batch, channels, timespan); LSTM(batch_first) => seq_len=channels, input_size=timespan
    B, CH, TS = 2, 8, 16
    HIDDEN, N_LAYERS, OUT_FEATURES, N_CLASSES = 32, 4, 384, 40

    kx, kp = jax.random.split(key)
    x = jax.random.normal(kx, (B, CH, TS), jnp.float32)
    params = init_params(kp, TS, HIDDEN, N_LAYERS, OUT_FEATURES, N_CLASSES)

    feat, cls = lstm_model_forward(x, params)
    feat = jax.block_until_ready(feat)
    cls = jax.block_until_ready(cls)

    feat_ref, cls_ref = reference_forward(x, params)
    assert feat.shape == (B, OUT_FEATURES) and cls.shape == (B, N_CLASSES)
    assert np.allclose(np.asarray(feat), np.asarray(feat_ref), rtol=1e-4, atol=1e-4)
    assert np.allclose(np.asarray(cls), np.asarray(cls_ref), rtol=1e-4, atol=1e-4)
    print("KERNEL_OK")
</pallas_src>

<mosaic_0001>
module attributes {stable_mosaic.version = 11 : i64} {
  func.func @_lstm_model_kernel(%arg0: memref<64x16xf32, #tpu.memory_space<vmem>>, %arg1: memref<16x128xf32, #tpu.memory_space<vmem>>, %arg2: memref<32x128xf32, #tpu.memory_space<vmem>>, %arg3: memref<1x128xf32, #tpu.memory_space<vmem>>, %arg4: memref<3x32x128xf32, #tpu.memory_space<vmem>>, %arg5: memref<3x32x128xf32, #tpu.memory_space<vmem>>, %arg6: memref<3x1x128xf32, #tpu.memory_space<vmem>>, %arg7: memref<32x384xf32, #tpu.memory_space<vmem>>, %arg8: memref<1x384xf32, #tpu.memory_space<vmem>>, %arg9: memref<384x40xf32, #tpu.memory_space<vmem>>, %arg10: memref<1x40xf32, #tpu.memory_space<vmem>>, %arg11: memref<8x384xf32, #tpu.memory_space<vmem>>, %arg12: memref<8x40xf32, #tpu.memory_space<vmem>>, %arg13: memref<64x32xf32, #tpu.memory_space<vmem>>, %arg14: memref<64x128xf32, #tpu.memory_space<vmem>>) attributes {dimension_semantics = [], scalar_prefetch = 0 : i64, scratch_operands = 2 : i64, tpu.core_type = #tpu.core_type<tc>} {
    %c0 = arith.constant 0 : index
    %c0_0 = arith.constant 0 : index
    %0 = vector.load %arg0[%c0, %c0_0] : memref<64x16xf32, #tpu.memory_space<vmem>>, vector<64x16xf32>
    %c0_1 = arith.constant 0 : index
    %c0_2 = arith.constant 0 : index
    %1 = vector.load %arg1[%c0_1, %c0_2] : memref<16x128xf32, #tpu.memory_space<vmem>>, vector<16x128xf32>
    %c0_3 = arith.constant 0 : index
    %c0_4 = arith.constant 0 : index
    %2 = vector.load %arg2[%c0_3, %c0_4] : memref<32x128xf32, #tpu.memory_space<vmem>>, vector<32x128xf32>
    %c0_5 = arith.constant 0 : index
    %c0_6 = arith.constant 0 : index
    %3 = vector.load %arg3[%c0_5, %c0_6] : memref<1x128xf32, #tpu.memory_space<vmem>>, vector<1x128xf32>
    %cst = arith.constant dense<0.000000e+00> : vector<64x128xf32>
    %4 = tpu.matmul %0, %1, %cst {dimension_numbers = #tpu.dot_dimension_numbers<[1], [0], [0], [1], [0, 0, 1, 1], [], []>} : vector<64x16xf32>, vector<16x128xf32>, vector<64x128xf32> -> vector<64x128xf32>
    %5 = vector.broadcast %3 : vector<1x128xf32> to vector<64x128xf32>
    %6 = arith.addf %4, %5 : vector<64x128xf32>
    %c0_7 = arith.constant 0 : index
    %c0_8 = arith.constant 0 : index
    %7 = vector.load %arg14[%c0_7, %c0_8] : memref<64x128xf32, #tpu.memory_space<vmem>>, vector<64x128xf32>
    tpu.vector_store %arg14[%c0_7, %c0_8], %6 {strides = array<i32>} : memref<64x128xf32, #tpu.memory_space<vmem>>, vector<64x128xf32>,
    %cst_9 = arith.constant 0.000000e+00 : f32
    %8 = vector.broadcast %cst_9 : f32 to vector<8x32xf32>
    %cst_10 = arith.constant 0.000000e+00 : f32
    %9 = vector.broadcast %cst_10 : f32 to vector<8x32xf32>
    %c0_11 = arith.constant 0 : index
    %c0_12 = arith.constant 0 : index
    %10 = vector.load %arg14[%c0_11, %c0_12] : memref<64x128xf32, #tpu.memory_space<vmem>>, vector<8x128xf32>
    %cst_13 = arith.constant dense<0.000000e+00> : vector<8x128xf32>
    %11 = tpu.matmul %8, %2, %cst_13 {dimension_numbers = #tpu.dot_dimension_numbers<[1], [0], [0], [1], [0, 0, 1, 1], [], []>} : vector<8x32xf32>, vector<32x128xf32>, vector<8x128xf32> -> vector<8x128xf32>
    %12 = arith.addf %10, %11 : vector<8x128xf32>
    %13 = arith.negf %12 : vector<8x128xf32>
    %14 = math.exp %13 : vector<8x128xf32>
    %cst_14 = arith.constant 1.000000e+00 : f32
    %15 = vector.broadcast %cst_14 : f32 to vector<8x128xf32>
    %16 = arith.addf %15, %14 : vector<8x128xf32>
    %17 = arith.divf %15, %16 : vector<8x128xf32>
    %18 = math.tanh %12 : vector<8x128xf32>
    %19 = vector.extract_strided_slice %17 {offsets = [0, 0], sizes = [8, 32], strides = [1, 1]} : vector<8x128xf32> to vector<8x32xf32>
    %20 = vector.extract_strided_slice %17 {offsets = [0, 32], sizes = [8, 32], strides = [1, 1]} : vector<8x128xf32> to vector<8x32xf32>
    %21 = vector.extract_strided_slice %18 {offsets = [0, 64], sizes = [8, 32], strides = [1, 1]} : vector<8x128xf32> to vector<8x32xf32>
    %22 = vector.extract_strided_slice %17 {offsets = [0, 96], sizes = [8, 32], strides = [1, 1]} : vector<8x128xf32> to vector<8x32xf32>
    %23 = arith.mulf %20, %9 : vector<8x32xf32>
    %24 = arith.mulf %19, %21 : vector<8x32xf32>
    %25 = arith.addf %23, %24 : vector<8x32xf32>
    %26 = math.tanh %25 : vector<8x32xf32>
    %27 = arith.mulf %22, %26 : vector<8x32xf32>
    %c0_15 = arith.constant 0 : index
    %c0_16 = arith.constant 0 : index
    %28 = vector.load %arg13[%c0_15, %c0_16] : memref<64x32xf32, #tpu.memory_space<vmem>>, vector<8x32xf32>
    tpu.vector_store %arg13[%c0_15, %c0_16], %27 {strides = array<i32>} : memref<64x32xf32, #tpu.memory_space<vmem>>, vector<8x32xf32>,
    %c8 = arith.constant 8 : index
    %c0_17 = arith.constant 0 : index
    %29 = vector.load %arg14[%c8, %c0_17] : memref<64x128xf32, #tpu.memory_space<vmem>>, vector<8x128xf32>
    %cst_18 = arith.constant dense<0.000000e+00> : vector<8x128xf32>
    %30 = tpu.matmul %27, %2, %cst_18 {dimension_numbers = #tpu.dot_dimension_numbers<[1], [0], [0], [1], [0, 0, 1, 1], [], []>} : vector<8x32xf32>, vector<32x128xf32>, vector<8x128xf32> -> vector<8x128xf32>
    %31 = arith.addf %29, %30 : vector<8x128xf32>
    %32 = arith.negf %31 : vector<8x128xf32>
    %33 = math.exp %32 : vector<8x128xf32>
    %cst_19 = arith.constant 1.000000e+00 : f32
    %34 = vector.broadcast %cst_19 : f32 to vector<8x128xf32>
    %35 = arith.addf %34, %33 : vector<8x128xf32>
    %36 = arith.divf %34, %35 : vector<8x128xf32>
    %37 = math.tanh %31 : vector<8x128xf32>
    %38 = vector.extract_strided_slice %36 {offsets = [0, 0], sizes = [8, 32], strides = [1, 1]} : vector<8x128xf32> to vector<8x32xf32>
    %39 = vector.extract_strided_slice %36 {offsets = [0, 32], sizes = [8, 32], strides = [1, 1]} : vector<8x128xf32> to vector<8x32xf32>
    %40 = vector.extract_strided_slice %37 {offsets = [0, 64], sizes = [8, 32], strides = [1, 1]} : vector<8x128xf32> to vector<8x32xf32>
    %41 = vector.extract_strided_slice %36 {offsets = [0, 96], sizes = [8, 32], strides = [1, 1]} : vector<8x128xf32> to vector<8x32xf32>
    %42 = arith.mulf %39, %25 : vector<8x32xf32>
    %43 = arith.mulf %38, %40 : vector<8x32xf32>
    %44 = arith.addf %42, %43 : vector<8x32xf32>
    %45 = math.tanh %44 : vector<8x32xf32>
    %46 = arith.mulf %41, %45 : vector<8x32xf32>
    %c8_20 = arith.constant 8 : index
    %c0_21 = arith.constant 0 : index
    %47 = vector.load %arg13[%c8_20, %c0_21] : memref<64x32xf32, #tpu.memory_space<vmem>>, vector<8x32xf32>
    tpu.vector_store %arg13[%c8_20, %c0_21], %46 {strides = array<i32>} : memref<64x32xf32, #tpu.memory_space<vmem>>, vector<8x32xf32>,
    %c16 = arith.constant 16 : index
    %c0_22 = arith.constant 0 : index
    %48 = vector.load %arg14[%c16, %c0_22] : memref<64x128xf32, #tpu.memory_space<vmem>>, vector<8x128xf32>
    %cst_23 = arith.constant dense<0.000000e+00> : vector<8x128xf32>
    %49 = tpu.matmul %46, %2, %cst_23 {dimension_numbers = #tpu.dot_dimension_numbers<[1], [0], [0], [1], [0, 0, 1, 1], [], []>} : vector<8x32xf32>, vector<32x128xf32>, vector<8x128xf32> -> vector<8x128xf32>
    %50 = arith.addf %48, %49 : vector<8x128xf32>
    %51 = arith.negf %50 : vector<8x128xf32>
    %52 = math.exp %51 : vector<8x128xf32>
    %cst_24 = arith.constant 1.000000e+00 : f32
    %53 = vector.broadcast %cst_24 : f32 to vector<8x128xf32>
    %54 = arith.addf %53, %52 : vector<8x128xf32>
    %55 = arith.divf %53, %54 : vector<8x128xf32>
    %56 = math.tanh %50 : vector<8x128xf32>
    %57 = vector.extract_strided_slice %55 {offsets = [0, 0], sizes = [8, 32], strides = [1, 1]} : vector<8x128xf32> to vector<8x32xf32>
    %58 = vector.extract_strided_slice %55 {offsets = [0, 32], sizes = [8, 32], strides = [1, 1]} : vector<8x128xf32> to vector<8x32xf32>
    %59 = vector.extract_strided_slice %56 {offsets = [0, 64], sizes = [8, 32], strides = [1, 1]} : vector<8x128xf32> to vector<8x32xf32>
    %60 = vector.extract_strided_slice %55 {offsets = [0, 96], sizes = [8, 32], strides = [1, 1]} : vector<8x128xf32> to vector<8x32xf32>
    %61 = arith.mulf %58, %44 : vector<8x32xf32>
    %62 = arith.mulf %57, %59 : vector<8x32xf32>
    %63 = arith.addf %61, %62 : vector<8x32xf32>
    %64 = math.tanh %63 : vector<8x32xf32>
    %65 = arith.mulf %60, %64 : vector<8x32xf32>
    %c16_25 = arith.constant 16 : index
    %c0_26 = arith.constant 0 : index
    %66 = vector.load %arg13[%c16_25, %c0_26] : memref<64x32xf32, #tpu.memory_space<vmem>>, vector<8x32xf32>
    tpu.vector_store %arg13[%c16_25, %c0_26], %65 {strides = array<i32>} : memref<64x32xf32, #tpu.memory_space<vmem>>, vector<8x32xf32>,
    %c24 = arith.constant 24 : index
    %c0_27 = arith.constant 0 : index
    %67 = vector.load %arg14[%c24, %c0_27] : memref<64x128xf32, #tpu.memory_space<vmem>>, vector<8x128xf32>
    %cst_28 = arith.constant dense<0.000000e+00> : vector<8x128xf32>
    %68 = tpu.matmul %65, %2, %cst_28 {dimension_numbers = #tpu.dot_dimension_numbers<[1], [0], [0], [1], [0, 0, 1, 1], [], []>} : vector<8x32xf32>, vector<32x128xf32>, vector<8x128xf32> -> vector<8x128xf32>
    %69 = arith.addf %67, %68 : vector<8x128xf32>
    %70 = arith.negf %69 : vector<8x128xf32>
    %71 = math.exp %70 : vector<8x128xf32>
    %cst_29 = arith.constant 1.000000e+00 : f32
    %72 = vector.broadcast %cst_29 : f32 to vector<8x128xf32>
    %73 = arith.addf %72, %71 : vector<8x128xf32>
    %74 = arith.divf %72, %73 : vector<8x128xf32>
    %75 = math.tanh %69 : vector<8x128xf32>
    %76 = vector.extract_strided_slice %74 {offsets = [0, 0], sizes = [8, 32], strides = [1, 1]} : vector<8x128xf32> to vector<8x32xf32>
    %77 = vector.extract_strided_slice %74 {offsets = [0, 32], sizes = [8, 32], strides = [1, 1]} : vector<8x128xf32> to vector<8x32xf32>
    %78 = vector.extract_strided_slice %75 {offsets = [0, 64], sizes = [8, 32], strides = [1, 1]} : vector<8x128xf32> to vector<8x32xf32>
    %79 = vector.extract_strided_slice %74 {offsets = [0, 96], sizes = [8, 32], strides = [1, 1]} : vector<8x128xf32> to vector<8x32xf32>
    %80 = arith.mulf %77, %63 : vector<8x32xf32>
    %81 = arith.mulf %76, %78 : vector<8x32xf32>
    %82 = arith.addf %80, %81 : vector<8x32xf32>
    %83 = math.tanh %82 : vector<8x32xf32>
    %84 = arith.mulf %79, %83 : vector<8x32xf32>
    %c24_30 = arith.constant 24 : index
    %c0_31 = arith.constant 0 : index
    %85 = vector.load %arg13[%c24_30, %c0_31] : memref<64x32xf32, #tpu.memory_space<vmem>>, vector<8x32xf32>
    tpu.vector_store %arg13[%c24_30, %c0_31], %84 {strides = array<i32>} : memref<64x32xf32, #tpu.memory_space<vmem>>, vector<8x32xf32>,
    %c32 = arith.constant 32 : index
    %c0_32 = arith.constant 0 : index
    %86 = vector.load %arg14[%c32, %c0_32] : memref<64x128xf32, #tpu.memory_space<vmem>>, vector<8x128xf32>
    %cst_33 = arith.constant dense<0.000000e+00> : vector<8x128xf32>
    %87 = tpu.matmul %84, %2, %cst_33 {dimension_numbers = #tpu.dot_dimension_numbers<[1], [0], [0], [1], [0, 0, 1, 1], [], []>} : vector<8x32xf32>, vector<32x128xf32>, vector<8x128xf32> -> vector<8x128xf32>
    %88 = arith.addf %86, %87 : vector<8x128xf32>
    %89 = arith.negf %88 : vector<8x128xf32>
    %90 = math.exp %89 : vector<8x128xf32>
    %cst_34 = arith.constant 1.000000e+00 : f32
    %91 = vector.broadcast %cst_34 : f32 to vector<8x128xf32>
    %92 = arith.addf %91, %90 : vector<8x128xf32>
    %93 = arith.divf %91, %92 : vector<8x128xf32>
    %94 = math.tanh %88 : vector<8x128xf32>
    %95 = vector.extract_strided_slice %93 {offsets = [0, 0], sizes = [8, 32], strides = [1, 1]} : vector<8x128xf32> to vector<8x32xf32>
    %96 = vector.extract_strided_slice %93 {offsets = [0, 32], sizes = [8, 32], strides = [1, 1]} : vector<8x128xf32> to vector<8x32xf32>
    %97 = vector.extract_strided_slice %94 {offsets = [0, 64], sizes = [8, 32], strides = [1, 1]} : vector<8x128xf32> to vector<8x32xf32>
    %98 = vector.extract_strided_slice %93 {offsets = [0, 96], sizes = [8, 32], strides = [1, 1]} : vector<8x128xf32> to vector<8x32xf32>
    %99 = arith.mulf %96, %82 : vector<8x32xf32>
    %100 = arith.mulf %95, %97 : vector<8x32xf32>
    %101 = arith.addf %99, %100 : vector<8x32xf32>
    %102 = math.tanh %101 : vector<8x32xf32>
    %103 = arith.mulf %98, %102 : vector<8x32xf32>
    %c32_35 = arith.constant 32 : index
    %c0_36 = arith.constant 0 : index
    %104 = vector.load %arg13[%c32_35, %c0_36] : memref<64x32xf32, #tpu.memory_space<vmem>>, vector<8x32xf32>
    tpu.vector_store %arg13[%c32_35, %c0_36], %103 {strides = array<i32>} : memref<64x32xf32, #tpu.memory_space<vmem>>, vector<8x32xf32>,
    %c40 = arith.constant 40 : index
    %c0_37 = arith.constant 0 : index
    %105 = vector.load %arg14[%c40, %c0_37] : memref<64x128xf32, #tpu.memory_space<vmem>>, vector<8x128xf32>
    %cst_38 = arith.constant dense<0.000000e+00> : vector<8x128xf32>
    %106 = tpu.matmul %103, %2, %cst_38 {dimension_numbers = #tpu.dot_dimension_numbers<[1], [0], [0], [1], [0, 0, 1, 1], [], []>} : vector<8x32xf32>, vector<32x128xf32>, vector<8x128xf32> -> vector<8x128xf32>
    %107 = arith.addf %105, %106 : vector<8x128xf32>
    %108 = arith.negf %107 : vector<8x128xf32>
    %109 = math.exp %108 : vector<8x128xf32>
    %cst_39 = arith.constant 1.000000e+00 : f32
    %110 = vector.broadcast %cst_39 : f32 to vector<8x128xf32>
    %111 = arith.addf %110, %109 : vector<8x128xf32>
    %112 = arith.divf %110, %111 : vector<8x128xf32>
    %113 = math.tanh %107 : vector<8x128xf32>
    %114 = vector.extract_strided_slice %112 {offsets = [0, 0], sizes = [8, 32], strides = [1, 1]} : vector<8x128xf32> to vector<8x32xf32>
    %115 = vector.extract_strided_slice %112 {offsets = [0, 32], sizes = [8, 32], strides = [1, 1]} : vector<8x128xf32> to vector<8x32xf32>
    %116 = vector.extract_strided_slice %113 {offsets = [0, 64], sizes = [8, 32], strides = [1, 1]} : vector<8x128xf32> to vector<8x32xf32>
    %117 = vector.extract_strided_slice %112 {offsets = [0, 96], sizes = [8, 32], strides = [1, 1]} : vector<8x128xf32> to vector<8x32xf32>
    %118 = arith.mulf %115, %101 : vector<8x32xf32>
    %119 = arith.mulf %114, %116 : vector<8x32xf32>
    %120 = arith.addf %118, %119 : vector<8x32xf32>
    %121 = math.tanh %120 : vector<8x32xf32>
    %122 = arith.mulf %117, %121 : vector<8x32xf32>
    %c40_40 = arith.constant 40 : index
    %c0_41 = arith.constant 0 : index
    %123 = vector.load %arg13[%c40_40, %c0_41] : memref<64x32xf32, #tpu.memory_space<vmem>>, vector<8x32xf32>
    tpu.vector_store %arg13[%c40_40, %c0_41], %122 {strides = array<i32>} : memref<64x32xf32, #tpu.memory_space<vmem>>, vector<8x32xf32>,
    %c48 = arith.constant 48 : index
    %c0_42 = arith.constant 0 : index
    %124 = vector.load %arg14[%c48, %c0_42] : memref<64x128xf32, #tpu.memory_space<vmem>>, vector<8x128xf32>
    %cst_43 = arith.constant dense<0.000000e+00> : vector<8x128xf32>
    %125 = tpu.matmul %122, %2, %cst_43 {dimension_numbers = #tpu.dot_dimension_numbers<[1], [0], [0], [1], [0, 0, 1, 1], [], []>} : vector<8x32xf32>, vector<32x128xf32>, vector<8x128xf32> -> vector<8x128xf32>
    %126 = arith.addf %124, %125 : vector<8x128xf32>
    %127 = arith.negf %126 : vector<8x128xf32>
    %128 = math.exp %127 : vector<8x128xf32>
    %cst_44 = arith.constant 1.000000e+00 : f32
    %129 = vector.broadcast %cst_44 : f32 to vector<8x128xf32>
    %130 = arith.addf %129, %128 : vector<8x128xf32>
    %131 = arith.divf %129, %130 : vector<8x128xf32>
    %132 = math.tanh %126 : vector<8x128xf32>
    %133 = vector.extract_strided_slice %131 {offsets = [0, 0], sizes = [8, 32], strides = [1, 1]} : vector<8x128xf32> to vector<8x32xf32>
    %134 = vector.extract_strided_slice %131 {offsets = [0, 32], sizes = [8, 32], strides = [1, 1]} : vector<8x128xf32> to vector<8x32xf32>
    %135 = vector.extract_strided_slice %132 {offsets = [0, 64], sizes = [8, 32], strides = [1, 1]} : vector<8x128xf32> to vector<8x32xf32>
    %136 = vector.extract_strided_slice %131 {offsets = [0, 96], sizes = [8, 32], strides = [1, 1]} : vector<8x128xf32> to vector<8x32xf32>
    %137 = arith.mulf %134, %120 : vector<8x32xf32>
    %138 = arith.mulf %133, %135 : vector<8x32xf32>
    %139 = arith.addf %137, %138 : vector<8x32xf32>
    %140 = math.tanh %139 : vector<8x32xf32>
    %141 = arith.mulf %136, %140 : vector<8x32xf32>
    %c48_45 = arith.constant 48 : index
    %c0_46 = arith.constant 0 : index
    %142 = vector.load %arg13[%c48_45, %c0_46] : memref<64x32xf32, #tpu.memory_space<vmem>>, vector<8x32xf32>
    tpu.vector_store %arg13[%c48_45, %c0_46], %141 {strides = array<i32>} : memref<64x32xf32, #tpu.memory_space<vmem>>, vector<8x32xf32>,
    %c56 = arith.constant 56 : index
    %c0_47 = arith.constant 0 : index
    %143 = vector.load %arg14[%c56, %c0_47] : memref<64x128xf32, #tpu.memory_space<vmem>>, vector<8x128xf32>
    %cst_48 = arith.constant dense<0.000000e+00> : vector<8x128xf32>
    %144 = tpu.matmul %141, %2, %cst_48 {dimension_numbers = #tpu.dot_dimension_numbers<[1], [0], [0], [1], [0, 0, 1, 1], [], []>} : vector<8x32xf32>, vector<32x128xf32>, vector<8x128xf32> -> vector<8x128xf32>
    %145 = arith.addf %143, %144 : vector<8x128xf32>
    %146 = arith.negf %145 : vector<8x128xf32>
    %147 = math.exp %146 : vector<8x128xf32>
    %cst_49 = arith.constant 1.000000e+00 : f32
    %148 = vector.broadcast %cst_49 : f32 to vector<8x128xf32>
    %149 = arith.addf %148, %147 : vector<8x128xf32>
    %150 = arith.divf %148, %149 : vector<8x128xf32>
    %151 = math.tanh %145 : vector<8x128xf32>
    %152 = vector.extract_strided_slice %150 {offsets = [0, 0], sizes = [8, 32], strides = [1, 1]} : vector<8x128xf32> to vector<8x32xf32>
    %153 = vector.extract_strided_slice %150 {offsets = [0, 32], sizes = [8, 32], strides = [1, 1]} : vector<8x128xf32> to vector<8x32xf32>
    %154 = vector.extract_strided_slice %151 {offsets = [0, 64], sizes = [8, 32], strides = [1, 1]} : vector<8x128xf32> to vector<8x32xf32>
    %155 = vector.extract_strided_slice %150 {offsets = [0, 96], sizes = [8, 32], strides = [1, 1]} : vector<8x128xf32> to vector<8x32xf32>
    %156 = arith.mulf %153, %139 : vector<8x32xf32>
    %157 = arith.mulf %152, %154 : vector<8x32xf32>
    %158 = arith.addf %156, %157 : vector<8x32xf32>
    %159 = math.tanh %158 : vector<8x32xf32>
    %160 = arith.mulf %155, %159 : vector<8x32xf32>
    %c56_50 = arith.constant 56 : index
    %c0_51 = arith.constant 0 : index
    %161 = vector.load %arg13[%c56_50, %c0_51] : memref<64x32xf32, #tpu.memory_space<vmem>>, vector<8x32xf32>
    tpu.vector_store %arg13[%c56_50, %c0_51], %160 {strides = array<i32>} : memref<64x32xf32, #tpu.memory_space<vmem>>, vector<8x32xf32>,
    %c0_52 = arith.constant 0 : index
    %c0_53 = arith.constant 0 : index
    %162 = vector.load %arg13[%c0_52, %c0_53] : memref<64x32xf32, #tpu.memory_space<vmem>>, vector<64x32xf32>
    %c0_54 = arith.constant 0 : index
    %c0_55 = arith.constant 0 : index
    %c0_56 = arith.constant 0 : index
    %163 = vector.load %arg4[%c0_54, %c0_55, %c0_56] : memref<3x32x128xf32, #tpu.memory_space<vmem>>, vector<1x32x128xf32>
    %164 = vector.shape_cast %163 : vector<1x32x128xf32> to vector<32x128xf32>
    %c0_57 = arith.constant 0 : index
    %c0_58 = arith.constant 0 : index
    %c0_59 = arith.constant 0 : index
    %165 = vector.load %arg5[%c0_57, %c0_58, %c0_59] : memref<3x32x128xf32, #tpu.memory_space<vmem>>, vector<1x32x128xf32>
    %166 = vector.shape_cast %165 : vector<1x32x128xf32> to vector<32x128xf32>
    %c0_60 = arith.constant 0 : index
    %c0_61 = arith.constant 0 : index
    %c0_62 = arith.constant 0 : index
    %167 = vector.load %arg6[%c0_60, %c0_61, %c0_62] : memref<3x1x128xf32, #tpu.memory_space<vmem>>, vector<1x1x128xf32>
    %168 = vector.shape_cast %167 : vector<1x1x128xf32> to vector<1x128xf32>
    %cst_63 = arith.constant dense<0.000000e+00> : vector<64x128xf32>
    %169 = tpu.matmul %162, %164, %cst_63 {dimension_numbers = #tpu.dot_dimension_numbers<[1], [0], [0], [1], [0, 0, 1, 1], [], []>} : vector<64x32xf32>, vector<32x128xf32>, vector<64x128xf32> -> vector<64x128xf32>
    %170 = vector.broadcast %168 : vector<1x128xf32> to vector<64x128xf32>
    %171 = arith.addf %169, %170 : vector<64x128xf32>
    %c0_64 = arith.constant 0 : index
    %c0_65 = arith.constant 0 : index
    %172 = vector.load %arg14[%c0_64, %c0_65] : memref<64x128xf32, #tpu.memory_space<vmem>>, vector<64x128xf32>
    tpu.vector_store %arg14[%c0_64, %c0_65], %171 {strides = array<i32>} : memref<64x128xf32, #tpu.memory_space<vmem>>, vector<64x128xf32>,
    %cst_66 = arith.constant 0.000000e+00 : f32
    %173 = vector.broadcast %cst_66 : f32 to vector<8x32xf32>
    %cst_67 = arith.constant 0.000000e+00 : f32
    %174 = vector.broadcast %cst_67 : f32 to vector<8x32xf32>
    %c0_68 = arith.constant 0 : index
    %c0_69 = arith.constant 0 : index
    %175 = vector.load %arg14[%c0_68, %c0_69] : memref<64x128xf32, #tpu.memory_space<vmem>>, vector<8x128xf32>
    %cst_70 = arith.constant dense<0.000000e+00> : vector<8x128xf32>
    %176 = tpu.matmul %173, %166, %cst_70 {dimension_numbers = #tpu.dot_dimension_numbers<[1], [0], [0], [1], [0, 0, 1, 1], [], []>} : vector<8x32xf32>, vector<32x128xf32>, vector<8x128xf32> -> vector<8x128xf32>
    %177 = arith.addf %175, %176 : vector<8x128xf32>
    %178 = arith.negf %177 : vector<8x128xf32>
    %179 = math.exp %178 : vector<8x128xf32>
    %cst_71 = arith.constant 1.000000e+00 : f32
    %180 = vector.broadcast %cst_71 : f32 to vector<8x128xf32>
    %181 = arith.addf %180, %179 : vector<8x128xf32>
    %182 = arith.divf %180, %181 : vector<8x128xf32>
    %183 = math.tanh %177 : vector<8x128xf32>
    %184 = vector.extract_strided_slice %182 {offsets = [0, 0], sizes = [8, 32], strides = [1, 1]} : vector<8x128xf32> to vector<8x32xf32>
    %185 = vector.extract_strided_slice %182 {offsets = [0, 32], sizes = [8, 32], strides = [1, 1]} : vector<8x128xf32> to vector<8x32xf32>
    %186 = vector.extract_strided_slice %183 {offsets = [0, 64], sizes = [8, 32], strides = [1, 1]} : vector<8x128xf32> to vector<8x32xf32>
    %187 = vector.extract_strided_slice %182 {offsets = [0, 96], sizes = [8, 32], strides = [1, 1]} : vector<8x128xf32> to vector<8x32xf32>
    %188 = arith.mulf %185, %174 : vector<8x32xf32>
    %189 = arith.mulf %184, %186 : vector<8x32xf32>
    %190 = arith.addf %188, %189 : vector<8x32xf32>
    %191 = math.tanh %190 : vector<8x32xf32>
    %192 = arith.mulf %187, %191 : vector<8x32xf32>
    %c0_72 = arith.constant 0 : index
    %c0_73 = arith.constant 0 : index
    %193 = vector.load %arg13[%c0_72, %c0_73] : memref<64x32xf32, #tpu.memory_space<vmem>>, vector<8x32xf32>
    tpu.vector_store %arg13[%c0_72, %c0_73], %192 {strides = array<i32>} : memref<64x32xf32, #tpu.memory_space<vmem>>, vector<8x32xf32>,
    %c8_74 = arith.constant 8 : index
    %c0_75 = arith.constant 0 : index
    %194 = vector.load %arg14[%c8_74, %c0_75] : memref<64x128xf32, #tpu.memory_space<vmem>>, vector<8x128xf32>
    %cst_76 = arith.constant dense<0.000000e+00> : vector<8x128xf32>
    %195 = tpu.matmul %192, %166, %cst_76 {dimension_numbers = #tpu.dot_dimension_numbers<[1], [0], [0], [1], [0, 0, 1, 1], [], []>} : vector<8x32xf32>, vector<32x128xf32>, vector<8x128xf32> -> vector<8x128xf32>
    %196 = arith.addf %194, %195 : vector<8x128xf32>
    %197 = arith.negf %196 : vector<8x128xf32>
    %198 = math.exp %197 : vector<8x128xf32>
    %cst_77 = arith.constant 1.000000e+00 : f32
    %199 = vector.broadcast %cst_77 : f32 to vector<8x128xf32>
    %200 = arith.addf %199, %198 : vector<8x128xf32>
    %201 = arith.divf %199, %200 : vector<8x128xf32>
    %202 = math.tanh %196 : vector<8x128xf32>
    %203 = vector.extract_strided_slice %201 {offsets = [0, 0], sizes = [8, 32], strides = [1, 1]} : vector<8x128xf32> to vector<8x32xf32>
    %204 = vector.extract_strided_slice %201 {offsets = [0, 32], sizes = [8, 32], strides = [1, 1]} : vector<8x128xf32> to vector<8x32xf32>
    %205 = vector.extract_strided_slice %202 {offsets = [0, 64], sizes = [8, 32], strides = [1, 1]} : vector<8x128xf32> to vector<8x32xf32>
    %206 = vector.extract_strided_slice %201 {offsets = [0, 96], sizes = [8, 32], strides = [1, 1]} : vector<8x128xf32> to vector<8x32xf32>
    %207 = arith.mulf %204, %190 : vector<8x32xf32>
    %208 = arith.mulf %203, %205 : vector<8x32xf32>
    %209 = arith.addf %207, %208 : vector<8x32xf32>
    %210 = math.tanh %209 : vector<8x32xf32>
    %211 = arith.mulf %206, %210 : vector<8x32xf32>
    %c8_78 = arith.constant 8 : index
    %c0_79 = arith.constant 0 : index
    %212 = vector.load %arg13[%c8_78, %c0_79] : memref<64x32xf32, #tpu.memory_space<vmem>>, vector<8x32xf32>
    tpu.vector_store %arg13[%c8_78, %c0_79], %211 {strides = array<i32>} : memref<64x32xf32, #tpu.memory_space<vmem>>, vector<8x32xf32>,
    %c16_80 = arith.constant 16 : index
    %c0_81 = arith.constant 0 : index
    %213 = vector.load %arg14[%c16_80, %c0_81] : memref<64x128xf32, #tpu.memory_space<vmem>>, vector<8x128xf32>
    %cst_82 = arith.constant dense<0.000000e+00> : vector<8x128xf32>
    %214 = tpu.matmul %211, %166, %cst_82 {dimension_numbers = #tpu.dot_dimension_numbers<[1], [0], [0], [1], [0, 0, 1, 1], [], []>} : vector<8x32xf32>, vector<32x128xf32>, vector<8x128xf32> -> vector<8x128xf32>
    %215 = arith.addf %213, %214 : vector<8x128xf32>
    %216 = arith.negf %215 : vector<8x128xf32>
    %217 = math.exp %216 : vector<8x128xf32>
    %cst_83 = arith.constant 1.000000e+00 : f32
    %218 = vector.broadcast %cst_83 : f32 to vector<8x128xf32>
    %219 = arith.addf %218, %217 : vector<8x128xf32>
    %220 = arith.divf %218, %219 : vector<8x128xf32>
    %221 = math.tanh %215 : vector<8x128xf32>
    %222 = vector.extract_strided_slice %220 {offsets = [0, 0], sizes = [8, 32], strides = [1, 1]} : vector<8x128xf32> to vector<8x32xf32>
    %223 = vector.extract_strided_slice %220 {offsets = [0, 32], sizes = [8, 32], strides = [1, 1]} : vector<8x128xf32> to vector<8x32xf32>
    %224 = vector.extract_strided_slice %221 {offsets = [0, 64], sizes = [8, 32], strides = [1, 1]} : vector<8x128xf32> to vector<8x32xf32>
    %225 = vector.extract_strided_slice %220 {offsets = [0, 96], sizes = [8, 32], strides = [1, 1]} : vector<8x128xf32> to vector<8x32xf32>
    %226 = arith.mulf %223, %209 : vector<8x32xf32>
    %227 = arith.mulf %222, %224 : vector<8x32xf32>
    %228 = arith.addf %226, %227 : vector<8x32xf32>
    %229 = math.tanh %228 : vector<8x32xf32>
    %230 = arith.mulf %225, %229 : vector<8x32xf32>
    %c16_84 = arith.constant 16 : index
    %c0_85 = arith.constant 0 : index
    %231 = vector.load %arg13[%c16_84, %c0_85] : memref<64x32xf32, #tpu.memory_space<vmem>>, vector<8x32xf32>
    tpu.vector_store %arg13[%c16_84, %c0_85], %230 {strides = array<i32>} : memref<64x32xf32, #tpu.memory_space<vmem>>, vector<8x32xf32>,
    %c24_86 = arith.constant 24 : index
    %c0_87 = arith.constant 0 : index
    %232 = vector.load %arg14[%c24_86, %c0_87] : memref<64x128xf32, #tpu.memory_space<vmem>>, vector<8x128xf32>
    %cst_88 = arith.constant dense<0.000000e+00> : vector<8x128xf32>
    %233 = tpu.matmul %230, %166, %cst_88 {dimension_numbers = #tpu.dot_dimension_numbers<[1], [0], [0], [1], [0, 0, 1, 1], [], []>} : vector<8x32xf32>, vector<32x128xf32>, vector<8x128xf32> -> vector<8x128xf32>
    %234 = arith.addf %232, %233 : vector<8x128xf32>
    %235 = arith.negf %234 : vector<8x128xf32>
    %236 = math.exp %235 : vector<8x128xf32>
    %cst_89 = arith.constant 1.000000e+00 : f32
    %237 = vector.broadcast %cst_89 : f32 to vector<8x128xf32>
    %238 = arith.addf %237, %236 : vector<8x128xf32>
    %239 = arith.divf %237, %238 : vector<8x128xf32>
    %240 = math.tanh %234 : vector<8x128xf32>
    %241 = vector.extract_strided_slice %239 {offsets = [0, 0], sizes = [8, 32], strides = [1, 1]} : vector<8x128xf32> to vector<8x32xf32>
    %242 = vector.extract_strided_slice %239 {offsets = [0, 32], sizes = [8, 32], strides = [1, 1]} : vector<8x128xf32> to vector<8x32xf32>
    %243 = vector.extract_strided_slice %240 {offsets = [0, 64], sizes = [8, 32], strides = [1, 1]} : vector<8x128xf32> to vector<8x32xf32>
    %244 = vector.extract_strided_slice %239 {offsets = [0, 96], sizes = [8, 32], strides = [1, 1]} : vector<8x128xf32> to vector<8x32xf32>
    %245 = arith.mulf %242, %228 : vector<8x32xf32>
    %246 = arith.mulf %241, %243 : vector<8x32xf32>
    %247 = arith.addf %245, %246 : vector<8x32xf32>
    %248 = math.tanh %247 : vector<8x32xf32>
    %249 = arith.mulf %244, %248 : vector<8x32xf32>
    %c24_90 = arith.constant 24 : index
    %c0_91 = arith.constant 0 : index
    %250 = vector.load %arg13[%c24_90, %c0_91] : memref<64x32xf32, #tpu.memory_space<vmem>>, vector<8x32xf32>
    tpu.vector_store %arg13[%c24_90, %c0_91], %249 {strides = array<i32>} : memref<64x32xf32, #tpu.memory_space<vmem>>, vector<8x32xf32>,
    %c32_92 = arith.constant 32 : index
    %c0_93 = arith.constant 0 : index
    %251 = vector.load %arg14[%c32_92, %c0_93] : memref<64x128xf32, #tpu.memory_space<vmem>>, vector<8x128xf32>
    %cst_94 = arith.constant dense<0.000000e+00> : vector<8x128xf32>
    %252 = tpu.matmul %249, %166, %cst_94 {dimension_numbers = #tpu.dot_dimension_numbers<[1], [0], [0], [1], [0, 0, 1, 1], [], []>} : vector<8x32xf32>, vector<32x128xf32>, vector<8x128xf32> -> vector<8x128xf32>
    %253 = arith.addf %251, %252 : vector<8x128xf32>
    %254 = arith.negf %253 : vector<8x128xf32>
    %255 = math.exp %254 : vector<8x128xf32>
    %cst_95 = arith.constant 1.000000e+00 : f32
    %256 = vector.broadcast %cst_95 : f32 to vector<8x128xf32>
    %257 = arith.addf %256, %255 : vector<8x128xf32>
    %258 = arith.divf %256, %257 : vector<8x128xf32>
    %259 = math.tanh %253 : vector<8x128xf32>
    %260 = vector.extract_strided_slice %258 {offsets = [0, 0], sizes = [8, 32], strides = [1, 1]} : vector<8x128xf32> to vector<8x32xf32>
    %261 = vector.extract_strided_slice %258 {offsets = [0, 32], sizes = [8, 32], strides = [1, 1]} : vector<8x128xf32> to vector<8x32xf32>
    %262 = vector.extract_strided_slice %259 {offsets = [0, 64], sizes = [8, 32], strides = [1, 1]} : vector<8x128xf32> to vector<8x32xf32>
    %263 = vector.extract_strided_slice %258 {offsets = [0, 96], sizes = [8, 32], strides = [1, 1]} : vector<8x128xf32> to vector<8x32xf32>
    %264 = arith.mulf %261, %247 : vector<8x32xf32>
    %265 = arith.mulf %260, %262 : vector<8x32xf32>
    %266 = arith.addf %264, %265 : vector<8x32xf32>
    %267 = math.tanh %266 : vector<8x32xf32>
    %268 = arith.mulf %263, %267 : vector<8x32xf32>
    %c32_96 = arith.constant 32 : index
    %c0_97 = arith.constant 0 : index
    %269 = vector.load %arg13[%c32_96, %c0_97] : memref<64x32xf32, #tpu.memory_space<vmem>>, vector<8x32xf32>
    tpu.vector_store %arg13[%c32_96, %c0_97], %268 {strides = array<i32>} : memref<64x32xf32, #tpu.memory_space<vmem>>, vector<8x32xf32>,
    %c40_98 = arith.constant 40 : index
    %c0_99 = arith.constant 0 : index
    %270 = vector.load %arg14[%c40_98, %c0_99] : memref<64x128xf32, #tpu.memory_space<vmem>>, vector<8x128xf32>
    %cst_100 = arith.constant dense<0.000000e+00> : vector<8x128xf32>
    %271 = tpu.matmul %268, %166, %cst_100 {dimension_numbers = #tpu.dot_dimension_numbers<[1], [0], [0], [1], [0, 0, 1, 1], [], []>} : vector<8x32xf32>, vector<32x128xf32>, vector<8x128xf32> -> vector<8x128xf32>
    %272 = arith.addf %270, %271 : vector<8x128xf32>
    %273 = arith.negf %272 : vector<8x128xf32>
    %274 = math.exp %273 : vector<8x128xf32>
    %cst_101 = arith.constant 1.000000e+00 : f32
    %275 = vector.broadcast %cst_101 : f32 to vector<8x128xf32>
    %276 = arith.addf %275, %274 : vector<8x128xf32>
    %277 = arith.divf %275, %276 : vector<8x128xf32>
    %278 = math.tanh %272 : vector<8x128xf32>
    %279 = vector.extract_strided_slice %277 {offsets = [0, 0], sizes = [8, 32], strides = [1, 1]} : vector<8x128xf32> to vector<8x32xf32>
    %280 = vector.extract_strided_slice %277 {offsets = [0, 32], sizes = [8, 32], strides = [1, 1]} : vector<8x128xf32> to vector<8x32xf32>
    %281 = vector.extract_strided_slice %278 {offsets = [0, 64], sizes = [8, 32], strides = [1, 1]} : vector<8x128xf32> to vector<8x32xf32>
    %282 = vector.extract_strided_slice %277 {offsets = [0, 96], sizes = [8, 32], strides = [1, 1]} : vector<8x128xf32> to vector<8x32xf32>
    %283 = arith.mulf %280, %266 : vector<8x32xf32>
    %284 = arith.mulf %279, %281 : vector<8x32xf32>
    %285 = arith.addf %283, %284 : vector<8x32xf32>
    %286 = math.tanh %285 : vector<8x32xf32>
    %287 = arith.mulf %282, %286 : vector<8x32xf32>
    %c40_102 = arith.constant 40 : index
    %c0_103 = arith.constant 0 : index
    %288 = vector.load %arg13[%c40_102, %c0_103] : memref<64x32xf32, #tpu.memory_space<vmem>>, vector<8x32xf32>
    tpu.vector_store %arg13[%c40_102, %c0_103], %287 {strides = array<i32>} : memref<64x32xf32, #tpu.memory_space<vmem>>, vector<8x32xf32>,
    %c48_104 = arith.constant 48 : index
    %c0_105 = arith.constant 0 : index
    %289 = vector.load %arg14[%c48_104, %c0_105] : memref<64x128xf32, #tpu.memory_space<vmem>>, vector<8x128xf32>
    %cst_106 = arith.constant dense<0.000000e+00> : vector<8x128xf32>
    %290 = tpu.matmul %287, %166, %cst_106 {dimension_numbers = #tpu.dot_dimension_numbers<[1], [0], [0], [1], [0, 0, 1, 1], [], []>} : vector<8x32xf32>, vector<32x128xf32>, vector<8x128xf32> -> vector<8x128xf32>
    %291 = arith.addf %289, %290 : vector<8x128xf32>
    %292 = arith.negf %291 : vector<8x128xf32>
    %293 = math.exp %292 : vector<8x128xf32>
    %cst_107 = arith.constant 1.000000e+00 : f32
    %294 = vector.broadcast %cst_107 : f32 to vector<8x128xf32>
    %295 = arith.addf %294, %293 : vector<8x128xf32>
    %296 = arith.divf %294, %295 : vector<8x128xf32>
    %297 = math.tanh %291 : vector<8x128xf32>
    %298 = vector.extract_strided_slice %296 {offsets = [0, 0], sizes = [8, 32], strides = [1, 1]} : vector<8x128xf32> to vector<8x32xf32>
    %299 = vector.extract_strided_slice %296 {offsets = [0, 32], sizes = [8, 32], strides = [1, 1]} : vector<8x128xf32> to vector<8x32xf32>
    %300 = vector.extract_strided_slice %297 {offsets = [0, 64], sizes = [8, 32], strides = [1, 1]} : vector<8x128xf32> to vector<8x32xf32>
    %301 = vector.extract_strided_slice %296 {offsets = [0, 96], sizes = [8, 32], strides = [1, 1]} : vector<8x128xf32> to vector<8x32xf32>
    %302 = arith.mulf %299, %285 : vector<8x32xf32>
    %303 = arith.mulf %298, %300 : vector<8x32xf32>
    %304 = arith.addf %302, %303 : vector<8x32xf32>
    %305 = math.tanh %304 : vector<8x32xf32>
    %306 = arith.mulf %301, %305 : vector<8x32xf32>
    %c48_108 = arith.constant 48 : index
    %c0_109 = arith.constant 0 : index
    %307 = vector.load %arg13[%c48_108, %c0_109] : memref<64x32xf32, #tpu.memory_space<vmem>>, vector<8x32xf32>
    tpu.vector_store %arg13[%c48_108, %c0_109], %306 {strides = array<i32>} : memref<64x32xf32, #tpu.memory_space<vmem>>, vector<8x32xf32>,
    %c56_110 = arith.constant 56 : index
    %c0_111 = arith.constant 0 : index
    %308 = vector.load %arg14[%c56_110, %c0_111] : memref<64x128xf32, #tpu.memory_space<vmem>>, vector<8x128xf32>
    %cst_112 = arith.constant dense<0.000000e+00> : vector<8x128xf32>
    %309 = tpu.matmul %306, %166, %cst_112 {dimension_numbers = #tpu.dot_dimension_numbers<[1], [0], [0], [1], [0, 0, 1, 1], [], []>} : vector<8x32xf32>, vector<32x128xf32>, vector<8x128xf32> -> vector<8x128xf32>
    %310 = arith.addf %308, %309 : vector<8x128xf32>
    %311 = arith.negf %310 : vector<8x128xf32>
    %312 = math.exp %311 : vector<8x128xf32>
    %cst_113 = arith.constant 1.000000e+00 : f32
    %313 = vector.broadcast %cst_113 : f32 to vector<8x128xf32>
    %314 = arith.addf %313, %312 : vector<8x128xf32>
    %315 = arith.divf %313, %314 : vector<8x128xf32>
    %316 = math.tanh %310 : vector<8x128xf32>
    %317 = vector.extract_strided_slice %315 {offsets = [0, 0], sizes = [8, 32], strides = [1, 1]} : vector<8x128xf32> to vector<8x32xf32>
    %318 = vector.extract_strided_slice %315 {offsets = [0, 32], sizes = [8, 32], strides = [1, 1]} : vector<8x128xf32> to vector<8x32xf32>
    %319 = vector.extract_strided_slice %316 {offsets = [0, 64], sizes = [8, 32], strides = [1, 1]} : vector<8x128xf32> to vector<8x32xf32>
    %320 = vector.extract_strided_slice %315 {offsets = [0, 96], sizes = [8, 32], strides = [1, 1]} : vector<8x128xf32> to vector<8x32xf32>
    %321 = arith.mulf %318, %304 : vector<8x32xf32>
    %322 = arith.mulf %317, %319 : vector<8x32xf32>
    %323 = arith.addf %321, %322 : vector<8x32xf32>
    %324 = math.tanh %323 : vector<8x32xf32>
    %325 = arith.mulf %320, %324 : vector<8x32xf32>
    %c56_114 = arith.constant 56 : index
    %c0_115 = arith.constant 0 : index
    %326 = vector.load %arg13[%c56_114, %c0_115] : memref<64x32xf32, #tpu.memory_space<vmem>>, vector<8x32xf32>
    tpu.vector_store %arg13[%c56_114, %c0_115], %325 {strides = array<i32>} : memref<64x32xf32, #tpu.memory_space<vmem>>, vector<8x32xf32>,
    %c0_116 = arith.constant 0 : index
    %c0_117 = arith.constant 0 : index
    %327 = vector.load %arg13[%c0_116, %c0_117] : memref<64x32xf32, #tpu.memory_space<vmem>>, vector<64x32xf32>
    %c1 = arith.constant 1 : index
    %c0_118 = arith.constant 0 : index
    %c0_119 = arith.constant 0 : index
    %328 = vector.load %arg4[%c1, %c0_118, %c0_119] : memref<3x32x128xf32, #tpu.memory_space<vmem>>, vector<1x32x128xf32>
    %329 = vector.shape_cast %328 : vector<1x32x128xf32> to vector<32x128xf32>
    %c1_120 = arith.constant 1 : index
    %c0_121 = arith.constant 0 : index
    %c0_122 = arith.constant 0 : index
    %330 = vector.load %arg5[%c1_120, %c0_121, %c0_122] : memref<3x32x128xf32, #tpu.memory_space<vmem>>, vector<1x32x128xf32>
    %331 = vector.shape_cast %330 : vector<1x32x128xf32> to vector<32x128xf32>
    %c1_123 = arith.constant 1 : index
    %c0_124 = arith.constant 0 : index
    %c0_125 = arith.constant 0 : index
    %332 = vector.load %arg6[%c1_123, %c0_124, %c0_125] : memref<3x1x128xf32, #tpu.memory_space<vmem>>, vector<1x1x128xf32>
    %333 = vector.shape_cast %332 : vector<1x1x128xf32> to vector<1x128xf32>
    %cst_126 = arith.constant dense<0.000000e+00> : vector<64x128xf32>
    %334 = tpu.matmul %327, %329, %cst_126 {dimension_numbers = #tpu.dot_dimension_numbers<[1], [0], [0], [1], [0, 0, 1, 1], [], []>} : vector<64x32xf32>, vector<32x128xf32>, vector<64x128xf32> -> vector<64x128xf32>
    %335 = vector.broadcast %333 : vector<1x128xf32> to vector<64x128xf32>
    %336 = arith.addf %334, %335 : vector<64x128xf32>
    %c0_127 = arith.constant 0 : index
    %c0_128 = arith.constant 0 : index
    %337 = vector.load %arg14[%c0_127, %c0_128] : memref<64x128xf32, #tpu.memory_space<vmem>>, vector<64x128xf32>
    tpu.vector_store %arg14[%c0_127, %c0_128], %336 {strides = array<i32>} : memref<64x128xf32, #tpu.memory_space<vmem>>, vector<64x128xf32>,
    %cst_129 = arith.constant 0.000000e+00 : f32
    %338 = vector.broadcast %cst_129 : f32 to vector<8x32xf32>
    %cst_130 = arith.constant 0.000000e+00 : f32
    %339 = vector.broadcast %cst_130 : f32 to vector<8x32xf32>
    %c0_131 = arith.constant 0 : index
    %c0_132 = arith.constant 0 : index
    %340 = vector.load %arg14[%c0_131, %c0_132] : memref<64x128xf32, #tpu.memory_space<vmem>>, vector<8x128xf32>
    %cst_133 = arith.constant dense<0.000000e+00> : vector<8x128xf32>
    %341 = tpu.matmul %338, %331, %cst_133 {dimension_numbers = #tpu.dot_dimension_numbers<[1], [0], [0], [1], [0, 0, 1, 1], [], []>} : vector<8x32xf32>, vector<32x128xf32>, vector<8x128xf32> -> vector<8x128xf32>
    %342 = arith.addf %340, %341 : vector<8x128xf32>
    %343 = arith.negf %342 : vector<8x128xf32>
    %344 = math.exp %343 : vector<8x128xf32>
    %cst_134 = arith.constant 1.000000e+00 : f32
    %345 = vector.broadcast %cst_134 : f32 to vector<8x128xf32>
    %346 = arith.addf %345, %344 : vector<8x128xf32>
    %347 = arith.divf %345, %346 : vector<8x128xf32>
    %348 = math.tanh %342 : vector<8x128xf32>
    %349 = vector.extract_strided_slice %347 {offsets = [0, 0], sizes = [8, 32], strides = [1, 1]} : vector<8x128xf32> to vector<8x32xf32>
    %350 = vector.extract_strided_slice %347 {offsets = [0, 32], sizes = [8, 32], strides = [1, 1]} : vector<8x128xf32> to vector<8x32xf32>
    %351 = vector.extract_strided_slice %348 {offsets = [0, 64], sizes = [8, 32], strides = [1, 1]} : vector<8x128xf32> to vector<8x32xf32>
    %352 = vector.extract_strided_slice %347 {offsets = [0, 96], sizes = [8, 32], strides = [1, 1]} : vector<8x128xf32> to vector<8x32xf32>
    %353 = arith.mulf %350, %339 : vector<8x32xf32>
    %354 = arith.mulf %349, %351 : vector<8x32xf32>
    %355 = arith.addf %353, %354 : vector<8x32xf32>
    %356 = math.tanh %355 : vector<8x32xf32>
    %357 = arith.mulf %352, %356 : vector<8x32xf32>
    %c0_135 = arith.constant 0 : index
    %c0_136 = arith.constant 0 : index
    %358 = vector.load %arg13[%c0_135, %c0_136] : memref<64x32xf32, #tpu.memory_space<vmem>>, vector<8x32xf32>
    tpu.vector_store %arg13[%c0_135, %c0_136], %357 {strides = array<i32>} : memref<64x32xf32, #tpu.memory_space<vmem>>, vector<8x32xf32>,
    %c8_137 = arith.constant 8 : index
    %c0_138 = arith.constant 0 : index
    %359 = vector.load %arg14[%c8_137, %c0_138] : memref<64x128xf32, #tpu.memory_space<vmem>>, vector<8x128xf32>
    %cst_139 = arith.constant dense<0.000000e+00> : vector<8x128xf32>
    %360 = tpu.matmul %357, %331, %cst_139 {dimension_numbers = #tpu.dot_dimension_numbers<[1], [0], [0], [1], [0, 0, 1, 1], [], []>} : vector<8x32xf32>, vector<32x128xf32>, vector<8x128xf32> -> vector<8x128xf32>
    %361 = arith.addf %359, %360 : vector<8x128xf32>
    %362 = arith.negf %361 : vector<8x128xf32>
    %363 = math.exp %362 : vector<8x128xf32>
    %cst_140 = arith.constant 1.000000e+00 : f32
    %364 = vector.broadcast %cst_140 : f32 to vector<8x128xf32>
    %365 = arith.addf %364, %363 : vector<8x128xf32>
    %366 = arith.divf %364, %365 : vector<8x128xf32>
    %367 = math.tanh %361 : vector<8x128xf32>
    %368 = vector.extract_strided_slice %366 {offsets = [0, 0], sizes = [8, 32], strides = [1, 1]} : vector<8x128xf32> to vector<8x32xf32>
    %369 = vector.extract_strided_slice %366 {offsets = [0, 32], sizes = [8, 32], strides = [1, 1]} : vector<8x128xf32> to vector<8x32xf32>
    %370 = vector.extract_strided_slice %367 {offsets = [0, 64], sizes = [8, 32], strides = [1, 1]} : vector<8x128xf32> to vector<8x32xf32>
    %371 = vector.extract_strided_slice %366 {offsets = [0, 96], sizes = [8, 32], strides = [1, 1]} : vector<8x128xf32> to vector<8x32xf32>
    %372 = arith.mulf %369, %355 : vector<8x32xf32>
    %373 = arith.mulf %368, %370 : vector<8x32xf32>
    %374 = arith.addf %372, %373 : vector<8x32xf32>
    %375 = math.tanh %374 : vector<8x32xf32>
    %376 = arith.mulf %371, %375 : vector<8x32xf32>
    %c8_141 = arith.constant 8 : index
    %c0_142 = arith.constant 0 : index
    %377 = vector.load %arg13[%c8_141, %c0_142] : memref<64x32xf32, #tpu.memory_space<vmem>>, vector<8x32xf32>
    tpu.vector_store %arg13[%c8_141, %c0_142], %376 {strides = array<i32>} : memref<64x32xf32, #tpu.memory_space<vmem>>, vector<8x32xf32>,
    %c16_143 = arith.constant 16 : index
    %c0_144 = arith.constant 0 : index
    %378 = vector.load %arg14[%c16_143, %c0_144] : memref<64x128xf32, #tpu.memory_space<vmem>>, vector<8x128xf32>
    %cst_145 = arith.constant dense<0.000000e+00> : vector<8x128xf32>
    %379 = tpu.matmul %376, %331, %cst_145 {dimension_numbers = #tpu.dot_dimension_numbers<[1], [0], [0], [1], [0, 0, 1, 1], [], []>} : vector<8x32xf32>, vector<32x128xf32>, vector<8x128xf32> -> vector<8x128xf32>
    %380 = arith.addf %378, %379 : vector<8x128xf32>
    %381 = arith.negf %380 : vector<8x128xf32>
    %382 = math.exp %381 : vector<8x128xf32>
    %cst_146 = arith.constant 1.000000e+00 : f32
    %383 = vector.broadcast %cst_146 : f32 to vector<8x128xf32>
    %384 = arith.addf %383, %382 : vector<8x128xf32>
    %385 = arith.divf %383, %384 : vector<8x128xf32>
    %386 = math.tanh %380 : vector<8x128xf32>
    %387 = vector.extract_strided_slice %385 {offsets = [0, 0], sizes = [8, 32], strides = [1, 1]} : vector<8x128xf32> to vector<8x32xf32>
    %388 = vector.extract_strided_slice %385 {offsets = [0, 32], sizes = [8, 32], strides = [1, 1]} : vector<8x128xf32> to vector<8x32xf32>
    %389 = vector.extract_strided_slice %386 {offsets = [0, 64], sizes = [8, 32], strides = [1, 1]} : vector<8x128xf32> to vector<8x32xf32>
    %390 = vector.extract_strided_slice %385 {offsets = [0, 96], sizes = [8, 32], strides = [1, 1]} : vector<8x128xf32> to vector<8x32xf32>
    %391 = arith.mulf %388, %374 : vector<8x32xf32>
    %392 = arith.mulf %387, %389 : vector<8x32xf32>
    %393 = arith.addf %391, %392 : vector<8x32xf32>
    %394 = math.tanh %393 : vector<8x32xf32>
    %395 = arith.mulf %390, %394 : vector<8x32xf32>
    %c16_147 = arith.constant 16 : index
    %c0_148 = arith.constant 0 : index
    %396 = vector.load %arg13[%c16_147, %c0_148] : memref<64x32xf32, #tpu.memory_space<vmem>>, vector<8x32xf32>
    tpu.vector_store %arg13[%c16_147, %c0_148], %395 {strides = array<i32>} : memref<64x32xf32, #tpu.memory_space<vmem>>, vector<8x32xf32>,
    %c24_149 = arith.constant 24 : index
    %c0_150 = arith.constant 0 : index
    %397 = vector.load %arg14[%c24_149, %c0_150] : memref<64x128xf32, #tpu.memory_space<vmem>>, vector<8x128xf32>
    %cst_151 = arith.constant dense<0.000000e+00> : vector<8x128xf32>
    %398 = tpu.matmul %395, %331, %cst_151 {dimension_numbers = #tpu.dot_dimension_numbers<[1], [0], [0], [1], [0, 0, 1, 1], [], []>} : vector<8x32xf32>, vector<32x128xf32>, vector<8x128xf32> -> vector<8x128xf32>
    %399 = arith.addf %397, %398 : vector<8x128xf32>
    %400 = arith.negf %399 : vector<8x128xf32>
    %401 = math.exp %400 : vector<8x128xf32>
    %cst_152 = arith.constant 1.000000e+00 : f32
    %402 = vector.broadcast %cst_152 : f32 to vector<8x128xf32>
    %403 = arith.addf %402, %401 : vector<8x128xf32>
    %404 = arith.divf %402, %403 : vector<8x128xf32>
    %405 = math.tanh %399 : vector<8x128xf32>
    %406 = vector.extract_strided_slice %404 {offsets = [0, 0], sizes = [8, 32], strides = [1, 1]} : vector<8x128xf32> to vector<8x32xf32>
    %407 = vector.extract_strided_slice %404 {offsets = [0, 32], sizes = [8, 32], strides = [1, 1]} : vector<8x128xf32> to vector<8x32xf32>
    %408 = vector.extract_strided_slice %405 {offsets = [0, 64], sizes = [8, 32], strides = [1, 1]} : vector<8x128xf32> to vector<8x32xf32>
    %409 = vector.extract_strided_slice %404 {offsets = [0, 96], sizes = [8, 32], strides = [1, 1]} : vector<8x128xf32> to vector<8x32xf32>
    %410 = arith.mulf %407, %393 : vector<8x32xf32>
    %411 = arith.mulf %406, %408 : vector<8x32xf32>
    %412 = arith.addf %410, %411 : vector<8x32xf32>
    %413 = math.tanh %412 : vector<8x32xf32>
    %414 = arith.mulf %409, %413 : vector<8x32xf32>
    %c24_153 = arith.constant 24 : index
    %c0_154 = arith.constant 0 : index
    %415 = vector.load %arg13[%c24_153, %c0_154] : memref<64x32xf32, #tpu.memory_space<vmem>>, vector<8x32xf32>
    tpu.vector_store %arg13[%c24_153, %c0_154], %414 {strides = array<i32>} : memref<64x32xf32, #tpu.memory_space<vmem>>, vector<8x32xf32>,
    %c32_155 = arith.constant 32 : index
    %c0_156 = arith.constant 0 : index
    %416 = vector.load %arg14[%c32_155, %c0_156] : memref<64x128xf32, #tpu.memory_space<vmem>>, vector<8x128xf32>
    %cst_157 = arith.constant dense<0.000000e+00> : vector<8x128xf32>
    %417 = tpu.matmul %414, %331, %cst_157 {dimension_numbers = #tpu.dot_dimension_numbers<[1], [0], [0], [1], [0, 0, 1, 1], [], []>} : vector<8x32xf32>, vector<32x128xf32>, vector<8x128xf32> -> vector<8x128xf32>
    %418 = arith.addf %416, %417 : vector<8x128xf32>
    %419 = arith.negf %418 : vector<8x128xf32>
    %420 = math.exp %419 : vector<8x128xf32>
    %cst_158 = arith.constant 1.000000e+00 : f32
    %421 = vector.broadcast %cst_158 : f32 to vector<8x128xf32>
    %422 = arith.addf %421, %420 : vector<8x128xf32>
    %423 = arith.divf %421, %422 : vector<8x128xf32>
    %424 = math.tanh %418 : vector<8x128xf32>
    %425 = vector.extract_strided_slice %423 {offsets = [0, 0], sizes = [8, 32], strides = [1, 1]} : vector<8x128xf32> to vector<8x32xf32>
    %426 = vector.extract_strided_slice %423 {offsets = [0, 32], sizes = [8, 32], strides = [1, 1]} : vector<8x128xf32> to vector<8x32xf32>
    %427 = vector.extract_strided_slice %424 {offsets = [0, 64], sizes = [8, 32], strides = [1, 1]} : vector<8x128xf32> to vector<8x32xf32>
    %428 = vector.extract_strided_slice %423 {offsets = [0, 96], sizes = [8, 32], strides = [1, 1]} : vector<8x128xf32> to vector<8x32xf32>
    %429 = arith.mulf %426, %412 : vector<8x32xf32>
    %430 = arith.mulf %425, %427 : vector<8x32xf32>
    %431 = arith.addf %429, %430 : vector<8x32xf32>
    %432 = math.tanh %431 : vector<8x32xf32>
    %433 = arith.mulf %428, %432 : vector<8x32xf32>
    %c32_159 = arith.constant 32 : index
    %c0_160 = arith.constant 0 : index
    %434 = vector.load %arg13[%c32_159, %c0_160] : memref<64x32xf32, #tpu.memory_space<vmem>>, vector<8x32xf32>
    tpu.vector_store %arg13[%c32_159, %c0_160], %433 {strides = array<i32>} : memref<64x32xf32, #tpu.memory_space<vmem>>, vector<8x32xf32>,
    %c40_161 = arith.constant 40 : index
    %c0_162 = arith.constant 0 : index
    %435 = vector.load %arg14[%c40_161, %c0_162] : memref<64x128xf32, #tpu.memory_space<vmem>>, vector<8x128xf32>
    %cst_163 = arith.constant dense<0.000000e+00> : vector<8x128xf32>
    %436 = tpu.matmul %433, %331, %cst_163 {dimension_numbers = #tpu.dot_dimension_numbers<[1], [0], [0], [1], [0, 0, 1, 1], [], []>} : vector<8x32xf32>, vector<32x128xf32>, vector<8x128xf32> -> vector<8x128xf32>
    %437 = arith.addf %435, %436 : vector<8x128xf32>
    %438 = arith.negf %437 : vector<8x128xf32>
    %439 = math.exp %438 : vector<8x128xf32>
    %cst_164 = arith.constant 1.000000e+00 : f32
    %440 = vector.broadcast %cst_164 : f32 to vector<8x128xf32>
    %441 = arith.addf %440, %439 : vector<8x128xf32>
    %442 = arith.divf %440, %441 : vector<8x128xf32>
    %443 = math.tanh %437 : vector<8x128xf32>
    %444 = vector.extract_strided_slice %442 {offsets = [0, 0], sizes = [8, 32], strides = [1, 1]} : vector<8x128xf32> to vector<8x32xf32>
    %445 = vector.extract_strided_slice %442 {offsets = [0, 32], sizes = [8, 32], strides = [1, 1]} : vector<8x128xf32> to vector<8x32xf32>
    %446 = vector.extract_strided_slice %443 {offsets = [0, 64], sizes = [8, 32], strides = [1, 1]} : vector<8x128xf32> to vector<8x32xf32>
    %447 = vector.extract_strided_slice %442 {offsets = [0, 96], sizes = [8, 32], strides = [1, 1]} : vector<8x128xf32> to vector<8x32xf32>
    %448 = arith.mulf %445, %431 : vector<8x32xf32>
    %449 = arith.mulf %444, %446 : vector<8x32xf32>
    %450 = arith.addf %448, %449 : vector<8x32xf32>
    %451 = math.tanh %450 : vector<8x32xf32>
    %452 = arith.mulf %447, %451 : vector<8x32xf32>
    %c40_165 = arith.constant 40 : index
    %c0_166 = arith.constant 0 : index
    %453 = vector.load %arg13[%c40_165, %c0_166] : memref<64x32xf32, #tpu.memory_space<vmem>>, vector<8x32xf32>
    tpu.vector_store %arg13[%c40_165, %c0_166], %452 {strides = array<i32>} : memref<64x32xf32, #tpu.memory_space<vmem>>, vector<8x32xf32>,
    %c48_167 = arith.constant 48 : index
    %c0_168 = arith.constant 0 : index
    %454 = vector.load %arg14[%c48_167, %c0_168] : memref<64x128xf32, #tpu.memory_space<vmem>>, vector<8x128xf32>
    %cst_169 = arith.constant dense<0.000000e+00> : vector<8x128xf32>
    %455 = tpu.matmul %452, %331, %cst_169 {dimension_numbers = #tpu.dot_dimension_numbers<[1], [0], [0], [1], [0, 0, 1, 1], [], []>} : vector<8x32xf32>, vector<32x128xf32>, vector<8x128xf32> -> vector<8x128xf32>
    %456 = arith.addf %454, %455 : vector<8x128xf32>
    %457 = arith.negf %456 : vector<8x128xf32>
    %458 = math.exp %457 : vector<8x128xf32>
    %cst_170 = arith.constant 1.000000e+00 : f32
    %459 = vector.broadcast %cst_170 : f32 to vector<8x128xf32>
    %460 = arith.addf %459, %458 : vector<8x128xf32>
    %461 = arith.divf %459, %460 : vector<8x128xf32>
    %462 = math.tanh %456 : vector<8x128xf32>
    %463 = vector.extract_strided_slice %461 {offsets = [0, 0], sizes = [8, 32], strides = [1, 1]} : vector<8x128xf32> to vector<8x32xf32>
    %464 = vector.extract_strided_slice %461 {offsets = [0, 32], sizes = [8, 32], strides = [1, 1]} : vector<8x128xf32> to vector<8x32xf32>
    %465 = vector.extract_strided_slice %462 {offsets = [0, 64], sizes = [8, 32], strides = [1, 1]} : vector<8x128xf32> to vector<8x32xf32>
    %466 = vector.extract_strided_slice %461 {offsets = [0, 96], sizes = [8, 32], strides = [1, 1]} : vector<8x128xf32> to vector<8x32xf32>
    %467 = arith.mulf %464, %450 : vector<8x32xf32>
    %468 = arith.mulf %463, %465 : vector<8x32xf32>
    %469 = arith.addf %467, %468 : vector<8x32xf32>
    %470 = math.tanh %469 : vector<8x32xf32>
    %471 = arith.mulf %466, %470 : vector<8x32xf32>
    %c48_171 = arith.constant 48 : index
    %c0_172 = arith.constant 0 : index
    %472 = vector.load %arg13[%c48_171, %c0_172] : memref<64x32xf32, #tpu.memory_space<vmem>>, vector<8x32xf32>
    tpu.vector_store %arg13[%c48_171, %c0_172], %471 {strides = array<i32>} : memref<64x32xf32, #tpu.memory_space<vmem>>, vector<8x32xf32>,
    %c56_173 = arith.constant 56 : index
    %c0_174 = arith.constant 0 : index
    %473 = vector.load %arg14[%c56_173, %c0_174] : memref<64x128xf32, #tpu.memory_space<vmem>>, vector<8x128xf32>
    %cst_175 = arith.constant dense<0.000000e+00> : vector<8x128xf32>
    %474 = tpu.matmul %471, %331, %cst_175 {dimension_numbers = #tpu.dot_dimension_numbers<[1], [0], [0], [1], [0, 0, 1, 1], [], []>} : vector<8x32xf32>, vector<32x128xf32>, vector<8x128xf32> -> vector<8x128xf32>
    %475 = arith.addf %473, %474 : vector<8x128xf32>
    %476 = arith.negf %475 : vector<8x128xf32>
    %477 = math.exp %476 : vector<8x128xf32>
    %cst_176 = arith.constant 1.000000e+00 : f32
    %478 = vector.broadcast %cst_176 : f32 to vector<8x128xf32>
    %479 = arith.addf %478, %477 : vector<8x128xf32>
    %480 = arith.divf %478, %479 : vector<8x128xf32>
    %481 = math.tanh %475 : vector<8x128xf32>
    %482 = vector.extract_strided_slice %480 {offsets = [0, 0], sizes = [8, 32], strides = [1, 1]} : vector<8x128xf32> to vector<8x32xf32>
    %483 = vector.extract_strided_slice %480 {offsets = [0, 32], sizes = [8, 32], strides = [1, 1]} : vector<8x128xf32> to vector<8x32xf32>
    %484 = vector.extract_strided_slice %481 {offsets = [0, 64], sizes = [8, 32], strides = [1, 1]} : vector<8x128xf32> to vector<8x32xf32>
    %485 = vector.extract_strided_slice %480 {offsets = [0, 96], sizes = [8, 32], strides = [1, 1]} : vector<8x128xf32> to vector<8x32xf32>
    %486 = arith.mulf %483, %469 : vector<8x32xf32>
    %487 = arith.mulf %482, %484 : vector<8x32xf32>
    %488 = arith.addf %486, %487 : vector<8x32xf32>
    %489 = math.tanh %488 : vector<8x32xf32>
    %490 = arith.mulf %485, %489 : vector<8x32xf32>
    %c56_177 = arith.constant 56 : index
    %c0_178 = arith.constant 0 : index
    %491 = vector.load %arg13[%c56_177, %c0_178] : memref<64x32xf32, #tpu.memory_space<vmem>>, vector<8x32xf32>
    tpu.vector_store %arg13[%c56_177, %c0_178], %490 {strides = array<i32>} : memref<64x32xf32, #tpu.memory_space<vmem>>, vector<8x32xf32>,
    %c0_179 = arith.constant 0 : index
    %c0_180 = arith.constant 0 : index
    %492 = vector.load %arg13[%c0_179, %c0_180] : memref<64x32xf32, #tpu.memory_space<vmem>>, vector<64x32xf32>
    %c2 = arith.constant 2 : index
    %c0_181 = arith.constant 0 : index
    %c0_182 = arith.constant 0 : index
    %493 = vector.load %arg4[%c2, %c0_181, %c0_182] : memref<3x32x128xf32, #tpu.memory_space<vmem>>, vector<1x32x128xf32>
    %494 = vector.shape_cast %493 : vector<1x32x128xf32> to vector<32x128xf32>
    %c2_183 = arith.constant 2 : index
    %c0_184 = arith.constant 0 : index
    %c0_185 = arith.constant 0 : index
    %495 = vector.load %arg5[%c2_183, %c0_184, %c0_185] : memref<3x32x128xf32, #tpu.memory_space<vmem>>, vector<1x32x128xf32>
    %496 = vector.shape_cast %495 : vector<1x32x128xf32> to vector<32x128xf32>
    %c2_186 = arith.constant 2 : index
    %c0_187 = arith.constant 0 : index
    %c0_188 = arith.constant 0 : index
    %497 = vector.load %arg6[%c2_186, %c0_187, %c0_188] : memref<3x1x128xf32, #tpu.memory_space<vmem>>, vector<1x1x128xf32>
    %498 = vector.shape_cast %497 : vector<1x1x128xf32> to vector<1x128xf32>
    %cst_189 = arith.constant dense<0.000000e+00> : vector<64x128xf32>
    %499 = tpu.matmul %492, %494, %cst_189 {dimension_numbers = #tpu.dot_dimension_numbers<[1], [0], [0], [1], [0, 0, 1, 1], [], []>} : vector<64x32xf32>, vector<32x128xf32>, vector<64x128xf32> -> vector<64x128xf32>
    %500 = vector.broadcast %498 : vector<1x128xf32> to vector<64x128xf32>
    %501 = arith.addf %499, %500 : vector<64x128xf32>
    %c0_190 = arith.constant 0 : index
    %c0_191 = arith.constant 0 : index
    %502 = vector.load %arg14[%c0_190, %c0_191] : memref<64x128xf32, #tpu.memory_space<vmem>>, vector<64x128xf32>
    tpu.vector_store %arg14[%c0_190, %c0_191], %501 {strides = array<i32>} : memref<64x128xf32, #tpu.memory_space<vmem>>, vector<64x128xf32>,
    %cst_192 = arith.constant 0.000000e+00 : f32
    %503 = vector.broadcast %cst_192 : f32 to vector<8x32xf32>
    %cst_193 = arith.constant 0.000000e+00 : f32
    %504 = vector.broadcast %cst_193 : f32 to vector<8x32xf32>
    %c0_194 = arith.constant 0 : index
    %c0_195 = arith.constant 0 : index
    %505 = vector.load %arg14[%c0_194, %c0_195] : memref<64x128xf32, #tpu.memory_space<vmem>>, vector<8x128xf32>
    %cst_196 = arith.constant dense<0.000000e+00> : vector<8x128xf32>
    %506 = tpu.matmul %503, %496, %cst_196 {dimension_numbers = #tpu.dot_dimension_numbers<[1], [0], [0], [1], [0, 0, 1, 1], [], []>} : vector<8x32xf32>, vector<32x128xf32>, vector<8x128xf32> -> vector<8x128xf32>
    %507 = arith.addf %505, %506 : vector<8x128xf32>
    %508 = arith.negf %507 : vector<8x128xf32>
    %509 = math.exp %508 : vector<8x128xf32>
    %cst_197 = arith.constant 1.000000e+00 : f32
    %510 = vector.broadcast %cst_197 : f32 to vector<8x128xf32>
    %511 = arith.addf %510, %509 : vector<8x128xf32>
    %512 = arith.divf %510, %511 : vector<8x128xf32>
    %513 = math.tanh %507 : vector<8x128xf32>
    %514 = vector.extract_strided_slice %512 {offsets = [0, 0], sizes = [8, 32], strides = [1, 1]} : vector<8x128xf32> to vector<8x32xf32>
    %515 = vector.extract_strided_slice %512 {offsets = [0, 32], sizes = [8, 32], strides = [1, 1]} : vector<8x128xf32> to vector<8x32xf32>
    %516 = vector.extract_strided_slice %513 {offsets = [0, 64], sizes = [8, 32], strides = [1, 1]} : vector<8x128xf32> to vector<8x32xf32>
    %517 = vector.extract_strided_slice %512 {offsets = [0, 96], sizes = [8, 32], strides = [1, 1]} : vector<8x128xf32> to vector<8x32xf32>
    %518 = arith.mulf %515, %504 : vector<8x32xf32>
    %519 = arith.mulf %514, %516 : vector<8x32xf32>
    %520 = arith.addf %518, %519 : vector<8x32xf32>
    %521 = math.tanh %520 : vector<8x32xf32>
    %522 = arith.mulf %517, %521 : vector<8x32xf32>
    %c8_198 = arith.constant 8 : index
    %c0_199 = arith.constant 0 : index
    %523 = vector.load %arg14[%c8_198, %c0_199] : memref<64x128xf32, #tpu.memory_space<vmem>>, vector<8x128xf32>
    %cst_200 = arith.constant dense<0.000000e+00> : vector<8x128xf32>
    %524 = tpu.matmul %522, %496, %cst_200 {dimension_numbers = #tpu.dot_dimension_numbers<[1], [0], [0], [1], [0, 0, 1, 1], [], []>} : vector<8x32xf32>, vector<32x128xf32>, vector<8x128xf32> -> vector<8x128xf32>
    %525 = arith.addf %523, %524 : vector<8x128xf32>
    %526 = arith.negf %525 : vector<8x128xf32>
    %527 = math.exp %526 : vector<8x128xf32>
    %cst_201 = arith.constant 1.000000e+00 : f32
    %528 = vector.broadcast %cst_201 : f32 to vector<8x128xf32>
    %529 = arith.addf %528, %527 : vector<8x128xf32>
    %530 = arith.divf %528, %529 : vector<8x128xf32>
    %531 = math.tanh %525 : vector<8x128xf32>
    %532 = vector.extract_strided_slice %530 {offsets = [0, 0], sizes = [8, 32], strides = [1, 1]} : vector<8x128xf32> to vector<8x32xf32>
    %533 = vector.extract_strided_slice %530 {offsets = [0, 32], sizes = [8, 32], strides = [1, 1]} : vector<8x128xf32> to vector<8x32xf32>
    %534 = vector.extract_strided_slice %531 {offsets = [0, 64], sizes = [8, 32], strides = [1, 1]} : vector<8x128xf32> to vector<8x32xf32>
    %535 = vector.extract_strided_slice %530 {offsets = [0, 96], sizes = [8, 32], strides = [1, 1]} : vector<8x128xf32> to vector<8x32xf32>
    %536 = arith.mulf %533, %520 : vector<8x32xf32>
    %537 = arith.mulf %532, %534 : vector<8x32xf32>
    %538 = arith.addf %536, %537 : vector<8x32xf32>
    %539 = math.tanh %538 : vector<8x32xf32>
    %540 = arith.mulf %535, %539 : vector<8x32xf32>
    %c16_202 = arith.constant 16 : index
    %c0_203 = arith.constant 0 : index
    %541 = vector.load %arg14[%c16_202, %c0_203] : memref<64x128xf32, #tpu.memory_space<vmem>>, vector<8x128xf32>
    %cst_204 = arith.constant dense<0.000000e+00> : vector<8x128xf32>
    %542 = tpu.matmul %540, %496, %cst_204 {dimension_numbers = #tpu.dot_dimension_numbers<[1], [0], [0], [1], [0, 0, 1, 1], [], []>} : vector<8x32xf32>, vector<32x128xf32>, vector<8x128xf32> -> vector<8x128xf32>
    %543 = arith.addf %541, %542 : vector<8x128xf32>
    %544 = arith.negf %543 : vector<8x128xf32>
    %545 = math.exp %544 : vector<8x128xf32>
    %cst_205 = arith.constant 1.000000e+00 : f32
    %546 = vector.broadcast %cst_205 : f32 to vector<8x128xf32>
    %547 = arith.addf %546, %545 : vector<8x128xf32>
    %548 = arith.divf %546, %547 : vector<8x128xf32>
    %549 = math.tanh %543 : vector<8x128xf32>
    %550 = vector.extract_strided_slice %548 {offsets = [0, 0], sizes = [8, 32], strides = [1, 1]} : vector<8x128xf32> to vector<8x32xf32>
    %551 = vector.extract_strided_slice %548 {offsets = [0, 32], sizes = [8, 32], strides = [1, 1]} : vector<8x128xf32> to vector<8x32xf32>
    %552 = vector.extract_strided_slice %549 {offsets = [0, 64], sizes = [8, 32], strides = [1, 1]} : vector<8x128xf32> to vector<8x32xf32>
    %553 = vector.extract_strided_slice %548 {offsets = [0, 96], sizes = [8, 32], strides = [1, 1]} : vector<8x128xf32> to vector<8x32xf32>
    %554 = arith.mulf %551, %538 : vector<8x32xf32>
    %555 = arith.mulf %550, %552 : vector<8x32xf32>
    %556 = arith.addf %554, %555 : vector<8x32xf32>
    %557 = math.tanh %556 : vector<8x32xf32>
    %558 = arith.mulf %553, %557 : vector<8x32xf32>
    %c24_206 = arith.constant 24 : index
    %c0_207 = arith.constant 0 : index
    %559 = vector.load %arg14[%c24_206, %c0_207] : memref<64x128xf32, #tpu.memory_space<vmem>>, vector<8x128xf32>
    %cst_208 = arith.constant dense<0.000000e+00> : vector<8x128xf32>
    %560 = tpu.matmul %558, %496, %cst_208 {dimension_numbers = #tpu.dot_dimension_numbers<[1], [0], [0], [1], [0, 0, 1, 1], [], []>} : vector<8x32xf32>, vector<32x128xf32>, vector<8x128xf32> -> vector<8x128xf32>
    %561 = arith.addf %559, %560 : vector<8x128xf32>
    %562 = arith.negf %561 : vector<8x128xf32>
    %563 = math.exp %562 : vector<8x128xf32>
    %cst_209 = arith.constant 1.000000e+00 : f32
    %564 = vector.broadcast %cst_209 : f32 to vector<8x128xf32>
    %565 = arith.addf %564, %563 : vector<8x128xf32>
    %566 = arith.divf %564, %565 : vector<8x128xf32>
    %567 = math.tanh %561 : vector<8x128xf32>
    %568 = vector.extract_strided_slice %566 {offsets = [0, 0], sizes = [8, 32], strides = [1, 1]} : vector<8x128xf32> to vector<8x32xf32>
    %569 = vector.extract_strided_slice %566 {offsets = [0, 32], sizes = [8, 32], strides = [1, 1]} : vector<8x128xf32> to vector<8x32xf32>
    %570 = vector.extract_strided_slice %567 {offsets = [0, 64], sizes = [8, 32], strides = [1, 1]} : vector<8x128xf32> to vector<8x32xf32>
    %571 = vector.extract_strided_slice %566 {offsets = [0, 96], sizes = [8, 32], strides = [1, 1]} : vector<8x128xf32> to vector<8x32xf32>
    %572 = arith.mulf %569, %556 : vector<8x32xf32>
    %573 = arith.mulf %568, %570 : vector<8x32xf32>
    %574 = arith.addf %572, %573 : vector<8x32xf32>
    %575 = math.tanh %574 : vector<8x32xf32>
    %576 = arith.mulf %571, %575 : vector<8x32xf32>
    %c32_210 = arith.constant 32 : index
    %c0_211 = arith.constant 0 : index
    %577 = vector.load %arg14[%c32_210, %c0_211] : memref<64x128xf32, #tpu.memory_space<vmem>>, vector<8x128xf32>
    %cst_212 = arith.constant dense<0.000000e+00> : vector<8x128xf32>
    %578 = tpu.matmul %576, %496, %cst_212 {dimension_numbers = #tpu.dot_dimension_numbers<[1], [0], [0], [1], [0, 0, 1, 1], [], []>} : vector<8x32xf32>, vector<32x128xf32>, vector<8x128xf32> -> vector<8x128xf32>
    %579 = arith.addf %577, %578 : vector<8x128xf32>
    %580 = arith.negf %579 : vector<8x128xf32>
    %581 = math.exp %580 : vector<8x128xf32>
    %cst_213 = arith.constant 1.000000e+00 : f32
    %582 = vector.broadcast %cst_213 : f32 to vector<8x128xf32>
    %583 = arith.addf %582, %581 : vector<8x128xf32>
    %584 = arith.divf %582, %583 : vector<8x128xf32>
    %585 = math.tanh %579 : vector<8x128xf32>
    %586 = vector.extract_strided_slice %584 {offsets = [0, 0], sizes = [8, 32], strides = [1, 1]} : vector<8x128xf32> to vector<8x32xf32>
    %587 = vector.extract_strided_slice %584 {offsets = [0, 32], sizes = [8, 32], strides = [1, 1]} : vector<8x128xf32> to vector<8x32xf32>
    %588 = vector.extract_strided_slice %585 {offsets = [0, 64], sizes = [8, 32], strides = [1, 1]} : vector<8x128xf32> to vector<8x32xf32>
    %589 = vector.extract_strided_slice %584 {offsets = [0, 96], sizes = [8, 32], strides = [1, 1]} : vector<8x128xf32> to vector<8x32xf32>
    %590 = arith.mulf %587, %574 : vector<8x32xf32>
    %591 = arith.mulf %586, %588 : vector<8x32xf32>
    %592 = arith.addf %590, %591 : vector<8x32xf32>
    %593 = math.tanh %592 : vector<8x32xf32>
    %594 = arith.mulf %589, %593 : vector<8x32xf32>
    %c40_214 = arith.constant 40 : index
    %c0_215 = arith.constant 0 : index
    %595 = vector.load %arg14[%c40_214, %c0_215] : memref<64x128xf32, #tpu.memory_space<vmem>>, vector<8x128xf32>
    %cst_216 = arith.constant dense<0.000000e+00> : vector<8x128xf32>
    %596 = tpu.matmul %594, %496, %cst_216 {dimension_numbers = #tpu.dot_dimension_numbers<[1], [0], [0], [1], [0, 0, 1, 1], [], []>} : vector<8x32xf32>, vector<32x128xf32>, vector<8x128xf32> -> vector<8x128xf32>
    %597 = arith.addf %595, %596 : vector<8x128xf32>
    %598 = arith.negf %597 : vector<8x128xf32>
    %599 = math.exp %598 : vector<8x128xf32>
    %cst_217 = arith.constant 1.000000e+00 : f32
    %600 = vector.broadcast %cst_217 : f32 to vector<8x128xf32>
    %601 = arith.addf %600, %599 : vector<8x128xf32>
    %602 = arith.divf %600, %601 : vector<8x128xf32>
    %603 = math.tanh %597 : vector<8x128xf32>
    %604 = vector.extract_strided_slice %602 {offsets = [0, 0], sizes = [8, 32], strides = [1, 1]} : vector<8x128xf32> to vector<8x32xf32>
    %605 = vector.extract_strided_slice %602 {offsets = [0, 32], sizes = [8, 32], strides = [1, 1]} : vector<8x128xf32> to vector<8x32xf32>
    %606 = vector.extract_strided_slice %603 {offsets = [0, 64], sizes = [8, 32], strides = [1, 1]} : vector<8x128xf32> to vector<8x32xf32>
    %607 = vector.extract_strided_slice %602 {offsets = [0, 96], sizes = [8, 32], strides = [1, 1]} : vector<8x128xf32> to vector<8x32xf32>
    %608 = arith.mulf %605, %592 : vector<8x32xf32>
    %609 = arith.mulf %604, %606 : vector<8x32xf32>
    %610 = arith.addf %608, %609 : vector<8x32xf32>
    %611 = math.tanh %610 : vector<8x32xf32>
    %612 = arith.mulf %607, %611 : vector<8x32xf32>
    %c48_218 = arith.constant 48 : index
    %c0_219 = arith.constant 0 : index
    %613 = vector.load %arg14[%c48_218, %c0_219] : memref<64x128xf32, #tpu.memory_space<vmem>>, vector<8x128xf32>
    %cst_220 = arith.constant dense<0.000000e+00> : vector<8x128xf32>
    %614 = tpu.matmul %612, %496, %cst_220 {dimension_numbers = #tpu.dot_dimension_numbers<[1], [0], [0], [1], [0, 0, 1, 1], [], []>} : vector<8x32xf32>, vector<32x128xf32>, vector<8x128xf32> -> vector<8x128xf32>
    %615 = arith.addf %613, %614 : vector<8x128xf32>
    %616 = arith.negf %615 : vector<8x128xf32>
    %617 = math.exp %616 : vector<8x128xf32>
    %cst_221 = arith.constant 1.000000e+00 : f32
    %618 = vector.broadcast %cst_221 : f32 to vector<8x128xf32>
    %619 = arith.addf %618, %617 : vector<8x128xf32>
    %620 = arith.divf %618, %619 : vector<8x128xf32>
    %621 = math.tanh %615 : vector<8x128xf32>
    %622 = vector.extract_strided_slice %620 {offsets = [0, 0], sizes = [8, 32], strides = [1, 1]} : vector<8x128xf32> to vector<8x32xf32>
    %623 = vector.extract_strided_slice %620 {offsets = [0, 32], sizes = [8, 32], strides = [1, 1]} : vector<8x128xf32> to vector<8x32xf32>
    %624 = vector.extract_strided_slice %621 {offsets = [0, 64], sizes = [8, 32], strides = [1, 1]} : vector<8x128xf32> to vector<8x32xf32>
    %625 = vector.extract_strided_slice %620 {offsets = [0, 96], sizes = [8, 32], strides = [1, 1]} : vector<8x128xf32> to vector<8x32xf32>
    %626 = arith.mulf %623, %610 : vector<8x32xf32>
    %627 = arith.mulf %622, %624 : vector<8x32xf32>
    %628 = arith.addf %626, %627 : vector<8x32xf32>
    %629 = math.tanh %628 : vector<8x32xf32>
    %630 = arith.mulf %625, %629 : vector<8x32xf32>
    %c56_222 = arith.constant 56 : index
    %c0_223 = arith.constant 0 : index
    %631 = vector.load %arg14[%c56_222, %c0_223] : memref<64x128xf32, #tpu.memory_space<vmem>>, vector<8x128xf32>
    %cst_224 = arith.constant dense<0.000000e+00> : vector<8x128xf32>
    %632 = tpu.matmul %630, %496, %cst_224 {dimension_numbers = #tpu.dot_dimension_numbers<[1], [0], [0], [1], [0, 0, 1, 1], [], []>} : vector<8x32xf32>, vector<32x128xf32>, vector<8x128xf32> -> vector<8x128xf32>
    %633 = arith.addf %631, %632 : vector<8x128xf32>
    %634 = arith.negf %633 : vector<8x128xf32>
    %635 = math.exp %634 : vector<8x128xf32>
    %cst_225 = arith.constant 1.000000e+00 : f32
    %636 = vector.broadcast %cst_225 : f32 to vector<8x128xf32>
    %637 = arith.addf %636, %635 : vector<8x128xf32>
    %638 = arith.divf %636, %637 : vector<8x128xf32>
    %639 = math.tanh %633 : vector<8x128xf32>
    %640 = vector.extract_strided_slice %638 {offsets = [0, 0], sizes = [8, 32], strides = [1, 1]} : vector<8x128xf32> to vector<8x32xf32>
    %641 = vector.extract_strided_slice %638 {offsets = [0, 32], sizes = [8, 32], strides = [1, 1]} : vector<8x128xf32> to vector<8x32xf32>
    %642 = vector.extract_strided_slice %639 {offsets = [0, 64], sizes = [8, 32], strides = [1, 1]} : vector<8x128xf32> to vector<8x32xf32>
    %643 = vector.extract_strided_slice %638 {offsets = [0, 96], sizes = [8, 32], strides = [1, 1]} : vector<8x128xf32> to vector<8x32xf32>
    %644 = arith.mulf %641, %628 : vector<8x32xf32>
    %645 = arith.mulf %640, %642 : vector<8x32xf32>
    %646 = arith.addf %644, %645 : vector<8x32xf32>
    %647 = math.tanh %646 : vector<8x32xf32>
    %648 = arith.mulf %643, %647 : vector<8x32xf32>
    %c0_226 = arith.constant 0 : index
    %c0_227 = arith.constant 0 : index
    %649 = vector.load %arg7[%c0_226, %c0_227] : memref<32x384xf32, #tpu.memory_space<vmem>>, vector<32x384xf32>
    %cst_228 = arith.constant dense<0.000000e+00> : vector<8x384xf32>
    %650 = tpu.matmul %648, %649, %cst_228 {dimension_numbers = #tpu.dot_dimension_numbers<[1], [0], [0], [1], [0, 0, 1, 1], [], []>} : vector<8x32xf32>, vector<32x384xf32>, vector<8x384xf32> -> vector<8x384xf32>
    %c0_229 = arith.constant 0 : index
    %c0_230 = arith.constant 0 : index
    %651 = vector.load %arg8[%c0_229, %c0_230] : memref<1x384xf32, #tpu.memory_space<vmem>>, vector<1x384xf32>
    %652 = vector.broadcast %651 : vector<1x384xf32> to vector<8x384xf32>
    %653 = arith.addf %650, %652 : vector<8x384xf32>
    %c0_231 = arith.constant 0 : index
    %c0_232 = arith.constant 0 : index
    %654 = vector.load %arg9[%c0_231, %c0_232] : memref<384x40xf32, #tpu.memory_space<vmem>>, vector<384x40xf32>
    %cst_233 = arith.constant dense<0.000000e+00> : vector<8x40xf32>
    %655 = tpu.matmul %653, %654, %cst_233 {dimension_numbers = #tpu.dot_dimension_numbers<[1], [0], [0], [1], [0, 0, 1, 1], [], []>} : vector<8x384xf32>, vector<384x40xf32>, vector<8x40xf32> -> vector<8x40xf32>
    %c0_234 = arith.constant 0 : index
    %c0_235 = arith.constant 0 : index
    %656 = vector.load %arg10[%c0_234, %c0_235] : memref<1x40xf32, #tpu.memory_space<vmem>>, vector<1x40xf32>
    %657 = vector.broadcast %656 : vector<1x40xf32> to vector<8x40xf32>
    %658 = arith.addf %655, %657 : vector<8x40xf32>
    %cst_236 = arith.constant 0.000000e+00 : f32
    %659 = vector.broadcast %cst_236 : f32 to vector<8x384xf32>
    %660 = arith.maximumf %653, %659 : vector<8x384xf32>
    %c0_237 = arith.constant 0 : index
    %c0_238 = arith.constant 0 : index
    %661 = vector.load %arg11[%c0_237, %c0_238] : memref<8x384xf32, #tpu.memory_space<vmem>>, vector<8x384xf32>
    tpu.vector_store %arg11[%c0_237, %c0_238], %660 {strides = array<i32>} : memref<8x384xf32, #tpu.memory_space<vmem>>, vector<8x384xf32>,
    %c0_239 = arith.constant 0 : index
    %c0_240 = arith.constant 0 : index
    %662 = vector.load %arg12[%c0_239, %c0_240] : memref<8x40xf32, #tpu.memory_space<vmem>>, vector<8x40xf32>
    tpu.vector_store %arg12[%c0_239, %c0_240], %658 {strides = array<i32>} : memref<8x40xf32, #tpu.memory_space<vmem>>, vector<8x40xf32>,
    return
  }
}

</mosaic_0001>

<bundles_post_ra>
// kernel: tpu_custom_call.1
= control target key start
LH: loop header
LB: loop body
LE: loop exit
PB: predicated region body
PF: predicated region fallthrough
CT: control target
= control target key end

     0   :  { %18 = vsyncpa [#allocation5], 0  ;;  %v5526_v3 = vmov 0.0   ;;  %vm63_vm0 = vcmask 130048   ;;  %s6619_s0 = inlined_call_operand.vmem [shape: f32[64,16], index: 0, kind: input, shape index: {}]   ;;  %s6620_s1 = inlined_call_operand.vmem [shape: f32[16,128], index: 1, kind: input, shape index: {}]   ;;  %s6621_s2 = inlined_call_operand.vmem [shape: f32[32,128], index: 2, kind: input, shape index: {}]   ;;  %s6622_s3 = inlined_call_operand.vmem [shape: f32[1,128], index: 3, kind: input, shape index: {}]   ;;  %s6623_s4 = inlined_call_operand.vmem [shape: f32[3,32,128], index: 4, kind: input, shape index: {}]   ;;  %s6624_s5 = inlined_call_operand.vmem [shape: f32[3,32,128], index: 5, kind: input, shape index: {}]   ;;  %s6625_s6 = inlined_call_operand.vmem [shape: f32[3,1,128], index: 6, kind: input, shape index: {}]   ;;  %s6626_s7 = inlined_call_operand.vmem [shape: f32[32,384], index: 7, kind: input, shape index: {}]   ;;  %s6627_s8 = inlined_call_operand.vmem [shape: f32[1,384], index: 8, kind: input, shape index: {}]   ;;  %s6628_s9 = inlined_call_operand.vmem [shape: f32[384,40], index: 9, kind: input, shape index: {}]   ;;  %s6629_s10 = inlined_call_operand.vmem [shape: f32[1,40], index: 10, kind: input, shape index: {}]   ;;  %s6630_s11 = inlined_call_operand.hbm [shape: f32[8,384], index: 11, kind: output, shape index: {0}]   ;;  %s6631_s12 = inlined_call_operand.hbm [shape: f32[8,40], index: 12, kind: output, shape index: {1}]  }
   0x1   :  { %v51_v0 = vld [vmem:[%s6620_s1 + $0x8] sm:$0xff]  ;;  %v5603_v1 = vld [vmem:[%s6621_s2 + $0x18] sm:$0xff]  ;;  %v50_v2 = vld [vmem:[%s6620_s1] sm:$0xff]  ;;  %4762 = vmatprep.subr.mxu1 %v5526_v3 }
   0x2   :  { %4746 = vmatprep.subr.mxu0 %v51_v0  ;;  %v42_v4 = vld [vmem:[%s6619_s0] sm:$0xff]  ;;  %4763 = vmatpush3.msra.mxu1 %v5603_v1  ;;  %v5616_v5 = vld [vmem:[%s6621_s2 + $0x10] sm:$0xff]  ;;  %v43_v6 = vld [vmem:[%s6619_s0 + $0x8] sm:$0xff] }
   0x3   :  { %4747 = vmatpush3.msra.mxu0 %v51_v0 }
   0x4   :  { %19 = vsyncpa [#allocation7], 0  ;;  %4748 = vmatprep.subr.mxu0 %v50_v2  ;;  %4764 = vmatprep.subr.mxu1 %v5526_v3  ;;  %v5626_v7 = vld [vmem:[%s6621_s2 + $0x8] sm:$0xff]  ;;  %v5634_v8 = vld [vmem:[%s6621_s2] sm:$0xff]  ;;  %vm5527_vm1 = vmmov 0   ;;  %s5528_s19 = smov 64  }
   0x5   :  { %4749 = vmatpush3.msra.mxu0 %v50_v2  ;;  %4750 = vmatprep.mubr.msk.f32.mxu0 %vm63_vm0, %v42_v4  ;;  %v5665_v10 = vld [vmem:[%s6622_s3] ss:$0 sm:$0xff]  ;;  %s5529_s3 = smov 32   ;;  %vm202_vm2 = vcmask 261120   ;;  %v44_v44 = vld [vmem:[%s6619_s0 + $0x10] sm:$0xff]  ;;  %v45_v45 = vld [vmem:[%s6619_s0 + $0x18] sm:$0xff] }
   0x6   :  { %4765 = vmatpush3.msra.mxu1 %v5616_v5  ;;  %4751 = vmatmul.mubr.msk.f32.vlgmr.msra.gmra.mxu0 %vm63_vm0, %v43_v6  ;;  %v46_v46 = vld [vmem:[%s6619_s0 + $0x20] sm:$0xff]  ;;  %v47_v47 = vld [vmem:[%s6619_s0 + $0x28] sm:$0xff]  ;;  %v48_v48 = vld [vmem:[%s6619_s0 + $0x30] sm:$0xff] }
   0x7   :  { %4766 = vmatprep.subr.mxu1 %v5526_v3  ;;  %4770 = vmatprep.mubr.msk.f32.mxu1 %vm5527_vm1, %v5526_v3  ;;  %v49_v49 = vld [vmem:[%s6619_s0 + $0x38] sm:$0xff] }
   0x8   :  { %4767 = vmatpush3.msra.mxu1 %v5626_v7  ;;  %4784 = vmatprep.subr.mxu0 %v5526_v3 }
   0x9   :  { %4768 = vmatprep.subr.mxu1 %v5526_v3  ;;  %4785 = vmatpush3.msra.mxu0 %v5603_v1 }
   0xa   :  { %4769 = vmatpush3.msra.mxu1 %v5634_v8  ;;  %4786 = vmatprep.subr.mxu0 %v5526_v3 }
   0xb   :  { %4771 = vmatmul.mubr.f32.vlgmr.msra.gmra.mxu1 %v5526_v3  ;;  %4773 = vmatprep.subr.mxu1 %v5526_v3 }
   0xc   :  { %4774 = vmatpush3.msra.mxu1 %v5603_v1  ;;  %4781 = vmatprep.mubr.msk.f32.mxu1 %vm5527_vm1, %v5526_v3 }
   0xd   :  { %4775 = vmatprep.subr.mxu1 %v5526_v3  ;;  %4787 = vmatpush3.msra.mxu0 %v5616_v5 }
   0xe   :  { %4776 = vmatpush3.msra.mxu1 %v5616_v5  ;;  %4788 = vmatprep.subr.mxu0 %v5526_v3 }
   0xf   :  { %4777 = vmatprep.subr.mxu1 %v5526_v3  ;;  %4789 = vmatpush3.msra.mxu0 %v5626_v7 }
  0x10   :  { %4778 = vmatpush3.msra.mxu1 %v5626_v7  ;;  %4790 = vmatprep.subr.mxu0 %v5526_v3 }
  0x11   :  { %4779 = vmatprep.subr.mxu1 %v5526_v3  ;;  %4791 = vmatpush3.msra.mxu0 %v5634_v8 }
  0x12   :  { %4780 = vmatpush3.msra.mxu1 %v5634_v8  ;;  %4806 = vmatprep.subr.mxu0 %v5526_v3 }
  0x13   :  { %4795 = vmatprep.subr.mxu1 %v5526_v3  ;;  %4753 = vmatprep.mubr.msk.f32.mxu0 %vm63_vm0, %v44_v44 }
  0x14   :  { %4754 = vmatmul.mubr.msk.f32.gmra.mxu0 %vm63_vm0, %v45_v45 }
  0x15   :  { %4756 = vmatprep.mubr.msk.f32.mxu0 %vm63_vm0, %v46_v46 }
  0x18   :  { %4757 = vmatmul.mubr.msk.f32.gmra.mxu0 %vm63_vm0, %v47_v47 }
  0x19   :  { %4759 = vmatprep.mubr.msk.f32.mxu0 %vm63_vm0, %v48_v48 }
  0x1c   :  { %4760 = vmatmul.mubr.msk.f32.gmra.mxu0 %vm63_vm0, %v49_v49 }
  0x1d   :  { %4792 = vmatprep.mubr.msk.f32.mxu0 %vm5527_vm1, %v5526_v3 }
  0xc6   :  { %v4752_v9 = vpop.f32.mrf.mxu0 }
  0xc7   :  { %v160_v30 = vadd.f32 %v4752_v9, %v5665_v10 }
  0xc8   :  { %v154_v11 = vpop.f32.mrf.mxu0 }
  0xc9   :  { %v155_v12 = vadd.f32 %v5665_v10, %v154_v11 }
  0xcb   :  { %v272_v13 = vpop.f32.mrf.mxu1 }
  0xcc   :  { %v276_v14 = vadd.f32 %v272_v13, %v155_v12 }
  0xcd   :  { %v4772_v15 = vpop.f32.mrf.mxu1 }
  0xce   :  { %5226 = vtanh.f32 %v276_v14  ;;  %v4375_v17 = vmul.f32 -1.442695, %v276_v14 }
  0xd0   :  { %5228 = vpow2.f32 %v4375_v17 }
  0xd4   :  { %v4755_v54 = vpop.f32.mrf.mxu0 }
  0xd6   :  { %v164_v55 = vpop.f32.mrf.mxu0 }
  0xd7   :  { %v165_v60 = vadd.f32 %v5665_v10, %v164_v55 }
  0xd8   :  { %v5727_v56 = vpop.f32.mrf.mxu0 }
  0xda   :  { %v5729_v57 = vpop.f32.mrf.mxu0 }
  0xdb   :  { %v5227_v16 = vpop.eup %5226 }
  0xdc   :  { %286 = vrot.lane.b32.xlu0 %v5227_v16, %s5528_s19  ;;  %v5731_v58 = vpop.f32.mrf.mxu0 }
  0xdd   :  { %v5229_v18 = vpop.eup %5228 }
  0xde   :  { %v280_v19 = vadd.f32 1.0, %v5229_v18  ;;  %v5733_v59 = vpop.f32.mrf.mxu0 }
  0xe0   :  { %5230 = vrcp.f32 %v280_v19 }
  0xed   :  { %v5231_v20 = vpop.eup %5230 }
  0xee   :  { %v284_v23 = vmul.f32 0.0, %v5231_v20 }
 0x14e   :  { %v287_v21 = vpop.permute.xlu0 %286 }
 0x14f   :  { %v289_v22 = vmul.f32 %v5231_v20, %v287_v21 }
 0x151   :  { %291 = vrot.lane.b32.xlu0 %v289_v22, %s5529_s3 }
 0x1c3   :  { %v292_v24 = vpop.permute.xlu0 %291 }
 0x1c4   :  { %v294_v25 = vadd.f32 %v292_v24, %v284_v23 }
 0x1c6   :  { %5232 = vtanh.f32 %v294_v25 }
 0x1d3   :  { %v5233_v26 = vpop.eup %5232 }
 0x1d4   :  { %297 = vrot.lane.b32.xlu1 %v5233_v26, %s5528_s19 }
 0x246   :  { %v298_v27 = vpop.permute.xlu1 %297 }
 0x247   :  { %v300_v28 = vmul.f32 %v5231_v20, %v298_v27  ;;  %v170_v20 = vadd.f32 %v4755_v54, %v5665_v10 }
 0x249   :  { %302 = vrot.lane.b32.xlu1 %v300_v28, %s5529_s3 }
 0x2bb   :  { %v303_v29 = vpop.permute.xlu1 %302 }
 0x2bc   :  { %305 = vst.msk [vmem:[#allocation2] sm:$0xff] %vm202_vm2, %v303_v29  ;;  %4782 = vmatmul.mubr.msk.f32.vlgmr.msra.gmra.mxu1 %vm202_vm2, %v303_v29 }
 0x2bd   :  { %4796 = vmatpush3.msra.mxu1 %v5603_v1  ;;  %4803 = vmatprep.mubr.msk.f32.mxu1 %vm5527_vm1, %v5526_v3 }
 0x2be   :  { %4797 = vmatprep.subr.mxu1 %v5526_v3 }
 0x2bf   :  { %4798 = vmatpush3.msra.mxu1 %v5616_v5 }
 0x2c0   :  { %4799 = vmatprep.subr.mxu1 %v5526_v3 }
 0x2c1   :  { %4800 = vmatpush3.msra.mxu1 %v5626_v7 }
 0x2c2   :  { %4801 = vmatprep.subr.mxu1 %v5526_v3 }
 0x2c3   :  { %4802 = vmatpush3.msra.mxu1 %v5634_v8 }
 0x2c4   :  { %4817 = vmatprep.subr.mxu1 %v5526_v3 }
 0x37c   :  { %v375_v31 = vpop.f32.mrf.mxu1 }
 0x37d   :  { %v379_v32 = vadd.f32 %v375_v31, %v160_v30 }
 0x37e   :  { %v4783_v33 = vpop.f32.mrf.mxu1 }
 0x37f   :  { %5234 = vtanh.f32 %v379_v32  ;;  %v4377_v35 = vmul.f32 -1.442695, %v379_v32 }
 0x381   :  { %5236 = vpow2.f32 %v4377_v35 }
 0x38c   :  { %v5235_v34 = vpop.eup %5234 }
 0x38d   :  { %389 = vrot.lane.b32.xlu0 %v5235_v34, %s5528_s19 }
 0x38e   :  { %v5237_v36 = vpop.eup %5236 }
 0x38f   :  { %v383_v37 = vadd.f32 1.0, %v5237_v36 }
 0x391   :  { %5238 = vrcp.f32 %v383_v37 }
 0x39e   :  { %v5239_v38 = vpop.eup %5238 }
 0x39f   :  { %v387_v41 = vmul.f32 %v5239_v38, %v294_v25 }
 0x3ff   :  { %v390_v39 = vpop.permute.xlu0 %389 }
 0x400   :  { %v392_v40 = vmul.f32 %v5239_v38, %v390_v39 }
 0x402   :  { %394 = vrot.lane.b32.xlu1 %v392_v40, %s5529_s3 }
 0x474   :  { %v395_v42 = vpop.permute.xlu1 %394 }
 0x475   :  { %v397_v43 = vadd.f32 %v395_v42, %v387_v41 }
 0x477   :  { %5240 = vtanh.f32 %v397_v43 }
 0x484   :  { %v5241_v50 = vpop.eup %5240 }
 0x485   :  { %400 = vrot.lane.b32.xlu0 %v5241_v50, %s5528_s19 }
 0x4f7   :  { %v401_v51 = vpop.permute.xlu0 %400 }
 0x4f8   :  { %v403_v52 = vmul.f32 %v5239_v38, %v401_v51  ;;  %v175_v38 = vadd.f32 %v5665_v10, %v5729_v57 }
 0x4fa   :  { %405 = vrot.lane.b32.xlu1 %v403_v52, %s5529_s3 }
 0x56c   :  { %v406_v53 = vpop.permute.xlu1 %405 }
 0x56d   :  { %408 = vst.msk [vmem:[#allocation2 + $0x8] sm:$0xff] %vm202_vm2, %v406_v53  ;;  %4793 = vmatmul.mubr.msk.f32.vlgmr.msra.gmra.mxu0 %vm202_vm2, %v406_v53 }
 0x56e   :  { %4807 = vmatpush3.msra.mxu0 %v5603_v1  ;;  %4814 = vmatprep.mubr.msk.f32.mxu0 %vm5527_vm1, %v5526_v3 }
 0x56f   :  { %4808 = vmatprep.subr.mxu0 %v5526_v3 }
 0x570   :  { %4809 = vmatpush3.msra.mxu0 %v5616_v5 }
 0x571   :  { %4810 = vmatprep.subr.mxu0 %v5526_v3 }
 0x572   :  { %4811 = vmatpush3.msra.mxu0 %v5626_v7 }
 0x573   :  { %4812 = vmatprep.subr.mxu0 %v5526_v3 }
 0x574   :  { %4813 = vmatpush3.msra.mxu0 %v5634_v8 }
 0x575   :  { %4828 = vmatprep.subr.mxu0 %v5526_v3 }
 0x62d   :  { %v478_v61 = vpop.f32.mrf.mxu0 }
 0x62e   :  { %v482_v62 = vadd.f32 %v478_v61, %v165_v60 }
 0x62f   :  { %v4794_v63 = vpop.f32.mrf.mxu0 }
 0x630   :  { %5242 = vtanh.f32 %v482_v62  ;;  %v4379_v2 = vmul.f32 -1.442695, %v482_v62 }
 0x632   :  { %5244 = vpow2.f32 %v4379_v2 }
 0x63d   :  { %v5243_v0 = vpop.eup %5242 }
 0x63e   :  { %492 = vrot.lane.b32.xlu0 %v5243_v0, %s5528_s19 }
 0x63f   :  { %v5245_v4 = vpop.eup %5244 }
 0x640   :  { %v486_v6 = vadd.f32 1.0, %v5245_v4 }
 0x642   :  { %5246 = vrcp.f32 %v486_v6 }
 0x64f   :  { %v5247_v9 = vpop.eup %5246 }
 0x650   :  { %v490_v13 = vmul.f32 %v5247_v9, %v397_v43 }
 0x6b0   :  { %v493_v11 = vpop.permute.xlu0 %492 }
 0x6b1   :  { %v495_v12 = vmul.f32 %v5247_v9, %v493_v11 }
 0x6b3   :  { %497 = vrot.lane.b32.xlu1 %v495_v12, %s5529_s3 }
 0x725   :  { %v498_v14 = vpop.permute.xlu1 %497 }
 0x726   :  { %v500_v15 = vadd.f32 %v498_v14, %v490_v13 }
 0x728   :  { %5248 = vtanh.f32 %v500_v15 }
 0x735   :  { %v5249_v16 = vpop.eup %5248 }
 0x736   :  { %503 = vrot.lane.b32.xlu0 %v5249_v16, %s5528_s19  ;;  %v1027_v16 = vld [vmem:[#allocation2] sm:$0xff] }
 0x7a8   :  { %v504_v17 = vpop.permute.xlu0 %503 }
 0x7a9   :  { %v506_v18 = vmul.f32 %v5247_v9, %v504_v17  ;;  %v1038_v9 = vld [vmem:[%s6623_s4 + $0x18] sm:$0xff]  ;;  %v1036_v17 = vld [vmem:[%s6623_s4 + $0x8] sm:$0xff] }
 0x7ab   :  { %508 = vrot.lane.b32.xlu1 %v506_v18, %s5529_s3  ;;  %v1035_v18 = vld [vmem:[%s6623_s4] sm:$0xff] }
 0x81d   :  { %v509_v19 = vpop.permute.xlu1 %508 }
 0x81e   :  { %511 = vst.msk [vmem:[#allocation2 + $0x10] sm:$0xff] %vm202_vm2, %v509_v19  ;;  %4804 = vmatmul.mubr.msk.f32.vlgmr.msra.gmra.mxu1 %vm202_vm2, %v509_v19  ;;  %v1028_v19 = vld [vmem:[#allocation2 + $0x8] sm:$0xff] }
 0x81f   :  { %4818 = vmatpush3.msra.mxu1 %v5603_v1  ;;  %4825 = vmatprep.mubr.msk.f32.mxu1 %vm5527_vm1, %v5526_v3 }
 0x820   :  { %4819 = vmatprep.subr.mxu1 %v5526_v3 }
 0x821   :  { %4820 = vmatpush3.msra.mxu1 %v5616_v5 }
 0x822   :  { %4821 = vmatprep.subr.mxu1 %v5526_v3 }
 0x823   :  { %4822 = vmatpush3.msra.mxu1 %v5626_v7 }
 0x824   :  { %4823 = vmatprep.subr.mxu1 %v5526_v3 }
 0x825   :  { %4824 = vmatpush3.msra.mxu1 %v5634_v8 }
 0x826   :  { %4839 = vmatprep.subr.mxu1 %v5526_v3 }
 0x8de   :  { %v581_v21 = vpop.f32.mrf.mxu1 }
 0x8df   :  { %v585_v22 = vadd.f32 %v581_v21, %v170_v20  ;;  %v1029_v20 = vld [vmem:[#allocation2 + $0x10] sm:$0xff] }
 0x8e0   :  { %v4805_v23 = vpop.f32.mrf.mxu1 }
 0x8e1   :  { %5250 = vtanh.f32 %v585_v22  ;;  %v4381_v25 = vmul.f32 -1.442695, %v585_v22 }
 0x8e3   :  { %5252 = vpow2.f32 %v4381_v25 }
 0x8ee   :  { %v5251_v24 = vpop.eup %5250 }
 0x8ef   :  { %595 = vrot.lane.b32.xlu0 %v5251_v24, %s5528_s19  ;;  %v185_v24 = vadd.f32 %v5665_v10, %v5733_v59 }
 0x8f0   :  { %v5253_v26 = vpop.eup %5252 }
 0x8f1   :  { %v589_v27 = vadd.f32 1.0, %v5253_v26 }
 0x8f3   :  { %5254 = vrcp.f32 %v589_v27 }
 0x900   :  { %v5255_v28 = vpop.eup %5254 }
 0x901   :  { %v593_v31 = vmul.f32 %v5255_v28, %v500_v15  ;;  %v1037_v15 = vld [vmem:[%s6623_s4 + $0x10] sm:$0xff] }
 0x961   :  { %v596_v29 = vpop.permute.xlu0 %595 }
 0x962   :  { %v598_v30 = vmul.f32 %v5255_v28, %v596_v29 }
 0x964   :  { %600 = vrot.lane.b32.xlu1 %v598_v30, %s5529_s3 }
 0x9d6   :  { %v601_v32 = vpop.permute.xlu1 %600 }
 0x9d7   :  { %v603_v33 = vadd.f32 %v601_v32, %v593_v31 }
 0x9d9   :  { %5256 = vtanh.f32 %v603_v33 }
 0x9e6   :  { %v5257_v34 = vpop.eup %5256 }
 0x9e7   :  { %606 = vrot.lane.b32.xlu0 %v5257_v34, %s5528_s19 }
 0xa59   :  { %v607_v35 = vpop.permute.xlu0 %606 }
 0xa5a   :  { %v609_v36 = vmul.f32 %v5255_v28, %v607_v35 }
 0xa5c   :  { %611 = vrot.lane.b32.xlu1 %v609_v36, %s5529_s3 }
 0xace   :  { %v612_v37 = vpop.permute.xlu1 %611 }
 0xacf   :  { %614 = vst.msk [vmem:[#allocation2 + $0x18] sm:$0xff] %vm202_vm2, %v612_v37  ;;  %4815 = vmatmul.mubr.msk.f32.vlgmr.msra.gmra.mxu0 %vm202_vm2, %v612_v37 }
 0xad0   :  { %4829 = vmatpush3.msra.mxu0 %v5603_v1  ;;  %4836 = vmatprep.mubr.msk.f32.mxu0 %vm5527_vm1, %v5526_v3 }
 0xad1   :  { %4830 = vmatprep.subr.mxu0 %v5526_v3 }
 0xad2   :  { %4831 = vmatpush3.msra.mxu0 %v5616_v5 }
 0xad3   :  { %4832 = vmatprep.subr.mxu0 %v5526_v3 }
 0xad4   :  { %4833 = vmatpush3.msra.mxu0 %v5626_v7 }
 0xad5   :  { %4834 = vmatprep.subr.mxu0 %v5526_v3 }
 0xad6   :  { %4835 = vmatpush3.msra.mxu0 %v5634_v8  ;;  %v1030_v21 = vld [vmem:[#allocation2 + $0x18] sm:$0xff] }
 0xad7   :  { %4850 = vmatprep.subr.mxu0 %v1038_v9 }
 0xb8f   :  { %v684_v39 = vpop.f32.mrf.mxu0 }
 0xb90   :  { %v688_v40 = vadd.f32 %v684_v39, %v175_v38  ;;  %v5824_v38 = vld [vmem:[%s6624_s5 + $0x18] sm:$0xff]  ;;  %v5830_v39 = vld [vmem:[%s6624_s5 + $0x10] sm:$0xff] }
 0xb91   :  { %v4816_v41 = vpop.f32.mrf.mxu0 }
 0xb92   :  { %5258 = vtanh.f32 %v688_v40  ;;  %v4383_v43 = vmul.f32 -1.442695, %v688_v40  ;;  %v5837_v40 = vld [vmem:[%s6624_s5 + $0x8] sm:$0xff]  ;;  %v5844_v41 = vld [vmem:[%s6624_s5] sm:$0xff] }
 0xb94   :  { %5260 = vpow2.f32 %v4383_v43 }
 0xb9f   :  { %v5259_v42 = vpop.eup %5258 }
 0xba0   :  { %698 = vrot.lane.b32.xlu0 %v5259_v42, %s5528_s19 }
 0xba1   :  { %v5261_v44 = vpop.eup %5260 }
 0xba2   :  { %v692_v45 = vadd.f32 1.0, %v5261_v44 }
 0xba4   :  { %5262 = vrcp.f32 %v692_v45 }
 0xbb1   :  { %v5263_v46 = vpop.eup %5262 }
 0xbb2   :  { %v696_v49 = vmul.f32 %v5263_v46, %v603_v33 }
 0xc12   :  { %v699_v47 = vpop.permute.xlu0 %698 }
 0xc13   :  { %v701_v48 = vmul.f32 %v5263_v46, %v699_v47 }
 0xc15   :  { %703 = vrot.lane.b32.xlu1 %v701_v48, %s5529_s3 }
 0xc87   :  { %v704_v50 = vpop.permute.xlu1 %703 }
 0xc88   :  { %v706_v51 = vadd.f32 %v704_v50, %v696_v49 }
 0xc8a   :  { %5264 = vtanh.f32 %v706_v51 }
 0xc97   :  { %v5265_v52 = vpop.eup %5264 }
 0xc98   :  { %709 = vrot.lane.b32.xlu0 %v5265_v52, %s5528_s19  ;;  %v5881_v52 = vld [vmem:[%s6625_s6] ss:$0 sm:$0xff] }
 0xd0a   :  { %v710_v53 = vpop.permute.xlu0 %709 }
 0xd0b   :  { %v712_v54 = vmul.f32 %v5263_v46, %v710_v53  ;;  %v190_v46 = vadd.f32 %v5731_v58, %v5665_v10 }
 0xd0d   :  { %714 = vrot.lane.b32.xlu1 %v712_v54, %s5529_s3 }
 0xd7f   :  { %v715_v55 = vpop.permute.xlu1 %714 }
 0xd80   :  { %717 = vst.msk [vmem:[#allocation2 + $0x20] sm:$0xff] %vm202_vm2, %v715_v55  ;;  %4826 = vmatmul.mubr.msk.f32.vlgmr.msra.gmra.mxu1 %vm202_vm2, %v715_v55 }
 0xd81   :  { %4840 = vmatpush3.msra.mxu1 %v5603_v1  ;;  %4847 = vmatprep.mubr.msk.f32.mxu1 %vm5527_vm1, %v5526_v3  ;;  %v180_v1 = vadd.f32 %v5727_v56, %v5665_v10 }
 0xd82   :  { %4841 = vmatprep.subr.mxu1 %v5526_v3 }
 0xd83   :  { %4842 = vmatpush3.msra.mxu1 %v5616_v5 }
 0xd84   :  { %4843 = vmatprep.subr.mxu1 %v5526_v3 }
 0xd85   :  { %4844 = vmatpush3.msra.mxu1 %v5626_v7 }
 0xd86   :  { %4845 = vmatprep.subr.mxu1 %v5526_v3 }
 0xd87   :  { %4846 = vmatpush3.msra.mxu1 %v5634_v8  ;;  %v1031_v22 = vld [vmem:[#allocation2 + $0x20] sm:$0xff] }
 0xd88   :  { %4870 = vmatprep.subr.mxu1 %v5526_v3 }
 0xe40   :  { %v787_v57 = vpop.f32.mrf.mxu1 }
 0xe41   :  { %v791_v60 = vadd.f32 %v787_v57, %v180_v1 }
 0xe42   :  { %v4827_v61 = vpop.f32.mrf.mxu1 }
 0xe43   :  { %5266 = vtanh.f32 %v791_v60  ;;  %v4385_v5 = vmul.f32 -1.442695, %v791_v60 }
 0xe45   :  { %5268 = vpow2.f32 %v4385_v5 }
 0xe50   :  { %v5267_v62 = vpop.eup %5266 }
 0xe51   :  { %801 = vrot.lane.b32.xlu0 %v5267_v62, %s5528_s19 }
 0xe52   :  { %v5269_v63 = vpop.eup %5268 }
 0xe53   :  { %v795_v7 = vadd.f32 1.0, %v5269_v63 }
 0xe55   :  { %5270 = vrcp.f32 %v795_v7 }
 0xe62   :  { %v5271_v0 = vpop.eup %5270 }
 0xe63   :  { %v799_v4 = vmul.f32 %v5271_v0, %v706_v51 }
 0xec3   :  { %v802_v2 = vpop.permute.xlu0 %801 }
 0xec4   :  { %v804_v8 = vmul.f32 %v5271_v0, %v802_v2 }
 0xec6   :  { %806 = vrot.lane.b32.xlu1 %v804_v8, %s5529_s3 }
 0xf38   :  { %v807_v6 = vpop.permute.xlu1 %806 }
 0xf39   :  { %v809_v56 = vadd.f32 %v807_v6, %v799_v4 }
 0xf3b   :  { %5272 = vtanh.f32 %v809_v56 }
 0xf48   :  { %v5273_v11 = vpop.eup %5272 }
 0xf49   :  { %812 = vrot.lane.b32.xlu0 %v5273_v11, %s5528_s19 }
 0xfbb   :  { %v813_v12 = vpop.permute.xlu0 %812 }
 0xfbc   :  { %v815_v13 = vmul.f32 %v5271_v0, %v813_v12 }
 0xfbe   :  { %817 = vrot.lane.b32.xlu1 %v815_v13, %s5529_s3 }
0x1030   :  { %v818_v14 = vpop.permute.xlu1 %817 }
0x1031   :  { %820 = vst.msk [vmem:[#allocation2 + $0x28] sm:$0xff] %vm202_vm2, %v818_v14  ;;  %4837 = vmatmul.mubr.msk.f32.vlgmr.msra.gmra.mxu0 %vm202_vm2, %v818_v14 }
0x1032   :  { %4851 = vmatpush3.msra.mxu0 %v1038_v9  ;;  %4858 = vmatprep.mubr.msk.f32.mxu0 %vm202_vm2, %v1027_v16 }
0x1033   :  { %4852 = vmatprep.subr.mxu0 %v1037_v15 }
0x1034   :  { %4853 = vmatpush3.msra.mxu0 %v1037_v15 }
0x1035   :  { %4854 = vmatprep.subr.mxu0 %v1036_v17 }
0x1036   :  { %4855 = vmatpush3.msra.mxu0 %v1036_v17 }
0x1037   :  { %4856 = vmatprep.subr.mxu0 %v1035_v18 }
0x1038   :  { %4857 = vmatpush3.msra.mxu0 %v1035_v18  ;;  %v1032_v23 = vld [vmem:[#allocation2 + $0x28] sm:$0xff] }
0x1039   :  { %4859 = vmatmul.mubr.msk.f32.vlgmr.msra.gmra.mxu0 %vm202_vm2, %v1028_v19  ;;  %4892 = vmatprep.subr.mxu0 %v5526_v3 }
0x103a   :  { %4861 = vmatprep.mubr.msk.f32.mxu0 %vm202_vm2, %v1029_v20  ;;  %4893 = vmatpush3.msra.mxu0 %v5824_v38 }
0x103b   :  { %4894 = vmatprep.subr.mxu0 %v5526_v3 }
0x103c   :  { %4895 = vmatpush3.msra.mxu0 %v5830_v39 }
0x103d   :  { %4862 = vmatmul.mubr.msk.f32.gmra.mxu0 %vm202_vm2, %v1030_v21  ;;  %4896 = vmatprep.subr.mxu0 %v5526_v3 }
0x103e   :  { %4864 = vmatprep.mubr.msk.f32.mxu0 %vm202_vm2, %v1031_v22  ;;  %4897 = vmatpush3.msra.mxu0 %v5837_v40 }
0x103f   :  { %4898 = vmatprep.subr.mxu0 %v5526_v3 }
0x1040   :  { %4899 = vmatpush3.msra.mxu0 %v5844_v41 }
0x1041   :  { %4865 = vmatmul.mubr.msk.f32.gmra.mxu0 %vm202_vm2, %v1032_v23  ;;  %4914 = vmatprep.subr.mxu0 %v5526_v3 }
0x10f1   :  { %v890_v25 = vpop.f32.mrf.mxu0 }
0x10f2   :  { %v894_v26 = vadd.f32 %v890_v25, %v185_v24 }
0x10f3   :  { %v4838_v27 = vpop.f32.mrf.mxu0 }
0x10f4   :  { %5274 = vtanh.f32 %v894_v26  ;;  %v4387_v29 = vmul.f32 -1.442695, %v894_v26 }
0x10f6   :  { %5276 = vpow2.f32 %v4387_v29 }
0x10f9   :  { %v5876_v47 = vpop.f32.mrf.mxu0 }
0x10fa   :  { %v1146_v22 = vadd.f32 %v5876_v47, %v5881_v52 }
0x10fb   :  { %v1140_v51 = vpop.f32.mrf.mxu0 }
0x10fc   :  { %v1141_v53 = vadd.f32 %v5881_v52, %v1140_v51 }
0x1101   :  { %v5275_v28 = vpop.eup %5274 }
0x1102   :  { %904 = vrot.lane.b32.xlu0 %v5275_v28, %s5528_s19 }
0x1103   :  { %v5277_v30 = vpop.eup %5276 }
0x1104   :  { %v898_v31 = vadd.f32 1.0, %v5277_v30 }
0x1106   :  { %5278 = vrcp.f32 %v898_v31 }
0x1113   :  { %v5279_v32 = vpop.eup %5278 }
0x1114   :  { %v902_v35 = vmul.f32 %v5279_v32, %v809_v56 }
0x1174   :  { %v905_v33 = vpop.permute.xlu0 %904 }
0x1175   :  { %v907_v34 = vmul.f32 %v5279_v32, %v905_v33 }
0x1177   :  { %909 = vrot.lane.b32.xlu1 %v907_v34, %s5529_s3 }
0x11e9   :  { %v910_v36 = vpop.permute.xlu1 %909 }
0x11ea   :  { %v5817_v59 = vadd.f32 %v910_v36, %v902_v35 }
0x11ec   :  { %5280 = vtanh.f32 %v5817_v59 }
0x11f9   :  { %v5281_v37 = vpop.eup %5280 }
0x11fa   :  { %915 = vrot.lane.b32.xlu0 %v5281_v37, %s5528_s19 }
0x126c   :  { %v916_v42 = vpop.permute.xlu0 %915 }
0x126d   :  { %v918_v43 = vmul.f32 %v5279_v32, %v916_v42 }
0x126f   :  { %920 = vrot.lane.b32.xlu1 %v918_v43, %s5529_s3 }
0x12e1   :  { %v921_v44 = vpop.permute.xlu1 %920 }
0x12e2   :  { %923 = vst.msk [vmem:[#allocation2 + $0x30] sm:$0xff] %vm202_vm2, %v921_v44  ;;  %4848 = vmatmul.mubr.msk.f32.vlgmr.msra.gmra.mxu1 %vm202_vm2, %v921_v44 }
0x12e3   :  { %4871 = vmatpush3.msra.mxu1 %v5824_v38  ;;  %4878 = vmatprep.mubr.msk.f32.mxu1 %vm5527_vm1, %v5526_v3 }
0x12e4   :  { %4872 = vmatprep.subr.mxu1 %v5526_v3 }
0x12e5   :  { %4873 = vmatpush3.msra.mxu1 %v5830_v39 }
0x12e6   :  { %4874 = vmatprep.subr.mxu1 %v5526_v3 }
0x12e7   :  { %4875 = vmatpush3.msra.mxu1 %v5837_v40 }
0x12e8   :  { %4876 = vmatprep.subr.mxu1 %v5526_v3 }
0x12e9   :  { %4877 = vmatpush3.msra.mxu1 %v5844_v41  ;;  %v1033_v45 = vld [vmem:[#allocation2 + $0x30] sm:$0xff] }
0x12ea   :  { %4879 = vmatmul.mubr.f32.vlgmr.msra.gmra.mxu1 %v5526_v3  ;;  %4867 = vmatprep.mubr.msk.f32.mxu0 %vm202_vm2, %v1033_v45  ;;  %v4863_v45 = vpop.f32.mrf.mxu0 }
0x12eb   :  { %4881 = vmatprep.subr.mxu1 %v5526_v3  ;;  %4889 = vmatprep.mubr.msk.f32.mxu1 %vm5527_vm1, %v5526_v3 }
0x12ec   :  { %4882 = vmatpush3.msra.mxu1 %v5824_v38 }
0x12ed   :  { %4883 = vmatprep.subr.mxu1 %v5526_v3 }
0x12ee   :  { %4884 = vmatpush3.msra.mxu1 %v5830_v39 }
0x12ef   :  { %4885 = vmatprep.subr.mxu1 %v5526_v3 }
0x12f0   :  { %4886 = vmatpush3.msra.mxu1 %v5837_v40 }
0x12f1   :  { %4887 = vmatprep.subr.mxu1 %v5526_v3 }
0x12f2   :  { %4888 = vmatpush3.msra.mxu1 %v5844_v41 }
0x12f3   :  { %4903 = vmatprep.subr.mxu1 %v5526_v3 }
0x13a2   :  { %v993_v48 = vpop.f32.mrf.mxu1 }
0x13a3   :  { %v997_v49 = vadd.f32 %v993_v48, %v190_v46  ;;  %v1150_v46 = vpop.f32.mrf.mxu0 }
0x13a4   :  { %v4849_v50 = vpop.f32.mrf.mxu1  ;;  %v1151_v51 = vadd.f32 %v5881_v52, %v1150_v46 }
0x13a5   :  { %v4389_v4 = vmul.f32 -1.442695, %v997_v49  ;;  %v5927_v47 = vpop.f32.mrf.mxu0 }
0x13a7   :  { %v5929_v48 = vpop.f32.mrf.mxu0 }
0x13aa   :  { %v1254_v54 = vpop.f32.mrf.mxu1 }
0x13ab   :  { %v1258_v55 = vadd.f32 %v1254_v54, %v1141_v53 }
0x13ac   :  { %v4880_v1 = vpop.f32.mrf.mxu1 }
0x13ad   :  { %5282 = vtanh.f32 %v1258_v55  ;;  %v4399_v10 = vmul.f32 -1.442695, %v1258_v55 }
0x13af   :  { %5284 = vpow2.f32 %v4399_v10 }
0x13ba   :  { %v5283_v57 = vpop.eup %5282 }
0x13bb   :  { %1268 = vrot.lane.b32.xlu0 %v5283_v57, %s5528_s19 }
0x13bc   :  { %v5285_v58 = vpop.eup %5284 }
0x13bd   :  { %v1262_v60 = vadd.f32 1.0, %v5285_v58 }
0x13bf   :  { %5286 = vrcp.f32 %v1262_v60 }
0x13cc   :  { %v5287_v61 = vpop.eup %5286 }
0x13cd   :  { %v1266_v63 = vmul.f32 0.0, %v5287_v61 }
0x142d   :  { %v1269_v62 = vpop.permute.xlu0 %1268 }
0x142e   :  { %v1271_v5 = vmul.f32 %v5287_v61, %v1269_v62 }
0x1430   :  { %1273 = vrot.lane.b32.xlu1 %v1271_v5, %s5529_s3 }
0x14a2   :  { %v1274_v7 = vpop.permute.xlu1 %1273 }
0x14a3   :  { %v1276_v0 = vadd.f32 %v1274_v7, %v1266_v63 }
0x14a5   :  { %5288 = vtanh.f32 %v1276_v0 }
0x14a6   :  { %5290 = vtanh.f32 %v997_v49 }
0x14a7   :  { %5292 = vpow2.f32 %v4389_v4 }
0x14b2   :  { %v5289_v2 = vpop.eup %5288 }
0x14b3   :  { %1279 = vrot.lane.b32.xlu0 %v5289_v2, %s5528_s19  ;;  %v5291_v8 = vpop.eup %5290 }
0x14b4   :  { %v5293_v6 = vpop.eup %5292 }
0x14b5   :  { %v1001_v56 = vadd.f32 1.0, %v5293_v6  ;;  %v1156_v6 = vadd.f32 %v4863_v45, %v5881_v52 }
0x14b7   :  { %1007 = vrot.lane.b32.xlu0 %v5291_v8, %s5528_s19  ;;  %5294 = vrcp.f32 %v1001_v56 }
0x14c4   :  { %v5295_v12 = vpop.eup %5294 }
0x14c5   :  { %v1005_v16 = vmul.f32 %v5295_v12, %v5817_v59 }
0x1525   :  { %v1280_v9 = vpop.permute.xlu0 %1279 }
0x1526   :  { %v1282_v11 = vmul.f32 %v5287_v61, %v1280_v9 }
0x1528   :  { %1284 = vrot.lane.b32.xlu1 %v1282_v11, %s5529_s3 }
0x1529   :  { %v1008_v13 = vpop.permute.xlu0 %1007 }
0x152a   :  { %v1010_v14 = vmul.f32 %v5295_v12, %v1008_v13 }
0x152c   :  { %1012 = vrot.lane.b32.xlu0 %v1010_v14, %s5529_s3 }
0x159a   :  { %v1285_v15 = vpop.permute.xlu1 %1284 }
0x159b   :  { %1287 = vst.msk [vmem:[#allocation2] sm:$0xff] %vm202_vm2, %v1285_v15  ;;  %4890 = vmatmul.mubr.msk.f32.vlgmr.msra.gmra.mxu1 %vm202_vm2, %v1285_v15 }
0x159c   :  { %4904 = vmatpush3.msra.mxu1 %v5824_v38  ;;  %4911 = vmatprep.mubr.msk.f32.mxu1 %vm5527_vm1, %v5526_v3 }
0x159d   :  { %4905 = vmatprep.subr.mxu1 %v5526_v3 }
0x159e   :  { %v1013_v17 = vpop.permute.xlu0 %1012  ;;  %4906 = vmatpush3.msra.mxu1 %v5830_v39 }
0x159f   :  { %v1015_v18 = vadd.f32 %v1013_v17, %v1005_v16  ;;  %4907 = vmatprep.subr.mxu1 %v5526_v3 }
0x15a0   :  { %4908 = vmatpush3.msra.mxu1 %v5837_v40 }
0x15a1   :  { %5296 = vtanh.f32 %v1015_v18  ;;  %4909 = vmatprep.subr.mxu1 %v5526_v3 }
0x15a2   :  { %4910 = vmatpush3.msra.mxu1 %v5844_v41 }
0x15a3   :  { %4925 = vmatprep.subr.mxu1 %v5526_v3 }
0x15ae   :  { %v5297_v19 = vpop.eup %5296 }
0x15af   :  { %1018 = vrot.lane.b32.xlu0 %v5297_v19, %s5528_s19 }
0x1621   :  { %v1019_v20 = vpop.permute.xlu0 %1018 }
0x1622   :  { %v1021_v21 = vmul.f32 %v5295_v12, %v1019_v20 }
0x1624   :  { %1023 = vrot.lane.b32.xlu0 %v1021_v21, %s5529_s3 }
0x165b   :  { %v1357_v23 = vpop.f32.mrf.mxu1 }
0x165c   :  { %v1361_v24 = vadd.f32 %v1357_v23, %v1146_v22 }
0x165d   :  { %v4891_v25 = vpop.f32.mrf.mxu1 }
0x165e   :  { %5298 = vtanh.f32 %v1361_v24  ;;  %v4401_v29 = vmul.f32 -1.442695, %v1361_v24 }
0x1660   :  { %5300 = vpow2.f32 %v4401_v29 }
0x166b   :  { %v5299_v26 = vpop.eup %5298 }
0x166c   :  { %1371 = vrot.lane.b32.xlu1 %v5299_v26, %s5528_s19  ;;  %v1161_v26 = vadd.f32 %v5881_v52, %v5929_v48 }
0x166d   :  { %v5301_v30 = vpop.eup %5300 }
0x166e   :  { %v1365_v31 = vadd.f32 1.0, %v5301_v30 }
0x1670   :  { %5302 = vrcp.f32 %v1365_v31 }
0x167d   :  { %v5303_v32 = vpop.eup %5302 }
0x167e   :  { %v1369_v35 = vmul.f32 %v5303_v32, %v1276_v0 }
0x1696   :  { %v1024_v27 = vpop.permute.xlu0 %1023 }
0x1697   :  { %1026 = vst.msk [vmem:[#allocation2 + $0x38] sm:$0xff] %vm202_vm2, %v1024_v27 }
0x169e   :  { %v1034_v28 = vld [vmem:[#allocation2 + $0x38] sm:$0xff] }
0x169f   :  { %4868 = vmatmul.mubr.msk.f32.gmra.mxu0 %vm202_vm2, %v1034_v28 }
0x16a0   :  { %4900 = vmatprep.mubr.msk.f32.mxu0 %vm5527_vm1, %v5526_v3 }
0x16de   :  { %v1372_v33 = vpop.permute.xlu1 %1371 }
0x16df   :  { %v1374_v34 = vmul.f32 %v5303_v32, %v1372_v33 }
0x16e1   :  { %1376 = vrot.lane.b32.xlu1 %v1374_v34, %s5529_s3 }
0x1753   :  { %v1377_v36 = vpop.permute.xlu1 %1376 }
0x1754   :  { %v1379_v59 = vadd.f32 %v1377_v36, %v1369_v35 }
0x1756   :  { %5304 = vtanh.f32 %v1379_v59 }
0x175f   :  { %v5931_v49 = vpop.f32.mrf.mxu0 }
0x1761   :  { %v5933_v50 = vpop.f32.mrf.mxu0 }
0x1763   :  { %v5305_v37 = vpop.eup %5304 }
0x1764   :  { %1382 = vrot.lane.b32.xlu1 %v5305_v37, %s5528_s19 }
0x17d6   :  { %v1383_v42 = vpop.permute.xlu1 %1382 }
0x17d7   :  { %v1385_v43 = vmul.f32 %v5303_v32, %v1383_v42 }
0x17d9   :  { %1387 = vrot.lane.b32.xlu1 %v1385_v43, %s5529_s3 }
0x184b   :  { %v1388_v44 = vpop.permute.xlu1 %1387 }
0x184c   :  { %1390 = vst.msk [vmem:[#allocation2 + $0x8] sm:$0xff] %vm202_vm2, %v1388_v44  ;;  %4901 = vmatmul.mubr.msk.f32.vlgmr.msra.gmra.mxu0 %vm202_vm2, %v1388_v44 }
0x184d   :  { %4915 = vmatpush3.msra.mxu0 %v5824_v38  ;;  %4922 = vmatprep.mubr.msk.f32.mxu0 %vm5527_vm1, %v5526_v3 }
0x184e   :  { %4916 = vmatprep.subr.mxu0 %v5526_v3 }
0x184f   :  { %4917 = vmatpush3.msra.mxu0 %v5830_v39 }
0x1850   :  { %4918 = vmatprep.subr.mxu0 %v5526_v3 }
0x1851   :  { %4919 = vmatpush3.msra.mxu0 %v5837_v40 }
0x1852   :  { %4920 = vmatprep.subr.mxu0 %v5526_v3 }
0x1853   :  { %4921 = vmatpush3.msra.mxu0 %v5844_v41 }
0x1854   :  { %4936 = vmatprep.subr.mxu0 %v5526_v3 }
0x190c   :  { %v1460_v53 = vpop.f32.mrf.mxu0 }
0x190d   :  { %v1464_v54 = vadd.f32 %v1460_v53, %v1151_v51 }
0x190e   :  { %v4902_v55 = vpop.f32.mrf.mxu0 }
0x190f   :  { %5306 = vtanh.f32 %v1464_v54  ;;  %v4403_v57 = vmul.f32 -1.442695, %v1464_v54 }
0x1911   :  { %5308 = vpow2.f32 %v4403_v57 }
0x191c   :  { %v5307_v1 = vpop.eup %5306 }
0x191d   :  { %1474 = vrot.lane.b32.xlu0 %v5307_v1, %s5528_s19 }
0x191e   :  { %v5309_v10 = vpop.eup %5308 }
0x191f   :  { %v1468_v58 = vadd.f32 1.0, %v5309_v10 }
0x1921   :  { %5310 = vrcp.f32 %v1468_v58 }
0x192e   :  { %v5311_v60 = vpop.eup %5310 }
0x192f   :  { %v1472_v5 = vmul.f32 %v5311_v60, %v1379_v59 }
0x198f   :  { %v1475_v61 = vpop.permute.xlu0 %1474 }
0x1990   :  { %v1477_v62 = vmul.f32 %v5311_v60, %v1475_v61 }
0x1992   :  { %1479 = vrot.lane.b32.xlu1 %v1477_v62, %s5529_s3 }
0x1a04   :  { %v1480_v63 = vpop.permute.xlu1 %1479 }
0x1a05   :  { %v1482_v7 = vadd.f32 %v1480_v63, %v1472_v5 }
0x1a07   :  { %5312 = vtanh.f32 %v1482_v7 }
0x1a14   :  { %v5313_v0 = vpop.eup %5312 }
0x1a15   :  { %1485 = vrot.lane.b32.xlu0 %v5313_v0, %s5528_s19  ;;  %v2009_v0 = vld [vmem:[#allocation2] sm:$0xff] }
0x1a87   :  { %v1486_v2 = vpop.permute.xlu0 %1485 }
0x1a88   :  { %v1488_v8 = vmul.f32 %v5311_v60, %v1486_v2  ;;  %v4417_v60 = vld [vmem:[%s6623_s4 + $0x38] sm:$0xff]  ;;  %v4415_v2 = vld [vmem:[%s6623_s4 + $0x28] sm:$0xff] }
0x1a8a   :  { %1490 = vrot.lane.b32.xlu1 %v1488_v8, %s5529_s3  ;;  %v4414_v8 = vld [vmem:[%s6623_s4 + $0x20] sm:$0xff] }
0x1afc   :  { %v1491_v4 = vpop.permute.xlu1 %1490 }
0x1afd   :  { %1493 = vst.msk [vmem:[#allocation2 + $0x10] sm:$0xff] %vm202_vm2, %v1491_v4  ;;  %4912 = vmatmul.mubr.msk.f32.vlgmr.msra.gmra.mxu1 %vm202_vm2, %v1491_v4  ;;  %v2010_v4 = vld [vmem:[#allocation2 + $0x8] sm:$0xff] }
0x1afe   :  { %4926 = vmatpush3.msra.mxu1 %v5824_v38  ;;  %4933 = vmatprep.mubr.msk.f32.mxu1 %vm5527_vm1, %v5526_v3 }
0x1aff   :  { %4927 = vmatprep.subr.mxu1 %v5526_v3 }
0x1b00   :  { %4928 = vmatpush3.msra.mxu1 %v5830_v39 }
0x1b01   :  { %4929 = vmatprep.subr.mxu1 %v5526_v3 }
0x1b02   :  { %4930 = vmatpush3.msra.mxu1 %v5837_v40 }
0x1b03   :  { %4931 = vmatprep.subr.mxu1 %v5526_v3 }
0x1b04   :  { %4932 = vmatpush3.msra.mxu1 %v5844_v41 }
0x1b05   :  { %4947 = vmatprep.subr.mxu1 %v5526_v3 }
0x1bbd   :  { %v1563_v56 = vpop.f32.mrf.mxu1 }
0x1bbe   :  { %v1567_v9 = vadd.f32 %v1563_v56, %v1156_v6  ;;  %v2011_v6 = vld [vmem:[#allocation2 + $0x10] sm:$0xff] }
0x1bbf   :  { %v4913_v11 = vpop.f32.mrf.mxu1 }
0x1bc0   :  { %5314 = vtanh.f32 %v1567_v9  ;;  %v4405_v13 = vmul.f32 -1.442695, %v1567_v9 }
0x1bc2   :  { %5316 = vpow2.f32 %v4405_v13 }
0x1bcd   :  { %v5315_v12 = vpop.eup %5314 }
0x1bce   :  { %1577 = vrot.lane.b32.xlu0 %v5315_v12, %s5528_s19  ;;  %v1171_v12 = vadd.f32 %v5881_v52, %v5933_v50 }
0x1bcf   :  { %v5317_v14 = vpop.eup %5316 }
0x1bd0   :  { %v1571_v15 = vadd.f32 1.0, %v5317_v14 }
0x1bd2   :  { %5318 = vrcp.f32 %v1571_v15 }
0x1bdf   :  { %v5319_v16 = vpop.eup %5318 }
0x1be0   :  { %v1575_v19 = vmul.f32 %v5319_v16, %v1482_v7  ;;  %v4416_v7 = vld [vmem:[%s6623_s4 + $0x30] sm:$0xff] }
0x1c40   :  { %v1578_v17 = vpop.permute.xlu0 %1577 }
0x1c41   :  { %v1580_v18 = vmul.f32 %v5319_v16, %v1578_v17 }
0x1c43   :  { %1582 = vrot.lane.b32.xlu1 %v1580_v18, %s5529_s3 }
0x1cb5   :  { %v1583_v20 = vpop.permute.xlu1 %1582 }
0x1cb6   :  { %v1585_v21 = vadd.f32 %v1583_v20, %v1575_v19 }
0x1cb8   :  { %5320 = vtanh.f32 %v1585_v21 }
0x1cc5   :  { %v5321_v22 = vpop.eup %5320 }
0x1cc6   :  { %1588 = vrot.lane.b32.xlu0 %v5321_v22, %s5528_s19 }
0x1d38   :  { %v1589_v23 = vpop.permute.xlu0 %1588 }
0x1d39   :  { %v1591_v24 = vmul.f32 %v5319_v16, %v1589_v23 }
0x1d3b   :  { %1593 = vrot.lane.b32.xlu1 %v1591_v24, %s5529_s3 }
0x1dad   :  { %v1594_v25 = vpop.permute.xlu1 %1593 }
0x1dae   :  { %1596 = vst.msk [vmem:[#allocation2 + $0x18] sm:$0xff] %vm202_vm2, %v1594_v25  ;;  %4923 = vmatmul.mubr.msk.f32.vlgmr.msra.gmra.mxu0 %vm202_vm2, %v1594_v25 }
0x1daf   :  { %4937 = vmatpush3.msra.mxu0 %v5824_v38  ;;  %4944 = vmatprep.mubr.msk.f32.mxu0 %vm5527_vm1, %v5526_v3 }
0x1db0   :  { %4938 = vmatprep.subr.mxu0 %v5526_v3 }
0x1db1   :  { %4939 = vmatpush3.msra.mxu0 %v5830_v39 }
0x1db2   :  { %4940 = vmatprep.subr.mxu0 %v5526_v3 }
0x1db3   :  { %4941 = vmatpush3.msra.mxu0 %v5837_v40 }
0x1db4   :  { %4942 = vmatprep.subr.mxu0 %v5526_v3 }
0x1db5   :  { %4943 = vmatpush3.msra.mxu0 %v5844_v41  ;;  %v2012_v56 = vld [vmem:[#allocation2 + $0x18] sm:$0xff] }
0x1db6   :  { %4958 = vmatprep.subr.mxu0 %v4417_v60 }
0x1e6e   :  { %v1666_v27 = vpop.f32.mrf.mxu0 }
0x1e6f   :  { %v1670_v28 = vadd.f32 %v1666_v27, %v1161_v26  ;;  %v6024_v26 = vld [vmem:[%s6624_s5 + $0x38] sm:$0xff]  ;;  %v6030_v27 = vld [vmem:[%s6624_s5 + $0x30] sm:$0xff] }
0x1e70   :  { %v4924_v29 = vpop.f32.mrf.mxu0 }
0x1e71   :  { %5322 = vtanh.f32 %v1670_v28  ;;  %v4407_v31 = vmul.f32 -1.442695, %v1670_v28  ;;  %v6037_v28 = vld [vmem:[%s6624_s5 + $0x28] sm:$0xff]  ;;  %v6044_v29 = vld [vmem:[%s6624_s5 + $0x20] sm:$0xff] }
0x1e73   :  { %5324 = vpow2.f32 %v4407_v31 }
0x1e7e   :  { %v5323_v30 = vpop.eup %5322 }
0x1e7f   :  { %1680 = vrot.lane.b32.xlu0 %v5323_v30, %s5528_s19 }
0x1e80   :  { %v5325_v32 = vpop.eup %5324 }
0x1e81   :  { %v1674_v33 = vadd.f32 1.0, %v5325_v32 }
0x1e83   :  { %5326 = vrcp.f32 %v1674_v33 }
0x1e90   :  { %v5327_v34 = vpop.eup %5326 }
0x1e91   :  { %v1678_v59 = vmul.f32 %v5327_v34, %v1585_v21 }
0x1ef1   :  { %v1681_v35 = vpop.permute.xlu0 %1680 }
0x1ef2   :  { %v1683_v36 = vmul.f32 %v5327_v34, %v1681_v35 }
0x1ef4   :  { %1685 = vrot.lane.b32.xlu1 %v1683_v36, %s5529_s3 }
0x1f66   :  { %v1686_v37 = vpop.permute.xlu1 %1685 }
0x1f67   :  { %v1688_v42 = vadd.f32 %v1686_v37, %v1678_v59 }
0x1f69   :  { %5328 = vtanh.f32 %v1688_v42 }
0x1f76   :  { %v5329_v43 = vpop.eup %5328 }
0x1f77   :  { %1691 = vrot.lane.b32.xlu0 %v5329_v43, %s5528_s19  ;;  %v6081_v43 = vld [vmem:[%s6625_s6 + $0x1] ss:$0 sm:$0xff] }
0x1fe9   :  { %v1692_v44 = vpop.permute.xlu0 %1691 }
0x1fea   :  { %v1694_v45 = vmul.f32 %v5327_v34, %v1692_v44  ;;  %v1176_v34 = vadd.f32 %v5931_v49, %v5881_v52 }
0x1fec   :  { %1696 = vrot.lane.b32.xlu1 %v1694_v45, %s5529_s3 }
0x205e   :  { %v1697_v46 = vpop.permute.xlu1 %1696 }
0x205f   :  { %1699 = vst.msk [vmem:[#allocation2 + $0x20] sm:$0xff] %vm202_vm2, %v1697_v46  ;;  %4934 = vmatmul.mubr.msk.f32.vlgmr.msra.gmra.mxu1 %vm202_vm2, %v1697_v46 }
0x2060   :  { %4948 = vmatpush3.msra.mxu1 %v5824_v38  ;;  %4955 = vmatprep.mubr.msk.f32.mxu1 %vm5527_vm1, %v5526_v3  ;;  %v1166_v38 = vadd.f32 %v5927_v47, %v5881_v52 }
0x2061   :  { %4949 = vmatprep.subr.mxu1 %v5526_v3 }
0x2062   :  { %4950 = vmatpush3.msra.mxu1 %v5830_v39 }
0x2063   :  { %4951 = vmatprep.subr.mxu1 %v5526_v3 }
0x2064   :  { %4952 = vmatpush3.msra.mxu1 %v5837_v40 }
0x2065   :  { %4953 = vmatprep.subr.mxu1 %v5526_v3 }
0x2066   :  { %4954 = vmatpush3.msra.mxu1 %v5844_v41  ;;  %v2013_v9 = vld [vmem:[#allocation2 + $0x20] sm:$0xff] }
0x2067   :  { %4978 = vmatprep.subr.mxu1 %v5526_v3 }
0x211f   :  { %v1769_v48 = vpop.f32.mrf.mxu1 }
0x2120   :  { %v1773_v51 = vadd.f32 %v1769_v48, %v1166_v38 }
0x2121   :  { %v4935_v53 = vpop.f32.mrf.mxu1 }
0x2122   :  { %5330 = vtanh.f32 %v1773_v51  ;;  %v4409_v39 = vmul.f32 -1.442695, %v1773_v51 }
0x2124   :  { %5332 = vpow2.f32 %v4409_v39 }
0x212f   :  { %v5331_v54 = vpop.eup %5330 }
0x2130   :  { %1783 = vrot.lane.b32.xlu0 %v5331_v54, %s5528_s19 }
0x2131   :  { %v5333_v55 = vpop.eup %5332 }
0x2132   :  { %v1777_v40 = vadd.f32 1.0, %v5333_v55 }
0x2134   :  { %5334 = vrcp.f32 %v1777_v40 }
0x2141   :  { %v5335_v1 = vpop.eup %5334 }
0x2142   :  { %v1781_v10 = vmul.f32 %v5335_v1, %v1688_v42 }
0x21a2   :  { %v1784_v57 = vpop.permute.xlu0 %1783 }
0x21a3   :  { %v1786_v41 = vmul.f32 %v5335_v1, %v1784_v57 }
0x21a5   :  { %1788 = vrot.lane.b32.xlu1 %v1786_v41, %s5529_s3 }
0x2217   :  { %v1789_v58 = vpop.permute.xlu1 %1788 }
0x2218   :  { %v1791_v47 = vadd.f32 %v1789_v58, %v1781_v10 }
0x221a   :  { %5336 = vtanh.f32 %v1791_v47 }
0x2227   :  { %v5337_v61 = vpop.eup %5336 }
0x2228   :  { %1794 = vrot.lane.b32.xlu0 %v5337_v61, %s5528_s19 }
0x229a   :  { %v1795_v62 = vpop.permute.xlu0 %1794 }
0x229b   :  { %v1797_v5 = vmul.f32 %v5335_v1, %v1795_v62 }
0x229d   :  { %1799 = vrot.lane.b32.xlu1 %v1797_v5, %s5529_s3 }
0x230f   :  { %v1800_v63 = vpop.permute.xlu1 %1799 }
0x2310   :  { %1802 = vst.msk [vmem:[#allocation2 + $0x28] sm:$0xff] %vm202_vm2, %v1800_v63  ;;  %4945 = vmatmul.mubr.msk.f32.vlgmr.msra.gmra.mxu0 %vm202_vm2, %v1800_v63 }
0x2311   :  { %4959 = vmatpush3.msra.mxu0 %v4417_v60  ;;  %4966 = vmatprep.mubr.msk.f32.mxu0 %vm202_vm2, %v2009_v0 }
0x2312   :  { %4960 = vmatprep.subr.mxu0 %v4416_v7 }
0x2313   :  { %4961 = vmatpush3.msra.mxu0 %v4416_v7 }
0x2314   :  { %4962 = vmatprep.subr.mxu0 %v4415_v2 }
0x2315   :  { %4963 = vmatpush3.msra.mxu0 %v4415_v2 }
0x2316   :  { %4964 = vmatprep.subr.mxu0 %v4414_v8 }
0x2317   :  { %4965 = vmatpush3.msra.mxu0 %v4414_v8  ;;  %v2014_v11 = vld [vmem:[#allocation2 + $0x28] sm:$0xff] }
0x2318   :  { %4967 = vmatmul.mubr.msk.f32.vlgmr.msra.gmra.mxu0 %vm202_vm2, %v2010_v4  ;;  %5000 = vmatprep.subr.mxu0 %v5526_v3 }
0x2319   :  { %4969 = vmatprep.mubr.msk.f32.mxu0 %vm202_vm2, %v2011_v6  ;;  %5001 = vmatpush3.msra.mxu0 %v6024_v26 }
0x231a   :  { %5002 = vmatprep.subr.mxu0 %v5526_v3 }
0x231b   :  { %5003 = vmatpush3.msra.mxu0 %v6030_v27 }
0x231c   :  { %4970 = vmatmul.mubr.msk.f32.gmra.mxu0 %vm202_vm2, %v2012_v56  ;;  %5004 = vmatprep.subr.mxu0 %v5526_v3 }
0x231d   :  { %4972 = vmatprep.mubr.msk.f32.mxu0 %vm202_vm2, %v2013_v9  ;;  %5005 = vmatpush3.msra.mxu0 %v6037_v28 }
0x231e   :  { %5006 = vmatprep.subr.mxu0 %v5526_v3 }
0x231f   :  { %5007 = vmatpush3.msra.mxu0 %v6044_v29 }
0x2320   :  { %4973 = vmatmul.mubr.msk.f32.gmra.mxu0 %vm202_vm2, %v2014_v11  ;;  %5022 = vmatprep.subr.mxu0 %v5526_v3 }
0x23d0   :  { %v1872_v13 = vpop.f32.mrf.mxu0 }
0x23d1   :  { %v1876_v14 = vadd.f32 %v1872_v13, %v1171_v12 }
0x23d2   :  { %v4946_v15 = vpop.f32.mrf.mxu0 }
0x23d3   :  { %5338 = vtanh.f32 %v1876_v14  ;;  %v4411_v17 = vmul.f32 -1.442695, %v1876_v14 }
0x23d5   :  { %5340 = vpow2.f32 %v4411_v17 }
0x23d8   :  { %v6076_v35 = vpop.f32.mrf.mxu0 }
0x23d9   :  { %v2131_v9 = vadd.f32 %v6076_v35, %v6081_v43 }
0x23da   :  { %v2125_v42 = vpop.f32.mrf.mxu0 }
0x23db   :  { %v2126_v44 = vadd.f32 %v6081_v43, %v2125_v42 }
0x23e0   :  { %v5339_v16 = vpop.eup %5338 }
0x23e1   :  { %1886 = vrot.lane.b32.xlu0 %v5339_v16, %s5528_s19 }
0x23e2   :  { %v5341_v18 = vpop.eup %5340 }
0x23e3   :  { %v1880_v19 = vadd.f32 1.0, %v5341_v18 }
0x23e5   :  { %5342 = vrcp.f32 %v1880_v19 }
0x23f2   :  { %v5343_v20 = vpop.eup %5342 }
0x23f3   :  { %v1884_v23 = vmul.f32 %v5343_v20, %v1791_v47 }
0x2453   :  { %v1887_v21 = vpop.permute.xlu0 %1886 }
0x2454   :  { %v1889_v22 = vmul.f32 %v5343_v20, %v1887_v21 }
0x2456   :  { %1891 = vrot.lane.b32.xlu1 %v1889_v22, %s5529_s3 }
0x24c8   :  { %v1892_v24 = vpop.permute.xlu1 %1891 }
0x24c9   :  { %v6017_v50 = vadd.f32 %v1892_v24, %v1884_v23 }
0x24cb   :  { %5344 = vtanh.f32 %v6017_v50 }
0x24d8   :  { %v5345_v25 = vpop.eup %5344 }
0x24d9   :  { %1897 = vrot.lane.b32.xlu0 %v5345_v25, %s5528_s19 }
0x254b   :  { %v1898_v30 = vpop.permute.xlu0 %1897 }
0x254c   :  { %v1900_v31 = vmul.f32 %v5343_v20, %v1898_v30 }
0x254e   :  { %1902 = vrot.lane.b32.xlu1 %v1900_v31, %s5529_s3 }
0x25c0   :  { %v1903_v32 = vpop.permute.xlu1 %1902 }
0x25c1   :  { %1905 = vst.msk [vmem:[#allocation2 + $0x30] sm:$0xff] %vm202_vm2, %v1903_v32  ;;  %4956 = vmatmul.mubr.msk.f32.vlgmr.msra.gmra.mxu1 %vm202_vm2, %v1903_v32 }
0x25c2   :  { %4979 = vmatpush3.msra.mxu1 %v6024_v26  ;;  %4986 = vmatprep.mubr.msk.f32.mxu1 %vm5527_vm1, %v5526_v3 }
0x25c3   :  { %4980 = vmatprep.subr.mxu1 %v5526_v3 }
0x25c4   :  { %4981 = vmatpush3.msra.mxu1 %v6030_v27 }
0x25c5   :  { %4982 = vmatprep.subr.mxu1 %v5526_v3 }
0x25c6   :  { %4983 = vmatpush3.msra.mxu1 %v6037_v28 }
0x25c7   :  { %4984 = vmatprep.subr.mxu1 %v5526_v3 }
0x25c8   :  { %4985 = vmatpush3.msra.mxu1 %v6044_v29  ;;  %v2015_v33 = vld [vmem:[#allocation2 + $0x30] sm:$0xff] }
0x25c9   :  { %4987 = vmatmul.mubr.f32.vlgmr.msra.gmra.mxu1 %v5526_v3  ;;  %4975 = vmatprep.mubr.msk.f32.mxu0 %vm202_vm2, %v2015_v33  ;;  %v4971_v33 = vpop.f32.mrf.mxu0 }
0x25ca   :  { %4989 = vmatprep.subr.mxu1 %v5526_v3  ;;  %4997 = vmatprep.mubr.msk.f32.mxu1 %vm5527_vm1, %v5526_v3 }
0x25cb   :  { %4990 = vmatpush3.msra.mxu1 %v6024_v26 }
0x25cc   :  { %4991 = vmatprep.subr.mxu1 %v5526_v3 }
0x25cd   :  { %4992 = vmatpush3.msra.mxu1 %v6030_v27 }
0x25ce   :  { %4993 = vmatprep.subr.mxu1 %v5526_v3 }
0x25cf   :  { %4994 = vmatpush3.msra.mxu1 %v6037_v28 }
0x25d0   :  { %4995 = vmatprep.subr.mxu1 %v5526_v3 }
0x25d1   :  { %4996 = vmatpush3.msra.mxu1 %v6044_v29 }
0x25d2   :  { %5011 = vmatprep.subr.mxu1 %v5526_v3 }
0x2681   :  { %v1975_v36 = vpop.f32.mrf.mxu1 }
0x2682   :  { %v1979_v59 = vadd.f32 %v1975_v36, %v1176_v34  ;;  %v2135_v34 = vpop.f32.mrf.mxu0 }
0x2683   :  { %v4957_v37 = vpop.f32.mrf.mxu1  ;;  %v2136_v42 = vadd.f32 %v6081_v43, %v2135_v34 }
0x2684   :  { %v4413_v10 = vmul.f32 -1.442695, %v1979_v59  ;;  %v6127_v35 = vpop.f32.mrf.mxu0 }
0x2686   :  { %v6129_v36 = vpop.f32.mrf.mxu0 }
0x2689   :  { %v2239_v45 = vpop.f32.mrf.mxu1 }
0x268a   :  { %v2243_v46 = vadd.f32 %v2239_v45, %v2126_v44 }
0x268b   :  { %v4988_v38 = vpop.f32.mrf.mxu1 }
0x268c   :  { %5346 = vtanh.f32 %v2243_v46  ;;  %v4432_v52 = vmul.f32 -1.442695, %v2243_v46 }
0x268e   :  { %5348 = vpow2.f32 %v4432_v52 }
0x2699   :  { %v5347_v48 = vpop.eup %5346 }
0x269a   :  { %2253 = vrot.lane.b32.xlu0 %v5347_v48, %s5528_s19 }
0x269b   :  { %v5349_v49 = vpop.eup %5348 }
0x269c   :  { %v2247_v51 = vadd.f32 1.0, %v5349_v49 }
0x269e   :  { %5350 = vrcp.f32 %v2247_v51 }
0x26ab   :  { %v5351_v53 = vpop.eup %5350 }
0x26ac   :  { %v2251_v55 = vmul.f32 0.0, %v5351_v53 }
0x270c   :  { %v2254_v54 = vpop.permute.xlu0 %2253 }
0x270d   :  { %v2256_v39 = vmul.f32 %v5351_v53, %v2254_v54 }
0x270f   :  { %2258 = vrot.lane.b32.xlu1 %v2256_v39, %s5529_s3 }
0x2781   :  { %v2259_v40 = vpop.permute.xlu1 %2258 }
0x2782   :  { %v2261_v1 = vadd.f32 %v2259_v40, %v2251_v55 }
0x2784   :  { %5352 = vtanh.f32 %v2261_v1 }
0x2785   :  { %5354 = vtanh.f32 %v1979_v59 }
0x2786   :  { %5356 = vpow2.f32 %v4413_v10 }
0x2791   :  { %v5353_v57 = vpop.eup %5352 }
0x2792   :  { %2264 = vrot.lane.b32.xlu0 %v5353_v57, %s5528_s19  ;;  %v5355_v41 = vpop.eup %5354 }
0x2793   :  { %v5357_v58 = vpop.eup %5356 }
0x2794   :  { %v1983_v47 = vadd.f32 1.0, %v5357_v58  ;;  %v2141_v58 = vadd.f32 %v4971_v33, %v6081_v43 }
0x2796   :  { %1989 = vrot.lane.b32.xlu0 %v5355_v41, %s5528_s19  ;;  %5358 = vrcp.f32 %v1983_v47 }
0x27a3   :  { %v5359_v62 = vpop.eup %5358 }
0x27a4   :  { %v1987_v0 = vmul.f32 %v5359_v62, %v6017_v50 }
0x2804   :  { %v2265_v60 = vpop.permute.xlu0 %2264 }
0x2805   :  { %v2267_v61 = vmul.f32 %v5351_v53, %v2265_v60 }
0x2807   :  { %2269 = vrot.lane.b32.xlu1 %v2267_v61, %s5529_s3 }
0x2808   :  { %v1990_v5 = vpop.permute.xlu0 %1989 }
0x2809   :  { %v1992_v63 = vmul.f32 %v5359_v62, %v1990_v5 }
0x280b   :  { %1994 = vrot.lane.b32.xlu0 %v1992_v63, %s5529_s3 }
0x2879   :  { %v2270_v7 = vpop.permute.xlu1 %2269 }
0x287a   :  { %2272 = vst.msk [vmem:[#allocation2] sm:$0xff] %vm202_vm2, %v2270_v7  ;;  %4998 = vmatmul.mubr.msk.f32.vlgmr.msra.gmra.mxu1 %vm202_vm2, %v2270_v7 }
0x287b   :  { %5012 = vmatpush3.msra.mxu1 %v6024_v26  ;;  %5019 = vmatprep.mubr.msk.f32.mxu1 %vm5527_vm1, %v5526_v3 }
0x287c   :  { %5013 = vmatprep.subr.mxu1 %v5526_v3 }
0x287d   :  { %v1995_v2 = vpop.permute.xlu0 %1994  ;;  %5014 = vmatpush3.msra.mxu1 %v6030_v27 }
0x287e   :  { %v1997_v8 = vadd.f32 %v1995_v2, %v1987_v0  ;;  %5015 = vmatprep.subr.mxu1 %v5526_v3 }
0x287f   :  { %5016 = vmatpush3.msra.mxu1 %v6037_v28 }
0x2880   :  { %5360 = vtanh.f32 %v1997_v8  ;;  %5017 = vmatprep.subr.mxu1 %v5526_v3 }
0x2881   :  { %5018 = vmatpush3.msra.mxu1 %v6044_v29 }
0x2882   :  { %5033 = vmatprep.subr.mxu1 %v5526_v3 }
0x288d   :  { %v5361_v4 = vpop.eup %5360 }
0x288e   :  { %2000 = vrot.lane.b32.xlu0 %v5361_v4, %s5528_s19 }
0x2900   :  { %v2001_v6 = vpop.permute.xlu0 %2000 }
0x2901   :  { %v2003_v56 = vmul.f32 %v5359_v62, %v2001_v6 }
0x2903   :  { %2005 = vrot.lane.b32.xlu0 %v2003_v56, %s5529_s3 }
0x293a   :  { %v2342_v11 = vpop.f32.mrf.mxu1 }
0x293b   :  { %v2346_v12 = vadd.f32 %v2342_v11, %v2131_v9 }
0x293c   :  { %v4999_v13 = vpop.f32.mrf.mxu1 }
0x293d   :  { %5362 = vtanh.f32 %v2346_v12  ;;  %v4434_v17 = vmul.f32 -1.442695, %v2346_v12 }
0x293f   :  { %5364 = vpow2.f32 %v4434_v17 }
0x294a   :  { %v5363_v14 = vpop.eup %5362 }
0x294b   :  { %2356 = vrot.lane.b32.xlu1 %v5363_v14, %s5528_s19  ;;  %v2146_v14 = vadd.f32 %v6081_v43, %v6129_v36 }
0x294c   :  { %v5365_v18 = vpop.eup %5364 }
0x294d   :  { %v2350_v19 = vadd.f32 1.0, %v5365_v18 }
0x294f   :  { %5366 = vrcp.f32 %v2350_v19 }
0x295c   :  { %v5367_v20 = vpop.eup %5366 }
0x295d   :  { %v2354_v23 = vmul.f32 %v5367_v20, %v2261_v1 }
0x2975   :  { %v2006_v15 = vpop.permute.xlu0 %2005 }
0x2976   :  { %2008 = vst.msk [vmem:[#allocation2 + $0x38] sm:$0xff] %vm202_vm2, %v2006_v15 }
0x297d   :  { %v2016_v16 = vld [vmem:[#allocation2 + $0x38] sm:$0xff] }
0x297e   :  { %4976 = vmatmul.mubr.msk.f32.gmra.mxu0 %vm202_vm2, %v2016_v16 }
0x297f   :  { %5008 = vmatprep.mubr.msk.f32.mxu0 %vm5527_vm1, %v5526_v3 }
0x29bd   :  { %v2357_v21 = vpop.permute.xlu1 %2356 }
0x29be   :  { %v2359_v22 = vmul.f32 %v5367_v20, %v2357_v21 }
0x29c0   :  { %2361 = vrot.lane.b32.xlu1 %v2359_v22, %s5529_s3 }
0x2a32   :  { %v2362_v24 = vpop.permute.xlu1 %2361 }
0x2a33   :  { %v2364_v50 = vadd.f32 %v2362_v24, %v2354_v23 }
0x2a35   :  { %5368 = vtanh.f32 %v2364_v50 }
0x2a3e   :  { %v6131_v59 = vpop.f32.mrf.mxu0 }
0x2a40   :  { %v6133_v37 = vpop.f32.mrf.mxu0 }
0x2a42   :  { %v5369_v25 = vpop.eup %5368 }
0x2a43   :  { %2367 = vrot.lane.b32.xlu1 %v5369_v25, %s5528_s19 }
0x2ab5   :  { %v2368_v30 = vpop.permute.xlu1 %2367 }
0x2ab6   :  { %v2370_v31 = vmul.f32 %v5367_v20, %v2368_v30 }
0x2ab8   :  { %2372 = vrot.lane.b32.xlu1 %v2370_v31, %s5529_s3 }
0x2b2a   :  { %v2373_v32 = vpop.permute.xlu1 %2372 }
0x2b2b   :  { %2375 = vst.msk [vmem:[#allocation2 + $0x8] sm:$0xff] %vm202_vm2, %v2373_v32  ;;  %5009 = vmatmul.mubr.msk.f32.vlgmr.msra.gmra.mxu0 %vm202_vm2, %v2373_v32 }
0x2b2c   :  { %5023 = vmatpush3.msra.mxu0 %v6024_v26  ;;  %5030 = vmatprep.mubr.msk.f32.mxu0 %vm5527_vm1, %v5526_v3 }
0x2b2d   :  { %5024 = vmatprep.subr.mxu0 %v5526_v3 }
0x2b2e   :  { %5025 = vmatpush3.msra.mxu0 %v6030_v27 }
0x2b2f   :  { %5026 = vmatprep.subr.mxu0 %v5526_v3 }
0x2b30   :  { %5027 = vmatpush3.msra.mxu0 %v6037_v28 }
0x2b31   :  { %5028 = vmatprep.subr.mxu0 %v5526_v3 }
0x2b32   :  { %5029 = vmatpush3.msra.mxu0 %v6044_v29 }
0x2b33   :  { %5044 = vmatprep.subr.mxu0 %v5526_v3 }
0x2beb   :  { %v2445_v44 = vpop.f32.mrf.mxu0 }
0x2bec   :  { %v2449_v45 = vadd.f32 %v2445_v44, %v2136_v42 }
0x2bed   :  { %v5010_v46 = vpop.f32.mrf.mxu0 }
0x2bee   :  { %5370 = vtanh.f32 %v2449_v45  ;;  %v4436_v48 = vmul.f32 -1.442695, %v2449_v45 }
0x2bf0   :  { %5372 = vpow2.f32 %v4436_v48 }
0x2bfb   :  { %v5371_v38 = vpop.eup %5370 }
0x2bfc   :  { %2459 = vrot.lane.b32.xlu0 %v5371_v38, %s5528_s19 }
0x2bfd   :  { %v5373_v52 = vpop.eup %5372 }
0x2bfe   :  { %v2453_v49 = vadd.f32 1.0, %v5373_v52 }
0x2c00   :  { %5374 = vrcp.f32 %v2453_v49 }
0x2c0d   :  { %v5375_v51 = vpop.eup %5374 }
0x2c0e   :  { %v2457_v39 = vmul.f32 %v5375_v51, %v2364_v50 }
0x2c6e   :  { %v2460_v53 = vpop.permute.xlu0 %2459 }
0x2c6f   :  { %v2462_v54 = vmul.f32 %v5375_v51, %v2460_v53 }
0x2c71   :  { %2464 = vrot.lane.b32.xlu1 %v2462_v54, %s5529_s3 }
0x2ce3   :  { %v2465_v55 = vpop.permute.xlu1 %2464 }
0x2ce4   :  { %v2467_v40 = vadd.f32 %v2465_v55, %v2457_v39 }
0x2ce6   :  { %5376 = vtanh.f32 %v2467_v40 }
0x2cf3   :  { %v5377_v1 = vpop.eup %5376 }
0x2cf4   :  { %2470 = vrot.lane.b32.xlu0 %v5377_v1, %s5528_s19  ;;  %v2994_v1 = vld [vmem:[#allocation2] sm:$0xff] }
0x2d66   :  { %v2471_v57 = vpop.permute.xlu0 %2470 }
0x2d67   :  { %v2473_v41 = vmul.f32 %v5375_v51, %v2471_v57  ;;  %v4450_v51 = vld [vmem:[%s6623_s4 + $0x58] sm:$0xff]  ;;  %v4448_v57 = vld [vmem:[%s6623_s4 + $0x48] sm:$0xff] }
0x2d69   :  { %2475 = vrot.lane.b32.xlu1 %v2473_v41, %s5529_s3  ;;  %v4447_v41 = vld [vmem:[%s6623_s4 + $0x40] sm:$0xff] }
0x2ddb   :  { %v2476_v10 = vpop.permute.xlu1 %2475 }
0x2ddc   :  { %2478 = vst.msk [vmem:[#allocation2 + $0x10] sm:$0xff] %vm202_vm2, %v2476_v10  ;;  %5020 = vmatmul.mubr.msk.f32.vlgmr.msra.gmra.mxu1 %vm202_vm2, %v2476_v10  ;;  %v2995_v10 = vld [vmem:[#allocation2 + $0x8] sm:$0xff] }
0x2ddd   :  { %5034 = vmatpush3.msra.mxu1 %v6024_v26  ;;  %5041 = vmatprep.mubr.msk.f32.mxu1 %vm5527_vm1, %v5526_v3 }
0x2dde   :  { %5035 = vmatprep.subr.mxu1 %v5526_v3 }
0x2ddf   :  { %5036 = vmatpush3.msra.mxu1 %v6030_v27 }
0x2de0   :  { %5037 = vmatprep.subr.mxu1 %v5526_v3 }
0x2de1   :  { %5038 = vmatpush3.msra.mxu1 %v6037_v28 }
0x2de2   :  { %5039 = vmatprep.subr.mxu1 %v5526_v3 }
0x2de3   :  { %5040 = vmatpush3.msra.mxu1 %v6044_v29 }
0x2de4   :  { %5055 = vmatprep.subr.mxu1 %v5526_v3 }
0x2e9c   :  { %v2548_v47 = vpop.f32.mrf.mxu1 }
0x2e9d   :  { %v2552_v60 = vadd.f32 %v2548_v47, %v2141_v58  ;;  %v2996_v58 = vld [vmem:[#allocation2 + $0x10] sm:$0xff] }
0x2e9e   :  { %v5021_v61 = vpop.f32.mrf.mxu1 }
0x2e9f   :  { %5378 = vtanh.f32 %v2552_v60  ;;  %v4438_v5 = vmul.f32 -1.442695, %v2552_v60 }
0x2ea1   :  { %5380 = vpow2.f32 %v4438_v5 }
0x2eac   :  { %v5379_v62 = vpop.eup %5378 }
0x2ead   :  { %2562 = vrot.lane.b32.xlu0 %v5379_v62, %s5528_s19  ;;  %v2156_v62 = vadd.f32 %v6081_v43, %v6133_v37 }
0x2eae   :  { %v5381_v63 = vpop.eup %5380 }
0x2eaf   :  { %v2556_v7 = vadd.f32 1.0, %v5381_v63 }
0x2eb1   :  { %5382 = vrcp.f32 %v2556_v7 }
0x2ebe   :  { %v5383_v0 = vpop.eup %5382 }
0x2ebf   :  { %v2560_v4 = vmul.f32 %v5383_v0, %v2467_v40  ;;  %v4449_v40 = vld [vmem:[%s6623_s4 + $0x50] sm:$0xff] }
0x2f1f   :  { %v2563_v2 = vpop.permute.xlu0 %2562 }
0x2f20   :  { %v2565_v8 = vmul.f32 %v5383_v0, %v2563_v2 }
0x2f22   :  { %2567 = vrot.lane.b32.xlu1 %v2565_v8, %s5529_s3 }
0x2f94   :  { %v2568_v6 = vpop.permute.xlu1 %2567 }
0x2f95   :  { %v2570_v56 = vadd.f32 %v2568_v6, %v2560_v4 }
0x2f97   :  { %5384 = vtanh.f32 %v2570_v56 }
0x2fa4   :  { %v5385_v9 = vpop.eup %5384 }
0x2fa5   :  { %2573 = vrot.lane.b32.xlu0 %v5385_v9, %s5528_s19 }
0x3017   :  { %v2574_v11 = vpop.permute.xlu0 %2573 }
0x3018   :  { %v2576_v12 = vmul.f32 %v5383_v0, %v2574_v11 }
0x301a   :  { %2578 = vrot.lane.b32.xlu1 %v2576_v12, %s5529_s3 }
0x308c   :  { %v2579_v13 = vpop.permute.xlu1 %2578 }
0x308d   :  { %2581 = vst.msk [vmem:[#allocation2 + $0x18] sm:$0xff] %vm202_vm2, %v2579_v13  ;;  %5031 = vmatmul.mubr.msk.f32.vlgmr.msra.gmra.mxu0 %vm202_vm2, %v2579_v13 }
0x308e   :  { %5045 = vmatpush3.msra.mxu0 %v6024_v26  ;;  %5052 = vmatprep.mubr.msk.f32.mxu0 %vm5527_vm1, %v5526_v3 }
0x308f   :  { %5046 = vmatprep.subr.mxu0 %v5526_v3 }
0x3090   :  { %5047 = vmatpush3.msra.mxu0 %v6030_v27 }
0x3091   :  { %5048 = vmatprep.subr.mxu0 %v5526_v3 }
0x3092   :  { %5049 = vmatpush3.msra.mxu0 %v6037_v28 }
0x3093   :  { %5050 = vmatprep.subr.mxu0 %v5526_v3 }
0x3094   :  { %5051 = vmatpush3.msra.mxu0 %v6044_v29  ;;  %v2997_v47 = vld [vmem:[#allocation2 + $0x18] sm:$0xff] }
0x3095   :  { %5066 = vmatprep.subr.mxu0 %v4450_v51 }
0x314d   :  { %v2651_v15 = vpop.f32.mrf.mxu0 }
0x314e   :  { %v2655_v16 = vadd.f32 %v2651_v15, %v2146_v14  ;;  %v6224_v14 = vld [vmem:[%s6624_s5 + $0x58] sm:$0xff]  ;;  %v6230_v15 = vld [vmem:[%s6624_s5 + $0x50] sm:$0xff] }
0x314f   :  { %v5032_v17 = vpop.f32.mrf.mxu0 }
0x3150   :  { %5386 = vtanh.f32 %v2655_v16  ;;  %v4440_v19 = vmul.f32 -1.442695, %v2655_v16  ;;  %v6237_v16 = vld [vmem:[%s6624_s5 + $0x48] sm:$0xff]  ;;  %v6244_v17 = vld [vmem:[%s6624_s5 + $0x40] sm:$0xff] }
0x3152   :  { %5388 = vpow2.f32 %v4440_v19 }
0x315d   :  { %v5387_v18 = vpop.eup %5386 }
0x315e   :  { %2665 = vrot.lane.b32.xlu0 %v5387_v18, %s5528_s19 }
0x315f   :  { %v5389_v20 = vpop.eup %5388 }
0x3160   :  { %v2659_v21 = vadd.f32 1.0, %v5389_v20 }
0x3162   :  { %5390 = vrcp.f32 %v2659_v21 }
0x316f   :  { %v5391_v22 = vpop.eup %5390 }
0x3170   :  { %v2663_v50 = vmul.f32 %v5391_v22, %v2570_v56 }
0x31d0   :  { %v2666_v23 = vpop.permute.xlu0 %2665 }
0x31d1   :  { %v2668_v24 = vmul.f32 %v5391_v22, %v2666_v23 }
0x31d3   :  { %2670 = vrot.lane.b32.xlu1 %v2668_v24, %s5529_s3 }
0x3245   :  { %v2671_v25 = vpop.permute.xlu1 %2670 }
0x3246   :  { %v2673_v30 = vadd.f32 %v2671_v25, %v2663_v50 }
0x3248   :  { %5392 = vtanh.f32 %v2673_v30 }
0x3255   :  { %v5393_v31 = vpop.eup %5392 }
0x3256   :  { %2676 = vrot.lane.b32.xlu0 %v5393_v31, %s5528_s19  ;;  %v6281_v31 = vld [vmem:[%s6625_s6 + $0x2] ss:$0 sm:$0xff] }
0x32c8   :  { %v2677_v32 = vpop.permute.xlu0 %2676 }
0x32c9   :  { %v2679_v33 = vmul.f32 %v5391_v22, %v2677_v32  ;;  %v2161_v22 = vadd.f32 %v6131_v59, %v6081_v43 }
0x32cb   :  { %2681 = vrot.lane.b32.xlu1 %v2679_v33, %s5529_s3 }
0x333d   :  { %v2682_v34 = vpop.permute.xlu1 %2681 }
0x333e   :  { %2684 = vst.msk [vmem:[#allocation2 + $0x20] sm:$0xff] %vm202_vm2, %v2682_v34  ;;  %5042 = vmatmul.mubr.msk.f32.vlgmr.msra.gmra.mxu1 %vm202_vm2, %v2682_v34 }
0x333f   :  { %5056 = vmatpush3.msra.mxu1 %v6024_v26  ;;  %5063 = vmatprep.mubr.msk.f32.mxu1 %vm5527_vm1, %v5526_v3  ;;  %v2151_v26 = vadd.f32 %v6127_v35, %v6081_v43 }
0x3340   :  { %5057 = vmatprep.subr.mxu1 %v5526_v3 }
0x3341   :  { %5058 = vmatpush3.msra.mxu1 %v6030_v27 }
0x3342   :  { %5059 = vmatprep.subr.mxu1 %v5526_v3 }
0x3343   :  { %5060 = vmatpush3.msra.mxu1 %v6037_v28 }
0x3344   :  { %5061 = vmatprep.subr.mxu1 %v5526_v3 }
0x3345   :  { %5062 = vmatpush3.msra.mxu1 %v6044_v29  ;;  %v2998_v60 = vld [vmem:[#allocation2 + $0x20] sm:$0xff] }
0x3346   :  { %5086 = vmatprep.subr.mxu1 %v5526_v3 }
0x33fe   :  { %v2754_v36 = vpop.f32.mrf.mxu1 }
0x33ff   :  { %v2758_v42 = vadd.f32 %v2754_v36, %v2151_v26 }
0x3400   :  { %v5043_v44 = vpop.f32.mrf.mxu1 }
0x3401   :  { %5394 = vtanh.f32 %v2758_v42  ;;  %v4442_v27 = vmul.f32 -1.442695, %v2758_v42 }
0x3403   :  { %5396 = vpow2.f32 %v4442_v27 }
0x340e   :  { %v5395_v45 = vpop.eup %5394 }
0x340f   :  { %2768 = vrot.lane.b32.xlu0 %v5395_v45, %s5528_s19 }
0x3410   :  { %v5397_v46 = vpop.eup %5396 }
0x3411   :  { %v2762_v28 = vadd.f32 1.0, %v5397_v46 }
0x3413   :  { %5398 = vrcp.f32 %v2762_v28 }
0x3420   :  { %v5399_v38 = vpop.eup %5398 }
0x3421   :  { %v2766_v52 = vmul.f32 %v5399_v38, %v2673_v30 }
0x3481   :  { %v2769_v48 = vpop.permute.xlu0 %2768 }
0x3482   :  { %v2771_v29 = vmul.f32 %v5399_v38, %v2769_v48 }
0x3484   :  { %2773 = vrot.lane.b32.xlu1 %v2771_v29, %s5529_s3 }
0x34f6   :  { %v2774_v49 = vpop.permute.xlu1 %2773 }
0x34f7   :  { %v2776_v35 = vadd.f32 %v2774_v49, %v2766_v52 }
0x34f9   :  { %5400 = vtanh.f32 %v2776_v35 }
0x3506   :  { %v5401_v53 = vpop.eup %5400 }
0x3507   :  { %2779 = vrot.lane.b32.xlu0 %v5401_v53, %s5528_s19 }
0x3579   :  { %v2780_v54 = vpop.permute.xlu0 %2779 }
0x357a   :  { %v2782_v39 = vmul.f32 %v5399_v38, %v2780_v54 }
0x357c   :  { %2784 = vrot.lane.b32.xlu1 %v2782_v39, %s5529_s3 }
0x35ee   :  { %v2785_v55 = vpop.permute.xlu1 %2784 }
0x35ef   :  { %2787 = vst.msk [vmem:[#allocation2 + $0x28] sm:$0xff] %vm202_vm2, %v2785_v55  ;;  %5053 = vmatmul.mubr.msk.f32.vlgmr.msra.gmra.mxu0 %vm202_vm2, %v2785_v55 }
0x35f0   :  { %5067 = vmatpush3.msra.mxu0 %v4450_v51  ;;  %5074 = vmatprep.mubr.msk.f32.mxu0 %vm202_vm2, %v2994_v1 }
0x35f1   :  { %5068 = vmatprep.subr.mxu0 %v4449_v40 }
0x35f2   :  { %5069 = vmatpush3.msra.mxu0 %v4449_v40 }
0x35f3   :  { %5070 = vmatprep.subr.mxu0 %v4448_v57 }
0x35f4   :  { %5071 = vmatpush3.msra.mxu0 %v4448_v57 }
0x35f5   :  { %5072 = vmatprep.subr.mxu0 %v4447_v41 }
0x35f6   :  { %5073 = vmatpush3.msra.mxu0 %v4447_v41  ;;  %v2999_v61 = vld [vmem:[#allocation2 + $0x28] sm:$0xff] }
0x35f7   :  { %5075 = vmatmul.mubr.msk.f32.vlgmr.msra.gmra.mxu0 %vm202_vm2, %v2995_v10  ;;  %5108 = vmatprep.subr.mxu0 %v5526_v3 }
0x35f8   :  { %5077 = vmatprep.mubr.msk.f32.mxu0 %vm202_vm2, %v2996_v58  ;;  %5109 = vmatpush3.msra.mxu0 %v6224_v14 }
0x35f9   :  { %5110 = vmatprep.subr.mxu0 %v5526_v3 }
0x35fa   :  { %5111 = vmatpush3.msra.mxu0 %v6230_v15 }
0x35fb   :  { %5078 = vmatmul.mubr.msk.f32.gmra.mxu0 %vm202_vm2, %v2997_v47  ;;  %5112 = vmatprep.subr.mxu0 %v5526_v3 }
0x35fc   :  { %5080 = vmatprep.mubr.msk.f32.mxu0 %vm202_vm2, %v2998_v60  ;;  %5113 = vmatpush3.msra.mxu0 %v6237_v16 }
0x35fd   :  { %5114 = vmatprep.subr.mxu0 %v5526_v3 }
0x35fe   :  { %5115 = vmatpush3.msra.mxu0 %v6244_v17 }
0x35ff   :  { %5081 = vmatmul.mubr.msk.f32.gmra.mxu0 %vm202_vm2, %v2999_v61  ;;  %5130 = vmatprep.subr.mxu0 %v5526_v3 }
0x36af   :  { %v2857_v5 = vpop.f32.mrf.mxu0 }
0x36b0   :  { %v2861_v63 = vadd.f32 %v2857_v5, %v2156_v62 }
0x36b1   :  { %v5054_v7 = vpop.f32.mrf.mxu0 }
0x36b2   :  { %5402 = vtanh.f32 %v2861_v63  ;;  %v4444_v2 = vmul.f32 -1.442695, %v2861_v63 }
0x36b4   :  { %5404 = vpow2.f32 %v4444_v2 }
0x36b7   :  { %v6276_v23 = vpop.f32.mrf.mxu0 }
0x36b8   :  { %v3116_v60 = vadd.f32 %v6276_v23, %v6281_v31 }
0x36b9   :  { %v3110_v30 = vpop.f32.mrf.mxu0 }
0x36ba   :  { %v3111_v32 = vadd.f32 %v6281_v31, %v3110_v30 }
0x36bf   :  { %v5403_v0 = vpop.eup %5402 }
0x36c0   :  { %2871 = vrot.lane.b32.xlu0 %v5403_v0, %s5528_s19 }
0x36c1   :  { %v5405_v8 = vpop.eup %5404 }
0x36c2   :  { %v2865_v4 = vadd.f32 1.0, %v5405_v8 }
0x36c4   :  { %5406 = vrcp.f32 %v2865_v4 }
0x36d1   :  { %v5407_v6 = vpop.eup %5406 }
0x36d2   :  { %v2869_v11 = vmul.f32 %v5407_v6, %v2776_v35 }
0x3732   :  { %v2872_v56 = vpop.permute.xlu0 %2871 }
0x3733   :  { %v2874_v9 = vmul.f32 %v5407_v6, %v2872_v56 }
0x3735   :  { %2876 = vrot.lane.b32.xlu1 %v2874_v9, %s5529_s3 }
0x37a7   :  { %v2877_v12 = vpop.permute.xlu1 %2876 }
0x37a8   :  { %v6217_v37 = vadd.f32 %v2877_v12, %v2869_v11 }
0x37aa   :  { %5408 = vtanh.f32 %v6217_v37 }
0x37b7   :  { %v5409_v13 = vpop.eup %5408 }
0x37b8   :  { %2882 = vrot.lane.b32.xlu0 %v5409_v13, %s5528_s19 }
0x382a   :  { %v2883_v18 = vpop.permute.xlu0 %2882 }
0x382b   :  { %v2885_v19 = vmul.f32 %v5407_v6, %v2883_v18 }
0x382d   :  { %2887 = vrot.lane.b32.xlu1 %v2885_v19, %s5529_s3 }
0x389f   :  { %v2888_v20 = vpop.permute.xlu1 %2887 }
0x38a0   :  { %2890 = vst.msk [vmem:[#allocation2 + $0x30] sm:$0xff] %vm202_vm2, %v2888_v20  ;;  %5064 = vmatmul.mubr.msk.f32.vlgmr.msra.gmra.mxu1 %vm202_vm2, %v2888_v20 }
0x38a1   :  { %5087 = vmatpush3.msra.mxu1 %v6224_v14  ;;  %5094 = vmatprep.mubr.msk.f32.mxu1 %vm5527_vm1, %v5526_v3 }
0x38a2   :  { %5088 = vmatprep.subr.mxu1 %v5526_v3 }
0x38a3   :  { %5089 = vmatpush3.msra.mxu1 %v6230_v15 }
0x38a4   :  { %5090 = vmatprep.subr.mxu1 %v5526_v3 }
0x38a5   :  { %5091 = vmatpush3.msra.mxu1 %v6237_v16 }
0x38a6   :  { %5092 = vmatprep.subr.mxu1 %v5526_v3 }
0x38a7   :  { %5093 = vmatpush3.msra.mxu1 %v6244_v17  ;;  %v3000_v21 = vld [vmem:[#allocation2 + $0x30] sm:$0xff] }
0x38a8   :  { %5095 = vmatmul.mubr.f32.vlgmr.msra.gmra.mxu1 %v5526_v3  ;;  %5083 = vmatprep.mubr.msk.f32.mxu0 %vm202_vm2, %v3000_v21  ;;  %v5079_v21 = vpop.f32.mrf.mxu0 }
0x38a9   :  { %5097 = vmatprep.subr.mxu1 %v5526_v3  ;;  %5105 = vmatprep.mubr.msk.f32.mxu1 %vm5527_vm1, %v5526_v3 }
0x38aa   :  { %5098 = vmatpush3.msra.mxu1 %v6224_v14 }
0x38ab   :  { %5099 = vmatprep.subr.mxu1 %v5526_v3 }
0x38ac   :  { %5100 = vmatpush3.msra.mxu1 %v6230_v15 }
0x38ad   :  { %5101 = vmatprep.subr.mxu1 %v5526_v3 }
0x38ae   :  { %5102 = vmatpush3.msra.mxu1 %v6237_v16 }
0x38af   :  { %5103 = vmatprep.subr.mxu1 %v5526_v3 }
0x38b0   :  { %5104 = vmatpush3.msra.mxu1 %v6244_v17 }
0x38b1   :  { %5119 = vmatprep.subr.mxu1 %v5526_v3 }
0x3960   :  { %v2960_v24 = vpop.f32.mrf.mxu1 }
0x3961   :  { %v2964_v50 = vadd.f32 %v2960_v24, %v2161_v22  ;;  %v3120_v22 = vpop.f32.mrf.mxu0 }
0x3962   :  { %v5065_v25 = vpop.f32.mrf.mxu1  ;;  %v3121_v30 = vadd.f32 %v6281_v31, %v3120_v22 }
0x3963   :  { %v4446_v52 = vmul.f32 -1.442695, %v2964_v50  ;;  %v6325_v23 = vpop.f32.mrf.mxu0 }
0x3965   :  { %v6327_v24 = vpop.f32.mrf.mxu0 }
0x3968   :  { %v3224_v33 = vpop.f32.mrf.mxu1 }
0x3969   :  { %v3228_v34 = vadd.f32 %v3224_v33, %v3111_v32 }
0x396a   :  { %v5096_v26 = vpop.f32.mrf.mxu1 }
0x396b   :  { %5410 = vtanh.f32 %v3228_v34  ;;  %v4465_v43 = vmul.f32 -1.442695, %v3228_v34 }
0x396d   :  { %5412 = vpow2.f32 %v4465_v43 }
0x3978   :  { %v5411_v36 = vpop.eup %5410 }
0x3979   :  { %3238 = vrot.lane.b32.xlu0 %v5411_v36, %s5528_s19 }
0x397a   :  { %v5413_v59 = vpop.eup %5412 }
0x397b   :  { %v3232_v42 = vadd.f32 1.0, %v5413_v59 }
0x397d   :  { %5414 = vrcp.f32 %v3232_v42 }
0x398a   :  { %v5415_v44 = vpop.eup %5414 }
0x398b   :  { %v3236_v46 = vmul.f32 0.0, %v5415_v44 }
0x39eb   :  { %v3239_v45 = vpop.permute.xlu0 %3238 }
0x39ec   :  { %v3241_v27 = vmul.f32 %v5415_v44, %v3239_v45 }
0x39ee   :  { %3243 = vrot.lane.b32.xlu1 %v3241_v27, %s5529_s3 }
0x3a60   :  { %v3244_v28 = vpop.permute.xlu1 %3243 }
0x3a61   :  { %v3246_v38 = vadd.f32 %v3244_v28, %v3236_v46 }
0x3a63   :  { %5416 = vtanh.f32 %v3246_v38 }
0x3a64   :  { %5418 = vtanh.f32 %v2964_v50 }
0x3a65   :  { %5420 = vpow2.f32 %v4446_v52 }
0x3a70   :  { %v5417_v48 = vpop.eup %5416 }
0x3a71   :  { %3249 = vrot.lane.b32.xlu0 %v5417_v48, %s5528_s19  ;;  %v5419_v29 = vpop.eup %5418 }
0x3a72   :  { %v5421_v49 = vpop.eup %5420 }
0x3a73   :  { %v2968_v35 = vadd.f32 1.0, %v5421_v49  ;;  %v3126_v49 = vadd.f32 %v5079_v21, %v6281_v31 }
0x3a75   :  { %2974 = vrot.lane.b32.xlu0 %v5419_v29, %s5528_s19  ;;  %5422 = vrcp.f32 %v2968_v35 }
0x3a82   :  { %v5423_v54 = vpop.eup %5422 }
0x3a83   :  { %v2972_v1 = vmul.f32 %v5423_v54, %v6217_v37 }
0x3ae3   :  { %v3250_v51 = vpop.permute.xlu0 %3249 }
0x3ae4   :  { %v3252_v53 = vmul.f32 %v5415_v44, %v3250_v51 }
0x3ae6   :  { %3255 = vrot.lane.b32.xlu1 %v3252_v53, %s5529_s3 }
0x3ae7   :  { %v2975_v39 = vpop.permute.xlu0 %2974 }
0x3ae8   :  { %v2977_v55 = vmul.f32 %v5423_v54, %v2975_v39 }
0x3aea   :  { %2979 = vrot.lane.b32.xlu0 %v2977_v55, %s5529_s3 }
0x3b58   :  { %v3256_v40 = vpop.permute.xlu1 %3255 }
0x3b59   :  { %5106 = vmatmul.mubr.msk.f32.vlgmr.msra.gmra.mxu1 %vm202_vm2, %v3256_v40 }
0x3b5a   :  { %5120 = vmatpush3.msra.mxu1 %v6224_v14  ;;  %5127 = vmatprep.mubr.msk.f32.mxu1 %vm5527_vm1, %v5526_v3 }
0x3b5b   :  { %5121 = vmatprep.subr.mxu1 %v5526_v3 }
0x3b5c   :  { %v2980_v57 = vpop.permute.xlu0 %2979  ;;  %5122 = vmatpush3.msra.mxu1 %v6230_v15 }
0x3b5d   :  { %v2982_v41 = vadd.f32 %v2980_v57, %v2972_v1  ;;  %5123 = vmatprep.subr.mxu1 %v5526_v3 }
0x3b5e   :  { %5124 = vmatpush3.msra.mxu1 %v6237_v16 }
0x3b5f   :  { %5424 = vtanh.f32 %v2982_v41  ;;  %5125 = vmatprep.subr.mxu1 %v5526_v3 }
0x3b60   :  { %5126 = vmatpush3.msra.mxu1 %v6244_v17 }
0x3b61   :  { %5141 = vmatprep.subr.mxu1 %v5526_v3 }
0x3b6c   :  { %v5425_v10 = vpop.eup %5424 }
0x3b6d   :  { %2985 = vrot.lane.b32.xlu0 %v5425_v10, %s5528_s19 }
0x3bdf   :  { %v2986_v58 = vpop.permute.xlu0 %2985 }
0x3be0   :  { %v2988_v47 = vmul.f32 %v5423_v54, %v2986_v58 }
0x3be2   :  { %2990 = vrot.lane.b32.xlu0 %v2988_v47, %s5529_s3 }
0x3c19   :  { %v3325_v61 = vpop.f32.mrf.mxu1 }
0x3c1a   :  { %v3329_v62 = vadd.f32 %v3325_v61, %v3116_v60 }
0x3c1b   :  { %v5107_v5 = vpop.f32.mrf.mxu1 }
0x3c1c   :  { %5426 = vtanh.f32 %v3329_v62  ;;  %v4467_v2 = vmul.f32 -1.442695, %v3329_v62 }
0x3c1e   :  { %5428 = vpow2.f32 %v4467_v2 }
0x3c29   :  { %v5427_v63 = vpop.eup %5426 }
0x3c2a   :  { %3339 = vrot.lane.b32.xlu1 %v5427_v63, %s5528_s19  ;;  %v3131_v63 = vadd.f32 %v6281_v31, %v6327_v24 }
0x3c2b   :  { %v5429_v8 = vpop.eup %5428 }
0x3c2c   :  { %v3333_v4 = vadd.f32 1.0, %v5429_v8 }
0x3c2e   :  { %5430 = vrcp.f32 %v3333_v4 }
0x3c3b   :  { %v5431_v6 = vpop.eup %5430 }
0x3c3c   :  { %v3337_v11 = vmul.f32 %v5431_v6, %v3246_v38 }
0x3c54   :  { %v2991_v7 = vpop.permute.xlu0 %2990 }
0x3c55   :  { %2993 = vst.msk [vmem:[#allocation2 + $0x38] sm:$0xff] %vm202_vm2, %v2991_v7 }
0x3c5c   :  { %v3001_v0 = vld [vmem:[#allocation2 + $0x38] sm:$0xff] }
0x3c5d   :  { %5084 = vmatmul.mubr.msk.f32.gmra.mxu0 %vm202_vm2, %v3001_v0 }
0x3c5e   :  { %5116 = vmatprep.mubr.msk.f32.mxu0 %vm5527_vm1, %v5526_v3 }
0x3c9c   :  { %v3340_v56 = vpop.permute.xlu1 %3339 }
0x3c9d   :  { %v3342_v9 = vmul.f32 %v5431_v6, %v3340_v56 }
0x3c9f   :  { %3344 = vrot.lane.b32.xlu1 %v3342_v9, %s5529_s3 }
0x3d11   :  { %v3345_v12 = vpop.permute.xlu1 %3344 }
0x3d12   :  { %v3347_v37 = vadd.f32 %v3345_v12, %v3337_v11 }
0x3d14   :  { %5432 = vtanh.f32 %v3347_v37 }
0x3d1d   :  { %v6329_v50 = vpop.f32.mrf.mxu0 }
0x3d1f   :  { %v6331_v25 = vpop.f32.mrf.mxu0 }
0x3d21   :  { %v5433_v13 = vpop.eup %5432 }
0x3d22   :  { %3350 = vrot.lane.b32.xlu1 %v5433_v13, %s5528_s19 }
0x3d94   :  { %v3351_v18 = vpop.permute.xlu1 %3350 }
0x3d95   :  { %v3353_v19 = vmul.f32 %v5431_v6, %v3351_v18 }
0x3d97   :  { %3356 = vrot.lane.b32.xlu1 %v3353_v19, %s5529_s3 }
0x3e09   :  { %v3357_v20 = vpop.permute.xlu1 %3356 }
0x3e0a   :  { %5117 = vmatmul.mubr.msk.f32.vlgmr.msra.gmra.mxu0 %vm202_vm2, %v3357_v20 }
0x3e0b   :  { %5131 = vmatpush3.msra.mxu0 %v6224_v14  ;;  %5138 = vmatprep.mubr.msk.f32.mxu0 %vm5527_vm1, %v5526_v3 }
0x3e0c   :  { %5132 = vmatprep.subr.mxu0 %v5526_v3 }
0x3e0d   :  { %5133 = vmatpush3.msra.mxu0 %v6230_v15 }
0x3e0e   :  { %5134 = vmatprep.subr.mxu0 %v5526_v3 }
0x3e0f   :  { %5135 = vmatpush3.msra.mxu0 %v6237_v16 }
0x3e10   :  { %5136 = vmatprep.subr.mxu0 %v5526_v3 }
0x3e11   :  { %5137 = vmatpush3.msra.mxu0 %v6244_v17 }
0x3e12   :  { %5152 = vmatprep.subr.mxu0 %v5526_v3 }
0x3eca   :  { %v3426_v32 = vpop.f32.mrf.mxu0 }
0x3ecb   :  { %v3430_v33 = vadd.f32 %v3426_v32, %v3121_v30 }
0x3ecc   :  { %v5118_v34 = vpop.f32.mrf.mxu0 }
0x3ecd   :  { %5434 = vtanh.f32 %v3430_v33  ;;  %v4469_v36 = vmul.f32 -1.442695, %v3430_v33 }
0x3ecf   :  { %5436 = vpow2.f32 %v4469_v36 }
0x3eda   :  { %v5435_v26 = vpop.eup %5434 }
0x3edb   :  { %3440 = vrot.lane.b32.xlu0 %v5435_v26, %s5528_s19 }
0x3edc   :  { %v5437_v43 = vpop.eup %5436 }
0x3edd   :  { %v3434_v59 = vadd.f32 1.0, %v5437_v43 }
0x3edf   :  { %5438 = vrcp.f32 %v3434_v59 }
0x3eec   :  { %v5439_v42 = vpop.eup %5438 }
0x3eed   :  { %v3438_v27 = vmul.f32 %v5439_v42, %v3347_v37 }
0x3f4d   :  { %v3441_v44 = vpop.permute.xlu0 %3440 }
0x3f4e   :  { %v3443_v45 = vmul.f32 %v5439_v42, %v3441_v44 }
0x3f50   :  { %3445 = vrot.lane.b32.xlu1 %v3443_v45, %s5529_s3 }
0x3fc2   :  { %v3446_v46 = vpop.permute.xlu1 %3445 }
0x3fc3   :  { %v3448_v28 = vadd.f32 %v3446_v46, %v3438_v27  ;;  %v3141_v46 = vadd.f32 %v6281_v31, %v6331_v25 }
0x3fc5   :  { %5440 = vtanh.f32 %v3448_v28 }
0x3fd2   :  { %v5441_v38 = vpop.eup %5440 }
0x3fd3   :  { %3451 = vrot.lane.b32.xlu0 %v5441_v38, %s5528_s19 }
0x4045   :  { %v3452_v48 = vpop.permute.xlu0 %3451 }
0x4046   :  { %v3454_v29 = vmul.f32 %v5439_v42, %v3452_v48 }
0x4048   :  { %3457 = vrot.lane.b32.xlu1 %v3454_v29, %s5529_s3 }
0x40ba   :  { %v3458_v52 = vpop.permute.xlu1 %3457 }
0x40bb   :  { %5128 = vmatmul.mubr.msk.f32.vlgmr.msra.gmra.mxu1 %vm202_vm2, %v3458_v52 }
0x40bc   :  { %5142 = vmatpush3.msra.mxu1 %v6224_v14  ;;  %5149 = vmatprep.mubr.msk.f32.mxu1 %vm5527_vm1, %v5526_v3 }
0x40bd   :  { %5143 = vmatprep.subr.mxu1 %v5526_v3 }
0x40be   :  { %5144 = vmatpush3.msra.mxu1 %v6230_v15 }
0x40bf   :  { %5145 = vmatprep.subr.mxu1 %v5526_v3 }
0x40c0   :  { %5146 = vmatpush3.msra.mxu1 %v6237_v16 }
0x40c1   :  { %5147 = vmatprep.subr.mxu1 %v5526_v3 }
0x40c2   :  { %5148 = vmatpush3.msra.mxu1 %v6244_v17 }
0x40c3   :  { %5163 = vmatprep.subr.mxu1 %v5526_v3 }
0x417b   :  { %v3527_v35 = vpop.f32.mrf.mxu1 }
0x417c   :  { %v3531_v51 = vadd.f32 %v3527_v35, %v3126_v49 }
0x417d   :  { %v5129_v53 = vpop.f32.mrf.mxu1 }
0x417e   :  { %5442 = vtanh.f32 %v3531_v51  ;;  %v4471_v39 = vmul.f32 -1.442695, %v3531_v51 }
0x4180   :  { %5444 = vpow2.f32 %v4471_v39 }
0x418b   :  { %v5443_v54 = vpop.eup %5442 }
0x418c   :  { %3541 = vrot.lane.b32.xlu0 %v5443_v54, %s5528_s19 }
0x418d   :  { %v5445_v55 = vpop.eup %5444 }
0x418e   :  { %v3535_v40 = vadd.f32 1.0, %v5445_v55 }
0x4190   :  { %5446 = vrcp.f32 %v3535_v40 }
0x419d   :  { %v5447_v1 = vpop.eup %5446 }
0x419e   :  { %v3539_v10 = vmul.f32 %v5447_v1, %v3448_v28 }
0x41fe   :  { %v3542_v57 = vpop.permute.xlu0 %3541 }
0x41ff   :  { %v3544_v41 = vmul.f32 %v5447_v1, %v3542_v57 }
0x4201   :  { %3546 = vrot.lane.b32.xlu1 %v3544_v41, %s5529_s3 }
0x4273   :  { %v3547_v58 = vpop.permute.xlu1 %3546 }
0x4274   :  { %v3549_v47 = vadd.f32 %v3547_v58, %v3539_v10  ;;  %v3146_v10 = vadd.f32 %v6329_v50, %v6281_v31  ;;  %v3970_v50 = vld [vmem:[%s6626_s7 + $0x50] sm:$0xff] }
0x4276   :  { %5448 = vtanh.f32 %v3549_v47 }
0x4283   :  { %v5449_v60 = vpop.eup %5448 }
0x4284   :  { %3552 = vrot.lane.b32.xlu0 %v5449_v60, %s5528_s19 }
0x42f6   :  { %v3553_v61 = vpop.permute.xlu0 %3552 }
0x42f7   :  { %v3555_v62 = vmul.f32 %v5447_v1, %v3553_v61 }
0x42f9   :  { %3558 = vrot.lane.b32.xlu1 %v3555_v62, %s5529_s3 }
0x436b   :  { %v3559_v5 = vpop.permute.xlu1 %3558 }
0x436c   :  { %5139 = vmatmul.mubr.msk.f32.vlgmr.msra.gmra.mxu0 %vm202_vm2, %v3559_v5 }
0x436d   :  { %5153 = vmatpush3.msra.mxu0 %v6224_v14  ;;  %5160 = vmatprep.mubr.msk.f32.mxu0 %vm5527_vm1, %v5526_v3 }
0x436e   :  { %5154 = vmatprep.subr.mxu0 %v5526_v3 }
0x436f   :  { %5155 = vmatpush3.msra.mxu0 %v6230_v15 }
0x4370   :  { %5156 = vmatprep.subr.mxu0 %v5526_v3 }
0x4371   :  { %5157 = vmatpush3.msra.mxu0 %v6237_v16 }
0x4372   :  { %5158 = vmatprep.subr.mxu0 %v5526_v3 }
0x4373   :  { %5159 = vmatpush3.msra.mxu0 %v6244_v17 }
0x4374   :  { %4018 = vmatprep.subr.mxu0 %v3970_v50  ;;  %v3974_v50 = vlaneseq }
0x442c   :  { %v3628_v7 = vpop.f32.mrf.mxu0 }
0x442d   :  { %v3632_v0 = vadd.f32 %v3628_v7, %v3131_v63 }
0x442e   :  { %v5140_v2 = vpop.f32.mrf.mxu0 }
0x442f   :  { %5450 = vtanh.f32 %v3632_v0  ;;  %v4473_v4 = vmul.f32 -1.442695, %v3632_v0 }
0x4431   :  { %5452 = vpow2.f32 %v4473_v4 }
0x443c   :  { %v5451_v8 = vpop.eup %5450 }
0x443d   :  { %3642 = vrot.lane.b32.xlu0 %v5451_v8, %s5528_s19 }
0x443e   :  { %v5453_v6 = vpop.eup %5452 }
0x443f   :  { %v3636_v56 = vadd.f32 1.0, %v5453_v6  ;;  %v3969_v6 = vld [vmem:[%s6626_s7 + $0x48] sm:$0xff] }
0x4441   :  { %5454 = vrcp.f32 %v3636_v56  ;;  %v3971_v56 = vld [vmem:[%s6626_s7 + $0x58] sm:$0xff] }
0x444e   :  { %v5455_v9 = vpop.eup %5454 }
0x444f   :  { %v3640_v37 = vmul.f32 %v5455_v9, %v3549_v47 }
0x44af   :  { %v3643_v11 = vpop.permute.xlu0 %3642 }
0x44b0   :  { %v3645_v12 = vmul.f32 %v5455_v9, %v3643_v11  ;;  %v3966_v11 = vld [vmem:[%s6626_s7 + $0x30] sm:$0xff] }
0x44b2   :  { %3647 = vrot.lane.b32.xlu1 %v3645_v12, %s5529_s3  ;;  %v3968_v12 = vld [vmem:[%s6626_s7 + $0x40] sm:$0xff] }
0x4524   :  { %v3648_v13 = vpop.permute.xlu1 %3647 }
0x4525   :  { %v3650_v18 = vadd.f32 %v3648_v13, %v3640_v37  ;;  %v3964_v37 = vld [vmem:[%s6626_s7 + $0x20] sm:$0xff]  ;;  %v3965_v13 = vld [vmem:[%s6626_s7 + $0x28] sm:$0xff] }
0x4527   :  { %5456 = vtanh.f32 %v3650_v18 }
0x4534   :  { %v5457_v19 = vpop.eup %5456 }
0x4535   :  { %3653 = vrot.lane.b32.xlu0 %v5457_v19, %s5528_s19  ;;  %v3961_v19 = vld [vmem:[%s6626_s7 + $0x8] sm:$0xff] }
0x45a7   :  { %v3654_v20 = vpop.permute.xlu0 %3653 }
0x45a8   :  { %v3656_v21 = vmul.f32 %v5455_v9, %v3654_v20  ;;  %v3967_v9 = vld [vmem:[%s6626_s7 + $0x38] sm:$0xff]  ;;  %v3962_v20 = vld [vmem:[%s6626_s7 + $0x10] sm:$0xff] }
0x45aa   :  { %3659 = vrot.lane.b32.xlu1 %v3656_v21, %s5529_s3  ;;  %v3960_v21 = vld [vmem:[%s6626_s7] sm:$0xff] }
0x461c   :  { %v3660_v22 = vpop.permute.xlu1 %3659 }
0x461d   :  { %5150 = vmatmul.mubr.msk.f32.vlgmr.msra.gmra.mxu1 %vm202_vm2, %v3660_v22 }
0x461e   :  { %5164 = vmatpush3.msra.mxu1 %v6224_v14  ;;  %5171 = vmatprep.mubr.msk.f32.mxu1 %vm5527_vm1, %v5526_v3  ;;  %v3136_v14 = vadd.f32 %v6325_v23, %v6281_v31 }
0x461f   :  { %5165 = vmatprep.subr.mxu1 %v5526_v3 }
0x4620   :  { %5166 = vmatpush3.msra.mxu1 %v6230_v15 }
0x4621   :  { %5167 = vmatprep.subr.mxu1 %v5526_v3 }
0x4622   :  { %5168 = vmatpush3.msra.mxu1 %v6237_v16 }
0x4623   :  { %5169 = vmatprep.subr.mxu1 %v5526_v3 }
0x4624   :  { %5170 = vmatpush3.msra.mxu1 %v6244_v17 }
0x4625   :  { %5174 = vmatprep.subr.mxu1 %v5526_v3 }
0x46dd   :  { %v3729_v24 = vpop.f32.mrf.mxu1 }
0x46de   :  { %v3733_v30 = vadd.f32 %v3729_v24, %v3136_v14  ;;  %v4166_v14 = vld [vmem:[%s6628_s9 + $0xf8] sm:$0xff] }
0x46df   :  { %v5151_v32 = vpop.f32.mrf.mxu1 }
0x46e0   :  { %5458 = vtanh.f32 %v3733_v30  ;;  %v4475_v15 = vmul.f32 -1.442695, %v3733_v30  ;;  %v4182_v32 = vld [vmem:[%s6628_s9 + $0x178] sm:$0xff] }
0x46e2   :  { %5460 = vpow2.f32 %v4475_v15 }
0x46ed   :  { %v5459_v33 = vpop.eup %5458 }
0x46ee   :  { %3743 = vrot.lane.b32.xlu0 %v5459_v33, %s5528_s19  ;;  %v4150_v33 = vld [vmem:[%s6628_s9 + $0x78] sm:$0xff] }
0x46ef   :  { %v5461_v34 = vpop.eup %5460 }
0x46f0   :  { %v3737_v16 = vadd.f32 1.0, %v5461_v34  ;;  %v4165_v34 = vld [vmem:[%s6628_s9 + $0xf0] sm:$0xff] }
0x46f2   :  { %5462 = vrcp.f32 %v3737_v16  ;;  %v4181_v16 = vld [vmem:[%s6628_s9 + $0x170] sm:$0xff] }
0x46ff   :  { %v5463_v26 = vpop.eup %5462 }
0x4700   :  { %v3741_v43 = vmul.f32 %v5463_v26, %v3650_v18  ;;  %v3963_v18 = vld [vmem:[%s6626_s7 + $0x18] sm:$0xff] }
0x4760   :  { %v3744_v36 = vpop.permute.xlu0 %3743 }
0x4761   :  { %v3746_v17 = vmul.f32 %v5463_v26, %v3744_v36  ;;  %v4164_v36 = vld [vmem:[%s6628_s9 + $0xe8] sm:$0xff] }
0x4763   :  { %3748 = vrot.lane.b32.xlu1 %v3746_v17, %s5529_s3  ;;  %v4180_v17 = vld [vmem:[%s6628_s9 + $0x168] sm:$0xff] }
0x47d5   :  { %v3749_v59 = vpop.permute.xlu1 %3748 }
0x47d6   :  { %v3751_v23 = vadd.f32 %v3749_v59, %v3741_v43  ;;  %v4148_v43 = vld [vmem:[%s6628_s9 + $0x68] sm:$0xff]  ;;  %v4163_v59 = vld [vmem:[%s6628_s9 + $0xe0] sm:$0xff] }
0x47d8   :  { %5464 = vtanh.f32 %v3751_v23 }
0x47e5   :  { %v5465_v42 = vpop.eup %5464 }
0x47e6   :  { %3754 = vrot.lane.b32.xlu0 %v5465_v42, %s5528_s19  ;;  %v4147_v42 = vld [vmem:[%s6628_s9 + $0x60] sm:$0xff] }
0x4858   :  { %v3755_v44 = vpop.permute.xlu0 %3754 }
0x4859   :  { %v3757_v45 = vmul.f32 %v5463_v26, %v3755_v44  ;;  %v4149_v26 = vld [vmem:[%s6628_s9 + $0x70] sm:$0xff]  ;;  %v4162_v44 = vld [vmem:[%s6628_s9 + $0xd8] sm:$0xff] }
0x485b   :  { %3760 = vrot.lane.b32.xlu1 %v3757_v45, %s5529_s3  ;;  %v4178_v45 = vld [vmem:[%s6628_s9 + $0x158] sm:$0xff] }
0x48cd   :  { %v3761_v27 = vpop.permute.xlu1 %3760 }
0x48ce   :  { %5161 = vmatmul.mubr.msk.f32.vlgmr.msra.gmra.mxu0 %vm202_vm2, %v3761_v27  ;;  %v4146_v27 = vld [vmem:[%s6628_s9 + $0x58] sm:$0xff] }
0x48cf   :  { %4058 = vmatprep.mubr.f32.mxu0 %v5526_v3  ;;  %4019 = vmatpush1.msra.mxu0 %v3969_v6  ;;  %v3975_v6 = vshrl.u32 %v3974_v50, 7 }
0x48d0   :  { %4020 = vmatprep.subr.mxu0 %v3967_v9 }
0x48d1   :  { %4021 = vmatpush1.msra.mxu0 %v3966_v11  ;;  %v3984_v9 = vsub.s32 2, %v3975_v6  ;;  %v3972_v11 = vld [vmem:[%s6627_s8] sm:$0x7]  ;;  %s5530_s8 = smov [#allocation4]  }
0x48d2   :  { %4022 = vmatprep.subr.mxu0 %v3964_v37 }
0x48d3   :  { %4023 = vmatpush1.msra.mxu0 %v3963_v18 }
0x48d4   :  { %4024 = vmatprep.subr.mxu0 %v3961_v19 }
0x48d5   :  { %4025 = vmatpush1.msra.mxu0 %v3960_v21 }
0x48d6   :  { %4694 = vmatprep.subr.mxu0 %v4166_v14 }
0x498e   :  { %v3830_v28 = vpop.f32.mrf.mxu0 }
0x498f   :  { %v3834_v38 = vadd.f32 %v3830_v28, %v3141_v46  ;;  %v4161_v46 = vld [vmem:[%s6628_s9 + $0xd0] sm:$0xff] }
0x4990   :  { %v5162_v48 = vpop.f32.mrf.mxu0  ;;  %v4177_v28 = vld [vmem:[%s6628_s9 + $0x150] sm:$0xff] }
0x4991   :  { %5466 = vtanh.f32 %v3834_v38  ;;  %v4477_v52 = vmul.f32 -1.442695, %v3834_v38  ;;  %v4145_v38 = vld [vmem:[%s6628_s9 + $0x50] sm:$0xff]  ;;  %v4160_v48 = vld [vmem:[%s6628_s9 + $0xc8] sm:$0xff] }
0x4993   :  { %5468 = vpow2.f32 %v4477_v52  ;;  %v4144_v52 = vld [vmem:[%s6628_s9 + $0x48] sm:$0xff] }
0x499e   :  { %v5467_v29 = vpop.eup %5466 }
0x499f   :  { %3844 = vrot.lane.b32.xlu0 %v5467_v29, %s5528_s19  ;;  %v4176_v29 = vld [vmem:[%s6628_s9 + $0x148] sm:$0xff] }
0x49a0   :  { %v5469_v49 = vpop.eup %5468 }
0x49a1   :  { %v3838_v35 = vadd.f32 1.0, %v5469_v49  ;;  %v4159_v49 = vld [vmem:[%s6628_s9 + $0xc0] sm:$0xff] }
0x49a3   :  { %5470 = vrcp.f32 %v3838_v35  ;;  %v4175_v35 = vld [vmem:[%s6628_s9 + $0x140] sm:$0xff] }
0x49b0   :  { %v5471_v51 = vpop.eup %5470 }
0x49b1   :  { %v3842_v39 = vmul.f32 %v5471_v51, %v3751_v23  ;;  %v4179_v23 = vld [vmem:[%s6628_s9 + $0x160] sm:$0xff] }
0x4a11   :  { %v3845_v53 = vpop.permute.xlu0 %3844 }
0x4a12   :  { %v3847_v54 = vmul.f32 %v5471_v51, %v3845_v53  ;;  %v4158_v53 = vld [vmem:[%s6628_s9 + $0xb8] sm:$0xff] }
0x4a14   :  { %3849 = vrot.lane.b32.xlu1 %v3847_v54, %s5529_s3  ;;  %v4174_v54 = vld [vmem:[%s6628_s9 + $0x138] sm:$0xff] }
0x4a86   :  { %v3850_v55 = vpop.permute.xlu1 %3849 }
0x4a87   :  { %v3852_v25 = vadd.f32 %v3850_v55, %v3842_v39  ;;  %v4142_v39 = vld [vmem:[%s6628_s9 + $0x38] sm:$0xff]  ;;  %v4157_v55 = vld [vmem:[%s6628_s9 + $0xb0] sm:$0xff] }
0x4a89   :  { %5472 = vtanh.f32 %v3852_v25 }
0x4a96   :  { %v5473_v40 = vpop.eup %5472 }
0x4a97   :  { %3855 = vrot.lane.b32.xlu0 %v5473_v40, %s5528_s19  ;;  %v4141_v40 = vld [vmem:[%s6628_s9 + $0x30] sm:$0xff] }
0x4b09   :  { %v3856_v1 = vpop.permute.xlu0 %3855 }
0x4b0a   :  { %v3858_v57 = vmul.f32 %v5471_v51, %v3856_v1  ;;  %v4143_v51 = vld [vmem:[%s6628_s9 + $0x40] sm:$0xff]  ;;  %v4156_v1 = vld [vmem:[%s6628_s9 + $0xa8] sm:$0xff] }
0x4b0c   :  { %3861 = vrot.lane.b32.xlu1 %v3858_v57, %s5529_s3  ;;  %v4172_v57 = vld [vmem:[%s6628_s9 + $0x128] sm:$0xff] }
0x4b7e   :  { %v3862_v41 = vpop.permute.xlu1 %3861 }
0x4b7f   :  { %5172 = vmatmul.mubr.msk.f32.vlgmr.msra.gmra.mxu1 %vm202_vm2, %v3862_v41  ;;  %v4140_v41 = vld [vmem:[%s6628_s9 + $0x28] sm:$0xff] }
0x4b80   :  { %5182 = vmatprep.mubr.msk.f32.mxu1 %vm5527_vm1, %v5526_v3  ;;  %5175 = vmatpush3.msra.mxu1 %v3971_v56  ;;  %v3976_v56 = vsub.s32 0, %v3975_v6 }
0x4b81   :  { %5176 = vmatprep.subr.mxu1 %v5526_v3 }
0x4b82   :  { %5177 = vmatpush3.msra.mxu1 %v3968_v12  ;;  %v3980_v12 = vsub.s32 1, %v3975_v6  ;;  %v3977_v37 = vrot.slane %v3972_v11, %v3976_v56 }
0x4b83   :  { %5178 = vmatprep.subr.mxu1 %v5526_v3 }
0x4b84   :  { %5179 = vmatpush3.msra.mxu1 %v3965_v13  ;;  %v3985_v13 = vrot.slane %v3972_v11, %v3984_v9  ;;  %v3981_v18 = vrot.slane %v3972_v11, %v3980_v12 }
0x4b85   :  { %5180 = vmatprep.subr.mxu1 %v5526_v3 }
0x4b86   :  { %5181 = vmatpush3.msra.mxu1 %v3962_v20 }
0x4b87   :  { %5185 = vmatprep.subr.mxu1 %v5526_v3 }
0x4c3f   :  { %v3931_v58 = vpop.f32.mrf.mxu1 }
0x4c40   :  { %v3935_v47 = vadd.f32 %v3931_v58, %v3146_v10  ;;  %v4155_v10 = vld [vmem:[%s6628_s9 + $0xa0] sm:$0xff] }
0x4c41   :  { %v5173_v60 = vpop.f32.mrf.mxu1  ;;  %v4171_v58 = vld [vmem:[%s6628_s9 + $0x120] sm:$0xff] }
0x4c42   :  { %5474 = vtanh.f32 %v3935_v47  ;;  %v4479_v62 = vmul.f32 -1.442695, %v3935_v47  ;;  %v4139_v47 = vld [vmem:[%s6628_s9 + $0x20] sm:$0xff]  ;;  %v4154_v60 = vld [vmem:[%s6628_s9 + $0x98] sm:$0xff] }
0x4c44   :  { %5476 = vpow2.f32 %v4479_v62  ;;  %v4138_v62 = vld [vmem:[%s6628_s9 + $0x18] sm:$0xff] }
0x4c4f   :  { %v5475_v61 = vpop.eup %5474 }
0x4c50   :  { %3945 = vrot.lane.b32.xlu0 %v5475_v61, %s5528_s19  ;;  %v4170_v61 = vld [vmem:[%s6628_s9 + $0x118] sm:$0xff] }
0x4c51   :  { %v5477_v5 = vpop.eup %5476 }
0x4c52   :  { %v3939_v63 = vadd.f32 1.0, %v5477_v5  ;;  %v4169_v5 = vld [vmem:[%s6628_s9 + $0x110] sm:$0xff] }
0x4c54   :  { %5478 = vrcp.f32 %v3939_v63  ;;  %v4153_v63 = vld [vmem:[%s6628_s9 + $0x90] sm:$0xff] }
0x4c61   :  { %v5479_v7 = vpop.eup %5478 }
0x4c62   :  { %v3943_v8 = vmul.f32 %v5479_v7, %v3852_v25  ;;  %v4173_v25 = vld [vmem:[%s6628_s9 + $0x130] sm:$0xff] }
0x4cc2   :  { %v3946_v0 = vpop.permute.xlu0 %3945 }
0x4cc3   :  { %v3948_v2 = vmul.f32 %v5479_v7, %v3946_v0  ;;  %v4137_v0 = vld [vmem:[%s6628_s9 + $0x10] sm:$0xff] }
0x4cc5   :  { %3950 = vrot.lane.b32.xlu1 %v3948_v2, %s5529_s3  ;;  %v4152_v2 = vld [vmem:[%s6628_s9 + $0x88] sm:$0xff] }
0x4d37   :  { %v3951_v4 = vpop.permute.xlu1 %3950 }
0x4d38   :  { %v3953_v31 = vadd.f32 %v3951_v4, %v3943_v8  ;;  %v4167_v8 = vld [vmem:[%s6628_s9 + $0x100] sm:$0xff]  ;;  %v4136_v4 = vld [vmem:[%s6628_s9 + $0x8] sm:$0xff] }
0x4d3a   :  { %5480 = vtanh.f32 %v3953_v31  ;;  %v4151_v31 = vld [vmem:[%s6628_s9 + $0x80] sm:$0xff] }
0x4d47   :  { %v5481_v22 = vpop.eup %5480 }
0x4d48   :  { %3956 = vrot.lane.b32.xlu0 %v5481_v22, %s5528_s19 }
0x4dba   :  { %v3957_v24 = vpop.permute.xlu0 %3956 }
0x4dbb   :  { %v3959_v30 = vmul.f32 %v5479_v7, %v3957_v24  ;;  %v4168_v7 = vld [vmem:[%s6628_s9 + $0x108] sm:$0xff] }
0x4dbd   :  { %3990 = vrot.lane.b32.xlu1 %v3959_v30, %s5529_s3 }
0x4e2f   :  { %v3991_v15 = vpop.permute.xlu1 %3990 }
0x4e30   :  { %4480 = vmatmul.mubr.msk.f32.vlgmr.msra.gmra.mxu0 %vm202_vm2, %v3991_v15  ;;  %5183 = vmatmul.mubr.msk.f32.vlgmr.msra.gmra.mxu1 %vm202_vm2, %v3991_v15 }
0x4e31   :  { %5186 = vmatpush3.msra.mxu1 %v4182_v32  ;;  %4695 = vmatpush3.msra.mxu0 %v4150_v33 }
0x4e32   :  { %5187 = vmatprep.subr.mxu1 %v5526_v3  ;;  %4696 = vmatprep.subr.mxu0 %v4165_v34 }
0x4e33   :  { %5188 = vmatpush3.msra.mxu1 %v4181_v16  ;;  %4697 = vmatpush3.msra.mxu0 %v4149_v26 }
0x4e34   :  { %5189 = vmatprep.subr.mxu1 %v5526_v3  ;;  %4698 = vmatprep.subr.mxu0 %v4164_v36 }
0x4e35   :  { %5190 = vmatpush3.msra.mxu1 %v4180_v17  ;;  %4699 = vmatpush3.msra.mxu0 %v4148_v43 }
0x4e36   :  { %5191 = vmatprep.subr.mxu1 %v5526_v3  ;;  %4700 = vmatprep.subr.mxu0 %v4163_v59 }
0x4e37   :  { %5192 = vmatpush3.msra.mxu1 %v4179_v23  ;;  %4701 = vmatpush3.msra.mxu0 %v4147_v42 }
0x4e38   :  { %5193 = vmatprep.subr.mxu1 %v5526_v3  ;;  %4702 = vmatprep.subr.mxu0 %v4162_v44 }
0x4e39   :  { %5194 = vmatpush3.msra.mxu1 %v4178_v45  ;;  %4703 = vmatpush3.msra.mxu0 %v4146_v27 }
0x4e3a   :  { %5195 = vmatprep.subr.mxu1 %v5526_v3  ;;  %4704 = vmatprep.subr.mxu0 %v4161_v46 }
0x4e3b   :  { %5196 = vmatpush3.msra.mxu1 %v4177_v28  ;;  %4705 = vmatpush3.msra.mxu0 %v4145_v38 }
0x4e3c   :  { %5197 = vmatprep.subr.mxu1 %v5526_v3  ;;  %4706 = vmatprep.subr.mxu0 %v4160_v48 }
0x4e3d   :  { %5198 = vmatpush3.msra.mxu1 %v4176_v29  ;;  %4707 = vmatpush3.msra.mxu0 %v4144_v52 }
0x4e3e   :  { %5199 = vmatprep.subr.mxu1 %v5526_v3  ;;  %4708 = vmatprep.subr.mxu0 %v4159_v49 }
0x4e3f   :  { %5200 = vmatpush3.msra.mxu1 %v4175_v35  ;;  %4709 = vmatpush3.msra.mxu0 %v4143_v51 }
0x4e40   :  { %5201 = vmatprep.subr.mxu1 %v5526_v3  ;;  %4710 = vmatprep.subr.mxu0 %v4158_v53 }
0x4e41   :  { %5202 = vmatpush3.msra.mxu1 %v4174_v54  ;;  %4711 = vmatpush3.msra.mxu0 %v4142_v39 }
0x4e42   :  { %5203 = vmatprep.subr.mxu1 %v5526_v3  ;;  %4712 = vmatprep.subr.mxu0 %v4157_v55 }
0x4e43   :  { %5204 = vmatpush3.msra.mxu1 %v4173_v25  ;;  %4713 = vmatpush3.msra.mxu0 %v4141_v40 }
0x4e44   :  { %5205 = vmatprep.subr.mxu1 %v5526_v3  ;;  %4714 = vmatprep.subr.mxu0 %v4156_v1 }
0x4e45   :  { %5206 = vmatpush3.msra.mxu1 %v4172_v57  ;;  %4715 = vmatpush3.msra.mxu0 %v4140_v41 }
0x4e46   :  { %5207 = vmatprep.subr.mxu1 %v5526_v3  ;;  %4716 = vmatprep.subr.mxu0 %v4155_v10 }
0x4e47   :  { %5208 = vmatpush3.msra.mxu1 %v4171_v58  ;;  %4717 = vmatpush3.msra.mxu0 %v4139_v47 }
0x4e48   :  { %5209 = vmatprep.subr.mxu1 %v5526_v3  ;;  %4718 = vmatprep.subr.mxu0 %v4154_v60 }
0x4e49   :  { %5210 = vmatpush3.msra.mxu1 %v4170_v61  ;;  %4719 = vmatpush3.msra.mxu0 %v4138_v62 }
0x4e4a   :  { %5211 = vmatprep.subr.mxu1 %v5526_v3  ;;  %5217 = vmatprep.mubr.msk.f32.mxu1 %vm5527_vm1, %v5526_v3 }
0x4e4b   :  { %5212 = vmatpush3.msra.mxu1 %v4169_v5  ;;  %4720 = vmatprep.subr.mxu0 %v4153_v63 }
0x4e4c   :  { %5213 = vmatprep.subr.mxu1 %v5526_v3  ;;  %4721 = vmatpush3.msra.mxu0 %v4137_v0 }
0x4e4d   :  { %5214 = vmatpush3.msra.mxu1 %v4168_v7  ;;  %4722 = vmatprep.subr.mxu0 %v4152_v2 }
0x4e4e   :  { %5215 = vmatprep.subr.mxu1 %v5526_v3  ;;  %4723 = vmatpush3.msra.mxu0 %v4136_v4  ;;  %v4135_v3 = vld [vmem:[%s6628_s9] sm:$0xff]  ;;  %s4344_s9 = sshll.u32 %s5530_s8, 4  ;;  %s4345_s9 = int_to_ptr.vmem [resolvable:$true] %s4344_s9 }
0x4e4f   :  { %5216 = vmatpush3.msra.mxu1 %v4167_v8  ;;  %4724 = vmatprep.subr.mxu0 %v4151_v31  ;;  %s5482_s20 = scalar_lea.vmem %s4345_s9, 384  ;;  %p5487_p1 = scmp.lt.s32.totalorder %s4345_s9, %s4345_s9 }
0x4e50   :  { %4725 = vmatpush3.msra.mxu0 %v4135_v3  ;;  %p5483_p0 = scmp.ne.s32.totalorder %s4345_s9, %s5482_s20  ;;  %p5488_p2 = scmp.lt.s32.totalorder %s5482_s20, %s5482_s20 }
0x4e52   :  { %p5489_p3 = por %p5488_p2, %p5487_p1 }
0x4e54   :  { %p5490_p4 = pnand %p5489_p3, %p5483_p0 }
0x4ef0   :  { %v4060_v19 = vpop.f32.mrf.mxu0  ;;  %v4131_v20 = vpop.f32.mrf.mxu1 }
0x4ef1   :  { %v4061_v21 = vadd.f32 %v4060_v19, %v3977_v37  ;;  %v4132_v22 = vadd.f32 %v4131_v20, %v3985_v13 }
0x4ef2   :  { %v4062_v14 = vpop.f32.mrf.mxu0  ;;  %v5184_v24 = vpop.f32.mrf.mxu1 }
0x4ef3   :  { %v4330_v30 = vmax.f32 %v4061_v21, 0.0  ;;  %v4332_v32 = vmax.f32 %v4132_v22, 0.0  ;;  %v4063_v33 = vadd.f32 %v4062_v14, %v3981_v18  ;;  %5218 = vmatmul.mubr.f32.vlgmr.msra.gmra.mxu1 %v4132_v22 }
0x4ef5   :  { %4333 = vst [vmem:[#allocation4] sm:$0xff] %v4330_v30  ;;  %4335 = vst [vmem:[#allocation4 + $0x10] sm:$0xff] %v4332_v32  ;;  %v4331_v15 = vmax.f32 %v4063_v33, 0.0  ;;  %4254 = vmatprep.mubr.f32.mxu0 %v4063_v33 }
0x4ef6   :  { %4255 = vmatmul.mubr.f32.vlgmr.msra.gmra.mxu0 %v4061_v21 }
0x4ef7   :  { %4334 = vst [vmem:[#allocation4 + $0x8] sm:$0xff] %v4331_v15 }
0x4ef8   :  { %5493 = shalt.err (!%p5490_p4)
}
0x4ef9   :  { %4347 = dma.vmem_to_hbm [thread:$0]  %s4345_s9, 384, %s6630_s11, [#allocation5]   ;;  %v4482_v36 = vld [vmem:[%s6629_s10] ss:$0 sm:$0xff]  ;;  %vm4336_vm3 = vcmask 326656  }
0x4efa   :  { %s5531_s6 = smov [#allocation6]  }
0x4efb   :  { %s4354_s24 = sshll.u32 %s5531_s6, 4  ;;  %s4355_s24 = int_to_ptr.vmem [resolvable:$true] %s4354_s24 }
0x4efc   :  { %s5502_s25 = scalar_lea.vmem %s4355_s24, 128  ;;  %p5507_p6 = scmp.lt.s32.totalorder %s4355_s24, %s4355_s24 }
0x4efd   :  { %p5503_p5 = scmp.ne.s32.totalorder %s4355_s24, %s5502_s25  ;;  %p5508_p7 = scmp.lt.s32.totalorder %s5502_s25, %s5502_s25 }
0x4eff   :  { %p5509_p8 = por %p5508_p7, %p5507_p6 }
0x4f01   :  { %p5510_p9 = pnand %p5509_p8, %p5503_p5 }
0x4fb3   :  { %v4326_v34 = vpop.f32.mrf.mxu1 }
0x4fb5   :  { %v5219_v16 = vpop.f32.mrf.mxu1 }
0x4fb6   :  { %v4726_v26 = vpop.f32.mrf.mxu0 }
0x4fb8   :  { %v4727_v17 = vpop.f32.mrf.mxu0 }
0x4fb9   :  { %v4728_v43 = vadd.f32 %v4727_v17, %v4726_v26 }
0x4fbb   :  { %v4257_v59 = vadd.f32 %v4728_v43, %v4482_v36 }
0x4fbd   :  { %v4327_v23 = vadd.f32 %v4326_v34, %v4257_v59 }
0x4fbf   :  { %4337 = vst.msk [vmem:[#allocation6] sm:$0xff] %vm4336_vm3, %v4327_v23 }
0x4fc0   :  { %5513 = shalt.err (!%p5510_p9)
}
0x4fc1   :  { %4357 = dma.vmem_to_hbm [thread:$0]  %s4355_s24, 128, %s6631_s12, [#allocation7]  }
0x4fc2   :  { %5522 = dma.done.wait [#allocation5], 384  }
0x4fc3   :  { %5523 = vsyncadd [#allocation5], 4294966912 }
0x4fc4   :  { %5524 = dma.done.wait [#allocation7], 128  }
0x4fc5   :  { %5525 = vsyncadd [#allocation7], 4294967168 }
0x4fc6   :  { %4364 = vsyncpa [#allocation5], 1 }
0x4fc7   :  { %4365 = vsyncpa [#allocation7], 1 }

</bundles_post_ra>
